<compile_context>
chip_gen: v5e
topology: v5e:2x2
jax: 0.10.0
libtpu: 0.0.40
codegen_flags: <defaults>
</compile_context>

<pallas_src>
import functools
import numpy as np
import jax
import jax.numpy as jnp
from jax.experimental import pallas as pl
from jax.experimental.pallas import tpu as pltpu


# ----------------------------- fused forward kernel -----------------------------
def _net_kernel(x1_ref, mask_ref, wc_ref, bc_ref, wc1_ref, bc1_ref,
                wih_ref, whh_ref, bg_ref, wl_ref, bl_ref,
                o_ref,
                x2_s, seq_s, xp_s,
                *, B, cell_num, Cin, H, W, T, Hd, n_class, SB):
    f32 = jnp.float32
    Wp = W + 2
    P = (H + 2) * Wp
    E = Wp + 1                       # flat tap-shift guard on each side
    N = cell_num * B

    # ---- hoist every SMEM weight scalar above the tap loops ----
    w1 = [[wc_ref[c * 9 + k] for k in range(9)] for c in range(Cin)]
    w2 = [[wc1_ref[cc * 9 + k] for k in range(9)] for cc in range(cell_num)]
    b1 = bc_ref[0]
    b2 = bc1_ref[0]
    mask = mask_ref[...]             # (1, P) interior mask of the padded plane

    # ---- conv stage 1: shared CNN over every (cell, batch) plane ----
    # x1_ref: (Cin, cell_num*B, P + 2E), zero-padded planes on the lane axis.
    acc1 = jnp.zeros((N, P), f32)
    for ki in range(3):
        for kj in range(3):
            s = ki * Wp + kj                      # = E + (ki-1)*Wp + (kj-1)
            tap = x1_ref[:, :, s:s + P]           # ONE lane shift per tap
            for c in range(Cin):
                acc1 = acc1 + w1[c][ki * 3 + kj] * tap[c]
    # add bias and zero the pad ring -> this IS the padded stage-2 input
    cell_all = (acc1 + b1) * mask                 # (cell_num*B, P)

    # ---- build zero-padded stage-2 input (== torch.cat) in VMEM ----
    x2_s[...] = jnp.zeros(x2_s.shape, f32)
    for cc in range(cell_num):
        x2_s[cc, :, E:E + P] = cell_all[cc * B:(cc + 1) * B, :]

    # ---- conv stage 2 (CNN1) ----
    acc2 = jnp.zeros((B, P), f32)
    for ki in range(3):
        for kj in range(3):
            s = ki * Wp + kj
            tap = x2_s[:, :, s:s + P]             # (cell_num, B, P)
            for cc in range(cell_num):
                acc2 = acc2 + w2[cc][ki * 3 + kj] * tap[cc]
    acc2 = acc2 + b2                              # (B, P)

    # ---- repack image rows into the (T*SB, I) sequence (I == W, step == row) ----
    seq_s[...] = jnp.zeros(seq_s.shape, f32)
    for t in range(T):
        a = (t + 1) * Wp + 1
        seq_s[t * SB:t * SB + B, :] = acc2[:, a:a + W]

    # ---- hoisted LSTM input projection: ONE matmul for all (t, b) ----
    xp_s[...] = (jnp.dot(seq_s[...], wih_ref[...], preferred_element_type=f32)
                 + bg_ref[...])

    # ---- LSTM recurrence (PyTorch gate order i, f, g, o), fully unrolled ----
    whh = whh_ref[...]                            # (Hd, 4*Hd)
    wl = wl_ref[...]                              # (T, Hd) or (T*Hd, n_class)
    h = jnp.zeros((B, Hd), f32)
    c = jnp.zeros((B, Hd), f32)
    out_acc = jnp.zeros((B, n_class), f32)
    for t in range(T):
        gates = xp_s[t * SB:t * SB + B, :] + jnp.dot(
            h, whh, preferred_element_type=f32)
        sg = jax.nn.sigmoid(gates)                # one full-width EUP pass (i, f, o)
        tg = jnp.tanh(gates)                      # one full-width EUP pass (g)
        i_g = sg[:, 0:Hd]
        f_g = sg[:, Hd:2 * Hd]
        g_g = tg[:, 2 * Hd:3 * Hd]
        o_g = sg[:, 3 * Hd:4 * Hd]
        c = f_g * c + i_g * g_g
        h = o_g * jnp.tanh(c)
        # final Linear folded into the loop, off the recurrence chain
        if n_class == 1:
            out_acc = out_acc + jnp.sum(h * wl[t:t + 1, :], axis=-1, keepdims=True)
        else:
            out_acc = out_acc + jnp.dot(h, wl[t * Hd:(t + 1) * Hd, :],
                                        preferred_element_type=f32)
    o_ref[...] = out_acc + bl_ref[...]


def net_forward(x, params):
    (w_cnn, b_cnn, w_cnn1, b_cnn1, w_ih, w_hh, b_ih, b_hh, w_lin, b_lin) = params
    B, cell_num, Cin, H, W = x.shape
    T = 20
    assert (H * W) % T == 0, "H*W must be divisible by 20 (sequence length)"
    # TODO(synk): general H != 20 needs an extra flat repack; here each of the
    # module's 20 sequence steps maps exactly onto one image row.
    assert H == T, "kernel assumes one sequence step per image row (H == 20)"
    I = (H * W) // T                 # == W
    Hd = w_hh.shape[1]
    n_class = w_lin.shape[0]
    Hp, Wp = H + 2, W + 2
    P = Hp * Wp
    E = Wp + 1
    P_ext = P + 2 * E
    SB = 8 * ((B + 7) // 8)          # sublane-aligned rows per timestep

    # ---- tiny host-side prep (a few KB of layout-only XLA ops) ----
    # channel-major / cell-major-batch, lane-dense flattened padded planes
    x1 = jnp.transpose(x, (2, 1, 0, 3, 4))                      # (Cin, cn, B, H, W)
    x1 = jnp.pad(x1, ((0, 0), (0, 0), (0, 0), (1, 1), (1, 1)))  # conv padding=1
    x1 = x1.reshape(Cin, cell_num * B, P)
    x1 = jnp.pad(x1, ((0, 0), (0, 0), (E, E)))                  # tap-shift guard

    pidx = jnp.arange(P)
    ii, jj = pidx // Wp, pidx % Wp
    mask = (((ii >= 1) & (ii <= H) & (jj >= 1) & (jj <= W))
            .astype(jnp.float32).reshape(1, P))

    wc = w_cnn.reshape(-1)                        # (Cin*9,)
    wc1 = w_cnn1.reshape(-1)                      # (cell_num*9,)
    wih_t = jnp.swapaxes(w_ih, 0, 1)              # (I, 4*Hd)
    whh_t = jnp.swapaxes(w_hh, 0, 1)              # (Hd, 4*Hd)
    bg = (b_ih + b_hh).reshape(1, 4 * Hd)
    if n_class == 1:
        wl = w_lin.reshape(T, Hd)                 # per-step rows of the Linear
    else:
        wl = jnp.swapaxes(w_lin, 0, 1)            # (T*Hd, n_class)
    bl = b_lin.reshape(1, n_class)

    kernel = functools.partial(_net_kernel, B=B, cell_num=cell_num, Cin=Cin,
                               H=H, W=W, T=T, Hd=Hd, n_class=n_class, SB=SB)

    return pl.pallas_call(
        kernel,
        out_shape=jax.ShapeDtypeStruct((B, n_class), jnp.float32),
        grid=(1,),
        in_specs=[
            pl.BlockSpec((Cin, cell_num * B, P_ext), lambda i: (0, 0, 0)),
            pl.BlockSpec((1, P), lambda i: (0, 0)),
            pl.BlockSpec(memory_space=pltpu.MemorySpace.SMEM),   # CNN weights (flat)
            pl.BlockSpec(memory_space=pltpu.MemorySpace.SMEM),   # CNN bias
            pl.BlockSpec(memory_space=pltpu.MemorySpace.SMEM),   # CNN1 weights (flat)
            pl.BlockSpec(memory_space=pltpu.MemorySpace.SMEM),   # CNN1 bias
            pl.BlockSpec((I, 4 * Hd), lambda i: (0, 0)),
            pl.BlockSpec((Hd, 4 * Hd), lambda i: (0, 0)),
            pl.BlockSpec((1, 4 * Hd), lambda i: (0, 0)),
            pl.BlockSpec(wl.shape, lambda i: (0, 0)),
            pl.BlockSpec((1, n_class), lambda i: (0, 0)),
        ],
        out_specs=pl.BlockSpec((B, n_class), lambda i: (0, 0)),
        scratch_shapes=[
            pltpu.VMEM((cell_num, B, P_ext), jnp.float32),   # padded stage-2 input
            pltpu.VMEM((T * SB, I), jnp.float32),            # repacked sequence
            pltpu.VMEM((T * SB, 4 * Hd), jnp.float32),       # hoisted x-projection
        ],
        compiler_params=pltpu.CompilerParams(
            dimension_semantics=("arbitrary",)),
    )(x1, mask, wc, b_cnn, wc1, b_cnn1, wih_t, whh_t, bg, wl, bl)


# ---------------- pure-JAX reference for correctness check ----------------
def ref_forward(x, params):
    (w_cnn, b_cnn, w_cnn1, b_cnn1, w_ih, w_hh, b_ih, b_hh, w_lin, b_lin) = params

    def conv(img, w, b):
        o = jax.lax.conv_general_dilated(img, w, (1, 1), ((1, 1), (1, 1)),
                                         dimension_numbers=("NCHW", "OIHW", "NCHW"))
        return o + b.reshape(1, -1, 1, 1)

    B = x.shape[0]
    o1 = conv(x[:, 0], w_cnn, b_cnn)
    o2 = conv(x[:, 1], w_cnn, b_cnn)
    cell_all = jnp.concatenate([o1, o2], axis=1)
    out = conv(cell_all, w_cnn1, b_cnn1)[:, 0]
    seq = out.reshape(B, 20, -1)
    Hd = w_hh.shape[1]

    def step(carry, xt):
        h, c = carry
        gates = xt @ w_ih.T + h @ w_hh.T + b_ih + b_hh
        i = jax.nn.sigmoid(gates[:, :Hd])
        f = jax.nn.sigmoid(gates[:, Hd:2 * Hd])
        g = jnp.tanh(gates[:, 2 * Hd:3 * Hd])
        o = jax.nn.sigmoid(gates[:, 3 * Hd:4 * Hd])
        c = f * c + i * g
        h = o * jnp.tanh(c)
        return (h, c), h

    (_, _), hs = jax.lax.scan(
        step,
        (jnp.zeros((B, Hd), jnp.float32), jnp.zeros((B, Hd), jnp.float32)),
        jnp.swapaxes(seq, 0, 1))
    lstm_out = jnp.swapaxes(hs, 0, 1)
    flat = lstm_out.reshape(B, -1)
    return flat @ w_lin.T + b_lin


if __name__ == "__main__":
    # Shapes consistent with the module: 3 input channels, H == 20 so H*W / 20 == W.
    B, cell_num, Cin, H, W = 2, 2, 3, 20, 16
    seq_len = 20
    input_size = (H * W) // seq_len      # 16
    hidden_dim = 32
    n_class = 1

    key = jax.random.PRNGKey(0)
    ks = jax.random.split(key, 11)

    def u(k, shape, fan_in):
        bound = 1.0 / np.sqrt(fan_in)
        return jax.random.uniform(k, shape, jnp.float32, -bound, bound)

    # PyTorch-style uniform(-1/sqrt(fan_in), 1/sqrt(fan_in)) init.
    w_cnn = u(ks[0], (1, 3, 3, 3), 3 * 9)                       # self.CNN
    b_cnn = u(ks[1], (1,), 3 * 9)
    w_cnn1 = u(ks[2], (1, cell_num, 3, 3), cell_num * 9)        # self.CNN1
    b_cnn1 = u(ks[3], (1,), cell_num * 9)
    w_ih = u(ks[4], (4 * hidden_dim, input_size), hidden_dim)   # nn.LSTM (1 layer)
    w_hh = u(ks[5], (4 * hidden_dim, hidden_dim), hidden_dim)
    b_ih = u(ks[6], (4 * hidden_dim,), hidden_dim)
    b_hh = u(ks[7], (4 * hidden_dim,), hidden_dim)
    w_lin = u(ks[8], (n_class, hidden_dim * seq_len), hidden_dim * seq_len)
    b_lin = u(ks[9], (n_class,), hidden_dim * seq_len)

    x = jax.random.normal(ks[10], (B, cell_num, Cin, H, W), jnp.float32)
    params = (w_cnn, b_cnn, w_cnn1, b_cnn1, w_ih, w_hh, b_ih, b_hh, w_lin, b_lin)

    y = jax.block_until_ready(jax.jit(net_forward)(x, params))
    with jax.default_matmul_precision("float32"):
        y_ref = jax.block_until_ready(jax.jit(ref_forward)(x, params))
    # tolerance covers MXU f32-pass vs XLA matmul accumulation-order differences
    np.testing.assert_allclose(np.asarray(y), np.asarray(y_ref), rtol=5e-3, atol=5e-3)
    assert y.shape == (B, n_class)
    print("KERNEL_OK")
</pallas_src>

<mosaic_0001>
module attributes {stable_mosaic.version = 11 : i64} {
  func.func @_net_kernel(%arg0: i32, %arg1: memref<3x4x434xf32, #tpu.memory_space<vmem>>, %arg2: memref<1x396xf32, #tpu.memory_space<vmem>>, %arg3: memref<27xf32, #tpu.memory_space<smem>>, %arg4: memref<1xf32, #tpu.memory_space<smem>>, %arg5: memref<18xf32, #tpu.memory_space<smem>>, %arg6: memref<1xf32, #tpu.memory_space<smem>>, %arg7: memref<16x128xf32, #tpu.memory_space<vmem>>, %arg8: memref<32x128xf32, #tpu.memory_space<vmem>>, %arg9: memref<1x128xf32, #tpu.memory_space<vmem>>, %arg10: memref<20x32xf32, #tpu.memory_space<vmem>>, %arg11: memref<1x1xf32, #tpu.memory_space<vmem>>, %arg12: memref<2x1xf32, #tpu.memory_space<vmem>>, %arg13: memref<2x2x434xf32, #tpu.memory_space<vmem>>, %arg14: memref<160x16xf32, #tpu.memory_space<vmem>>, %arg15: memref<160x128xf32, #tpu.memory_space<vmem>>) attributes {dimension_semantics = [#tpu.dimension_semantics<arbitrary>], iteration_bounds = array<i64: 1>, scalar_prefetch = 0 : i64, scratch_operands = 3 : i64, tpu.core_type = #tpu.core_type<tc>, window_params = [{pipeline_mode = #tpu.pipeline_mode<synchronous>, transform_indices = @transform_0, window_bounds = array<i64: 3, 4, 434>}, {pipeline_mode = #tpu.pipeline_mode<synchronous>, transform_indices = @transform_1, window_bounds = array<i64: 1, 396>}, {transform_indices = @transform_2, window_bounds = array<i64: 27>}, {transform_indices = @transform_3, window_bounds = array<i64: 1>}, {transform_indices = @transform_4, window_bounds = array<i64: 18>}, {transform_indices = @transform_5, window_bounds = array<i64: 1>}, {pipeline_mode = #tpu.pipeline_mode<synchronous>, transform_indices = @transform_6, window_bounds = array<i64: 16, 128>}, {pipeline_mode = #tpu.pipeline_mode<synchronous>, transform_indices = @transform_7, window_bounds = array<i64: 32, 128>}, {pipeline_mode = #tpu.pipeline_mode<synchronous>, transform_indices = @transform_8, window_bounds = array<i64: 1, 128>}, {pipeline_mode = #tpu.pipeline_mode<synchronous>, transform_indices = @transform_9, window_bounds = array<i64: 20, 32>}, {pipeline_mode = #tpu.pipeline_mode<synchronous>, transform_indices = @transform_10, window_bounds = array<i64: 1, 1>}, {pipeline_mode = #tpu.pipeline_mode<synchronous>, transform_indices = @transform_11, window_bounds = array<i64: 2, 1>}]} {
    %c0 = arith.constant 0 : index
    %0 = memref.load %arg3[%c0] : memref<27xf32, #tpu.memory_space<smem>>
    %c1 = arith.constant 1 : index
    %1 = memref.load %arg3[%c1] : memref<27xf32, #tpu.memory_space<smem>>
    %c2 = arith.constant 2 : index
    %2 = memref.load %arg3[%c2] : memref<27xf32, #tpu.memory_space<smem>>
    %c3 = arith.constant 3 : index
    %3 = memref.load %arg3[%c3] : memref<27xf32, #tpu.memory_space<smem>>
    %c4 = arith.constant 4 : index
    %4 = memref.load %arg3[%c4] : memref<27xf32, #tpu.memory_space<smem>>
    %c5 = arith.constant 5 : index
    %5 = memref.load %arg3[%c5] : memref<27xf32, #tpu.memory_space<smem>>
    %c6 = arith.constant 6 : index
    %6 = memref.load %arg3[%c6] : memref<27xf32, #tpu.memory_space<smem>>
    %c7 = arith.constant 7 : index
    %7 = memref.load %arg3[%c7] : memref<27xf32, #tpu.memory_space<smem>>
    %c8 = arith.constant 8 : index
    %8 = memref.load %arg3[%c8] : memref<27xf32, #tpu.memory_space<smem>>
    %c9 = arith.constant 9 : index
    %9 = memref.load %arg3[%c9] : memref<27xf32, #tpu.memory_space<smem>>
    %c10 = arith.constant 10 : index
    %10 = memref.load %arg3[%c10] : memref<27xf32, #tpu.memory_space<smem>>
    %c11 = arith.constant 11 : index
    %11 = memref.load %arg3[%c11] : memref<27xf32, #tpu.memory_space<smem>>
    %c12 = arith.constant 12 : index
    %12 = memref.load %arg3[%c12] : memref<27xf32, #tpu.memory_space<smem>>
    %c13 = arith.constant 13 : index
    %13 = memref.load %arg3[%c13] : memref<27xf32, #tpu.memory_space<smem>>
    %c14 = arith.constant 14 : index
    %14 = memref.load %arg3[%c14] : memref<27xf32, #tpu.memory_space<smem>>
    %c15 = arith.constant 15 : index
    %15 = memref.load %arg3[%c15] : memref<27xf32, #tpu.memory_space<smem>>
    %c16 = arith.constant 16 : index
    %16 = memref.load %arg3[%c16] : memref<27xf32, #tpu.memory_space<smem>>
    %c17 = arith.constant 17 : index
    %17 = memref.load %arg3[%c17] : memref<27xf32, #tpu.memory_space<smem>>
    %c18 = arith.constant 18 : index
    %18 = memref.load %arg3[%c18] : memref<27xf32, #tpu.memory_space<smem>>
    %c19 = arith.constant 19 : index
    %19 = memref.load %arg3[%c19] : memref<27xf32, #tpu.memory_space<smem>>
    %c20 = arith.constant 20 : index
    %20 = memref.load %arg3[%c20] : memref<27xf32, #tpu.memory_space<smem>>
    %c21 = arith.constant 21 : index
    %21 = memref.load %arg3[%c21] : memref<27xf32, #tpu.memory_space<smem>>
    %c22 = arith.constant 22 : index
    %22 = memref.load %arg3[%c22] : memref<27xf32, #tpu.memory_space<smem>>
    %c23 = arith.constant 23 : index
    %23 = memref.load %arg3[%c23] : memref<27xf32, #tpu.memory_space<smem>>
    %c24 = arith.constant 24 : index
    %24 = memref.load %arg3[%c24] : memref<27xf32, #tpu.memory_space<smem>>
    %c25 = arith.constant 25 : index
    %25 = memref.load %arg3[%c25] : memref<27xf32, #tpu.memory_space<smem>>
    %c26 = arith.constant 26 : index
    %26 = memref.load %arg3[%c26] : memref<27xf32, #tpu.memory_space<smem>>
    %c0_0 = arith.constant 0 : index
    %27 = memref.load %arg5[%c0_0] : memref<18xf32, #tpu.memory_space<smem>>
    %c1_1 = arith.constant 1 : index
    %28 = memref.load %arg5[%c1_1] : memref<18xf32, #tpu.memory_space<smem>>
    %c2_2 = arith.constant 2 : index
    %29 = memref.load %arg5[%c2_2] : memref<18xf32, #tpu.memory_space<smem>>
    %c3_3 = arith.constant 3 : index
    %30 = memref.load %arg5[%c3_3] : memref<18xf32, #tpu.memory_space<smem>>
    %c4_4 = arith.constant 4 : index
    %31 = memref.load %arg5[%c4_4] : memref<18xf32, #tpu.memory_space<smem>>
    %c5_5 = arith.constant 5 : index
    %32 = memref.load %arg5[%c5_5] : memref<18xf32, #tpu.memory_space<smem>>
    %c6_6 = arith.constant 6 : index
    %33 = memref.load %arg5[%c6_6] : memref<18xf32, #tpu.memory_space<smem>>
    %c7_7 = arith.constant 7 : index
    %34 = memref.load %arg5[%c7_7] : memref<18xf32, #tpu.memory_space<smem>>
    %c8_8 = arith.constant 8 : index
    %35 = memref.load %arg5[%c8_8] : memref<18xf32, #tpu.memory_space<smem>>
    %c9_9 = arith.constant 9 : index
    %36 = memref.load %arg5[%c9_9] : memref<18xf32, #tpu.memory_space<smem>>
    %c10_10 = arith.constant 10 : index
    %37 = memref.load %arg5[%c10_10] : memref<18xf32, #tpu.memory_space<smem>>
    %c11_11 = arith.constant 11 : index
    %38 = memref.load %arg5[%c11_11] : memref<18xf32, #tpu.memory_space<smem>>
    %c12_12 = arith.constant 12 : index
    %39 = memref.load %arg5[%c12_12] : memref<18xf32, #tpu.memory_space<smem>>
    %c13_13 = arith.constant 13 : index
    %40 = memref.load %arg5[%c13_13] : memref<18xf32, #tpu.memory_space<smem>>
    %c14_14 = arith.constant 14 : index
    %41 = memref.load %arg5[%c14_14] : memref<18xf32, #tpu.memory_space<smem>>
    %c15_15 = arith.constant 15 : index
    %42 = memref.load %arg5[%c15_15] : memref<18xf32, #tpu.memory_space<smem>>
    %c16_16 = arith.constant 16 : index
    %43 = memref.load %arg5[%c16_16] : memref<18xf32, #tpu.memory_space<smem>>
    %c17_17 = arith.constant 17 : index
    %44 = memref.load %arg5[%c17_17] : memref<18xf32, #tpu.memory_space<smem>>
    %c0_18 = arith.constant 0 : index
    %45 = memref.load %arg4[%c0_18] : memref<1xf32, #tpu.memory_space<smem>>
    %c0_19 = arith.constant 0 : index
    %46 = memref.load %arg6[%c0_19] : memref<1xf32, #tpu.memory_space<smem>>
    %c0_20 = arith.constant 0 : index
    %c0_21 = arith.constant 0 : index
    %47 = vector.load %arg2[%c0_20, %c0_21] : memref<1x396xf32, #tpu.memory_space<vmem>>, vector<1x396xf32>
    %cst = arith.constant 0.000000e+00 : f32
    %48 = vector.broadcast %cst : f32 to vector<4x396xf32>
    %c0_22 = arith.constant 0 : index
    %c0_23 = arith.constant 0 : index
    %c0_24 = arith.constant 0 : index
    %49 = vector.load %arg1[%c0_22, %c0_23, %c0_24] : memref<3x4x434xf32, #tpu.memory_space<vmem>>, vector<3x4x396xf32>
    %50 = vector.extract_strided_slice %49 {offsets = [0, 0, 0], sizes = [1, 4, 396], strides = [1, 1, 1]} : vector<3x4x396xf32> to vector<1x4x396xf32>
    %51 = vector.shape_cast %50 : vector<1x4x396xf32> to vector<4x396xf32>
    %52 = vector.broadcast %0 : f32 to vector<4x396xf32>
    %53 = arith.mulf %52, %51 : vector<4x396xf32>
    %54 = arith.addf %48, %53 : vector<4x396xf32>
    %55 = vector.extract_strided_slice %49 {offsets = [1, 0, 0], sizes = [1, 4, 396], strides = [1, 1, 1]} : vector<3x4x396xf32> to vector<1x4x396xf32>
    %56 = vector.shape_cast %55 : vector<1x4x396xf32> to vector<4x396xf32>
    %57 = vector.broadcast %9 : f32 to vector<4x396xf32>
    %58 = arith.mulf %57, %56 : vector<4x396xf32>
    %59 = arith.addf %54, %58 : vector<4x396xf32>
    %60 = vector.extract_strided_slice %49 {offsets = [2, 0, 0], sizes = [1, 4, 396], strides = [1, 1, 1]} : vector<3x4x396xf32> to vector<1x4x396xf32>
    %61 = vector.shape_cast %60 : vector<1x4x396xf32> to vector<4x396xf32>
    %62 = vector.broadcast %18 : f32 to vector<4x396xf32>
    %63 = arith.mulf %62, %61 : vector<4x396xf32>
    %64 = arith.addf %59, %63 : vector<4x396xf32>
    %c0_25 = arith.constant 0 : index
    %c0_26 = arith.constant 0 : index
    %c1_27 = arith.constant 1 : index
    %65 = vector.load %arg1[%c0_25, %c0_26, %c1_27] : memref<3x4x434xf32, #tpu.memory_space<vmem>>, vector<3x4x396xf32>
    %66 = vector.extract_strided_slice %65 {offsets = [0, 0, 0], sizes = [1, 4, 396], strides = [1, 1, 1]} : vector<3x4x396xf32> to vector<1x4x396xf32>
    %67 = vector.shape_cast %66 : vector<1x4x396xf32> to vector<4x396xf32>
    %68 = vector.broadcast %1 : f32 to vector<4x396xf32>
    %69 = arith.mulf %68, %67 : vector<4x396xf32>
    %70 = arith.addf %64, %69 : vector<4x396xf32>
    %71 = vector.extract_strided_slice %65 {offsets = [1, 0, 0], sizes = [1, 4, 396], strides = [1, 1, 1]} : vector<3x4x396xf32> to vector<1x4x396xf32>
    %72 = vector.shape_cast %71 : vector<1x4x396xf32> to vector<4x396xf32>
    %73 = vector.broadcast %10 : f32 to vector<4x396xf32>
    %74 = arith.mulf %73, %72 : vector<4x396xf32>
    %75 = arith.addf %70, %74 : vector<4x396xf32>
    %76 = vector.extract_strided_slice %65 {offsets = [2, 0, 0], sizes = [1, 4, 396], strides = [1, 1, 1]} : vector<3x4x396xf32> to vector<1x4x396xf32>
    %77 = vector.shape_cast %76 : vector<1x4x396xf32> to vector<4x396xf32>
    %78 = vector.broadcast %19 : f32 to vector<4x396xf32>
    %79 = arith.mulf %78, %77 : vector<4x396xf32>
    %80 = arith.addf %75, %79 : vector<4x396xf32>
    %c0_28 = arith.constant 0 : index
    %c0_29 = arith.constant 0 : index
    %c2_30 = arith.constant 2 : index
    %81 = vector.load %arg1[%c0_28, %c0_29, %c2_30] : memref<3x4x434xf32, #tpu.memory_space<vmem>>, vector<3x4x396xf32>
    %82 = vector.extract_strided_slice %81 {offsets = [0, 0, 0], sizes = [1, 4, 396], strides = [1, 1, 1]} : vector<3x4x396xf32> to vector<1x4x396xf32>
    %83 = vector.shape_cast %82 : vector<1x4x396xf32> to vector<4x396xf32>
    %84 = vector.broadcast %2 : f32 to vector<4x396xf32>
    %85 = arith.mulf %84, %83 : vector<4x396xf32>
    %86 = arith.addf %80, %85 : vector<4x396xf32>
    %87 = vector.extract_strided_slice %81 {offsets = [1, 0, 0], sizes = [1, 4, 396], strides = [1, 1, 1]} : vector<3x4x396xf32> to vector<1x4x396xf32>
    %88 = vector.shape_cast %87 : vector<1x4x396xf32> to vector<4x396xf32>
    %89 = vector.broadcast %11 : f32 to vector<4x396xf32>
    %90 = arith.mulf %89, %88 : vector<4x396xf32>
    %91 = arith.addf %86, %90 : vector<4x396xf32>
    %92 = vector.extract_strided_slice %81 {offsets = [2, 0, 0], sizes = [1, 4, 396], strides = [1, 1, 1]} : vector<3x4x396xf32> to vector<1x4x396xf32>
    %93 = vector.shape_cast %92 : vector<1x4x396xf32> to vector<4x396xf32>
    %94 = vector.broadcast %20 : f32 to vector<4x396xf32>
    %95 = arith.mulf %94, %93 : vector<4x396xf32>
    %96 = arith.addf %91, %95 : vector<4x396xf32>
    %c0_31 = arith.constant 0 : index
    %c0_32 = arith.constant 0 : index
    %c18_33 = arith.constant 18 : index
    %97 = vector.load %arg1[%c0_31, %c0_32, %c18_33] : memref<3x4x434xf32, #tpu.memory_space<vmem>>, vector<3x4x396xf32>
    %98 = vector.extract_strided_slice %97 {offsets = [0, 0, 0], sizes = [1, 4, 396], strides = [1, 1, 1]} : vector<3x4x396xf32> to vector<1x4x396xf32>
    %99 = vector.shape_cast %98 : vector<1x4x396xf32> to vector<4x396xf32>
    %100 = vector.broadcast %3 : f32 to vector<4x396xf32>
    %101 = arith.mulf %100, %99 : vector<4x396xf32>
    %102 = arith.addf %96, %101 : vector<4x396xf32>
    %103 = vector.extract_strided_slice %97 {offsets = [1, 0, 0], sizes = [1, 4, 396], strides = [1, 1, 1]} : vector<3x4x396xf32> to vector<1x4x396xf32>
    %104 = vector.shape_cast %103 : vector<1x4x396xf32> to vector<4x396xf32>
    %105 = vector.broadcast %12 : f32 to vector<4x396xf32>
    %106 = arith.mulf %105, %104 : vector<4x396xf32>
    %107 = arith.addf %102, %106 : vector<4x396xf32>
    %108 = vector.extract_strided_slice %97 {offsets = [2, 0, 0], sizes = [1, 4, 396], strides = [1, 1, 1]} : vector<3x4x396xf32> to vector<1x4x396xf32>
    %109 = vector.shape_cast %108 : vector<1x4x396xf32> to vector<4x396xf32>
    %110 = vector.broadcast %21 : f32 to vector<4x396xf32>
    %111 = arith.mulf %110, %109 : vector<4x396xf32>
    %112 = arith.addf %107, %111 : vector<4x396xf32>
    %c0_34 = arith.constant 0 : index
    %c0_35 = arith.constant 0 : index
    %c19_36 = arith.constant 19 : index
    %113 = vector.load %arg1[%c0_34, %c0_35, %c19_36] : memref<3x4x434xf32, #tpu.memory_space<vmem>>, vector<3x4x396xf32>
    %114 = vector.extract_strided_slice %113 {offsets = [0, 0, 0], sizes = [1, 4, 396], strides = [1, 1, 1]} : vector<3x4x396xf32> to vector<1x4x396xf32>
    %115 = vector.shape_cast %114 : vector<1x4x396xf32> to vector<4x396xf32>
    %116 = vector.broadcast %4 : f32 to vector<4x396xf32>
    %117 = arith.mulf %116, %115 : vector<4x396xf32>
    %118 = arith.addf %112, %117 : vector<4x396xf32>
    %119 = vector.extract_strided_slice %113 {offsets = [1, 0, 0], sizes = [1, 4, 396], strides = [1, 1, 1]} : vector<3x4x396xf32> to vector<1x4x396xf32>
    %120 = vector.shape_cast %119 : vector<1x4x396xf32> to vector<4x396xf32>
    %121 = vector.broadcast %13 : f32 to vector<4x396xf32>
    %122 = arith.mulf %121, %120 : vector<4x396xf32>
    %123 = arith.addf %118, %122 : vector<4x396xf32>
    %124 = vector.extract_strided_slice %113 {offsets = [2, 0, 0], sizes = [1, 4, 396], strides = [1, 1, 1]} : vector<3x4x396xf32> to vector<1x4x396xf32>
    %125 = vector.shape_cast %124 : vector<1x4x396xf32> to vector<4x396xf32>
    %126 = vector.broadcast %22 : f32 to vector<4x396xf32>
    %127 = arith.mulf %126, %125 : vector<4x396xf32>
    %128 = arith.addf %123, %127 : vector<4x396xf32>
    %c0_37 = arith.constant 0 : index
    %c0_38 = arith.constant 0 : index
    %c20_39 = arith.constant 20 : index
    %129 = vector.load %arg1[%c0_37, %c0_38, %c20_39] : memref<3x4x434xf32, #tpu.memory_space<vmem>>, vector<3x4x396xf32>
    %130 = vector.extract_strided_slice %129 {offsets = [0, 0, 0], sizes = [1, 4, 396], strides = [1, 1, 1]} : vector<3x4x396xf32> to vector<1x4x396xf32>
    %131 = vector.shape_cast %130 : vector<1x4x396xf32> to vector<4x396xf32>
    %132 = vector.broadcast %5 : f32 to vector<4x396xf32>
    %133 = arith.mulf %132, %131 : vector<4x396xf32>
    %134 = arith.addf %128, %133 : vector<4x396xf32>
    %135 = vector.extract_strided_slice %129 {offsets = [1, 0, 0], sizes = [1, 4, 396], strides = [1, 1, 1]} : vector<3x4x396xf32> to vector<1x4x396xf32>
    %136 = vector.shape_cast %135 : vector<1x4x396xf32> to vector<4x396xf32>
    %137 = vector.broadcast %14 : f32 to vector<4x396xf32>
    %138 = arith.mulf %137, %136 : vector<4x396xf32>
    %139 = arith.addf %134, %138 : vector<4x396xf32>
    %140 = vector.extract_strided_slice %129 {offsets = [2, 0, 0], sizes = [1, 4, 396], strides = [1, 1, 1]} : vector<3x4x396xf32> to vector<1x4x396xf32>
    %141 = vector.shape_cast %140 : vector<1x4x396xf32> to vector<4x396xf32>
    %142 = vector.broadcast %23 : f32 to vector<4x396xf32>
    %143 = arith.mulf %142, %141 : vector<4x396xf32>
    %144 = arith.addf %139, %143 : vector<4x396xf32>
    %c0_40 = arith.constant 0 : index
    %c0_41 = arith.constant 0 : index
    %c36 = arith.constant 36 : index
    %145 = vector.load %arg1[%c0_40, %c0_41, %c36] : memref<3x4x434xf32, #tpu.memory_space<vmem>>, vector<3x4x396xf32>
    %146 = vector.extract_strided_slice %145 {offsets = [0, 0, 0], sizes = [1, 4, 396], strides = [1, 1, 1]} : vector<3x4x396xf32> to vector<1x4x396xf32>
    %147 = vector.shape_cast %146 : vector<1x4x396xf32> to vector<4x396xf32>
    %148 = vector.broadcast %6 : f32 to vector<4x396xf32>
    %149 = arith.mulf %148, %147 : vector<4x396xf32>
    %150 = arith.addf %144, %149 : vector<4x396xf32>
    %151 = vector.extract_strided_slice %145 {offsets = [1, 0, 0], sizes = [1, 4, 396], strides = [1, 1, 1]} : vector<3x4x396xf32> to vector<1x4x396xf32>
    %152 = vector.shape_cast %151 : vector<1x4x396xf32> to vector<4x396xf32>
    %153 = vector.broadcast %15 : f32 to vector<4x396xf32>
    %154 = arith.mulf %153, %152 : vector<4x396xf32>
    %155 = arith.addf %150, %154 : vector<4x396xf32>
    %156 = vector.extract_strided_slice %145 {offsets = [2, 0, 0], sizes = [1, 4, 396], strides = [1, 1, 1]} : vector<3x4x396xf32> to vector<1x4x396xf32>
    %157 = vector.shape_cast %156 : vector<1x4x396xf32> to vector<4x396xf32>
    %158 = vector.broadcast %24 : f32 to vector<4x396xf32>
    %159 = arith.mulf %158, %157 : vector<4x396xf32>
    %160 = arith.addf %155, %159 : vector<4x396xf32>
    %c0_42 = arith.constant 0 : index
    %c0_43 = arith.constant 0 : index
    %c37 = arith.constant 37 : index
    %161 = vector.load %arg1[%c0_42, %c0_43, %c37] : memref<3x4x434xf32, #tpu.memory_space<vmem>>, vector<3x4x396xf32>
    %162 = vector.extract_strided_slice %161 {offsets = [0, 0, 0], sizes = [1, 4, 396], strides = [1, 1, 1]} : vector<3x4x396xf32> to vector<1x4x396xf32>
    %163 = vector.shape_cast %162 : vector<1x4x396xf32> to vector<4x396xf32>
    %164 = vector.broadcast %7 : f32 to vector<4x396xf32>
    %165 = arith.mulf %164, %163 : vector<4x396xf32>
    %166 = arith.addf %160, %165 : vector<4x396xf32>
    %167 = vector.extract_strided_slice %161 {offsets = [1, 0, 0], sizes = [1, 4, 396], strides = [1, 1, 1]} : vector<3x4x396xf32> to vector<1x4x396xf32>
    %168 = vector.shape_cast %167 : vector<1x4x396xf32> to vector<4x396xf32>
    %169 = vector.broadcast %16 : f32 to vector<4x396xf32>
    %170 = arith.mulf %169, %168 : vector<4x396xf32>
    %171 = arith.addf %166, %170 : vector<4x396xf32>
    %172 = vector.extract_strided_slice %161 {offsets = [2, 0, 0], sizes = [1, 4, 396], strides = [1, 1, 1]} : vector<3x4x396xf32> to vector<1x4x396xf32>
    %173 = vector.shape_cast %172 : vector<1x4x396xf32> to vector<4x396xf32>
    %174 = vector.broadcast %25 : f32 to vector<4x396xf32>
    %175 = arith.mulf %174, %173 : vector<4x396xf32>
    %176 = arith.addf %171, %175 : vector<4x396xf32>
    %c0_44 = arith.constant 0 : index
    %c0_45 = arith.constant 0 : index
    %c38 = arith.constant 38 : index
    %177 = vector.load %arg1[%c0_44, %c0_45, %c38] : memref<3x4x434xf32, #tpu.memory_space<vmem>>, vector<3x4x396xf32>
    %178 = vector.extract_strided_slice %177 {offsets = [0, 0, 0], sizes = [1, 4, 396], strides = [1, 1, 1]} : vector<3x4x396xf32> to vector<1x4x396xf32>
    %179 = vector.shape_cast %178 : vector<1x4x396xf32> to vector<4x396xf32>
    %180 = vector.broadcast %8 : f32 to vector<4x396xf32>
    %181 = arith.mulf %180, %179 : vector<4x396xf32>
    %182 = arith.addf %176, %181 : vector<4x396xf32>
    %183 = vector.extract_strided_slice %177 {offsets = [1, 0, 0], sizes = [1, 4, 396], strides = [1, 1, 1]} : vector<3x4x396xf32> to vector<1x4x396xf32>
    %184 = vector.shape_cast %183 : vector<1x4x396xf32> to vector<4x396xf32>
    %185 = vector.broadcast %17 : f32 to vector<4x396xf32>
    %186 = arith.mulf %185, %184 : vector<4x396xf32>
    %187 = arith.addf %182, %186 : vector<4x396xf32>
    %188 = vector.extract_strided_slice %177 {offsets = [2, 0, 0], sizes = [1, 4, 396], strides = [1, 1, 1]} : vector<3x4x396xf32> to vector<1x4x396xf32>
    %189 = vector.shape_cast %188 : vector<1x4x396xf32> to vector<4x396xf32>
    %190 = vector.broadcast %26 : f32 to vector<4x396xf32>
    %191 = arith.mulf %190, %189 : vector<4x396xf32>
    %192 = arith.addf %187, %191 : vector<4x396xf32>
    %193 = vector.broadcast %45 : f32 to vector<4x396xf32>
    %194 = arith.addf %192, %193 : vector<4x396xf32>
    %195 = vector.broadcast %47 : vector<1x396xf32> to vector<4x396xf32>
    %196 = arith.mulf %194, %195 : vector<4x396xf32>
    %cst_46 = arith.constant 0.000000e+00 : f32
    %197 = vector.broadcast %cst_46 : f32 to vector<2x2x434xf32>
    %c0_47 = arith.constant 0 : index
    %c0_48 = arith.constant 0 : index
    %c0_49 = arith.constant 0 : index
    %198 = vector.load %arg13[%c0_47, %c0_48, %c0_49] : memref<2x2x434xf32, #tpu.memory_space<vmem>>, vector<2x2x434xf32>
    tpu.vector_store %arg13[%c0_47, %c0_48, %c0_49], %197 {strides = array<i32>} : memref<2x2x434xf32, #tpu.memory_space<vmem>>, vector<2x2x434xf32>,
    %199 = vector.extract_strided_slice %196 {offsets = [0, 0], sizes = [2, 396], strides = [1, 1]} : vector<4x396xf32> to vector<2x396xf32>
    %c0_50 = arith.constant 0 : index
    %c0_51 = arith.constant 0 : index
    %c19_52 = arith.constant 19 : index
    %200 = vector.load %arg13[%c0_50, %c0_51, %c19_52] : memref<2x2x434xf32, #tpu.memory_space<vmem>>, vector<1x2x396xf32>
    %201 = vector.shape_cast %200 : vector<1x2x396xf32> to vector<2x396xf32>
    %202 = vector.shape_cast %199 : vector<2x396xf32> to vector<1x2x396xf32>
    tpu.vector_store %arg13[%c0_50, %c0_51, %c19_52], %202 {strides = array<i32>} : memref<2x2x434xf32, #tpu.memory_space<vmem>>, vector<1x2x396xf32>,
    %203 = vector.extract_strided_slice %196 {offsets = [2, 0], sizes = [2, 396], strides = [1, 1]} : vector<4x396xf32> to vector<2x396xf32>
    %c1_53 = arith.constant 1 : index
    %c0_54 = arith.constant 0 : index
    %c19_55 = arith.constant 19 : index
    %204 = vector.load %arg13[%c1_53, %c0_54, %c19_55] : memref<2x2x434xf32, #tpu.memory_space<vmem>>, vector<1x2x396xf32>
    %205 = vector.shape_cast %204 : vector<1x2x396xf32> to vector<2x396xf32>
    %206 = vector.shape_cast %203 : vector<2x396xf32> to vector<1x2x396xf32>
    tpu.vector_store %arg13[%c1_53, %c0_54, %c19_55], %206 {strides = array<i32>} : memref<2x2x434xf32, #tpu.memory_space<vmem>>, vector<1x2x396xf32>,
    %cst_56 = arith.constant 0.000000e+00 : f32
    %207 = vector.broadcast %cst_56 : f32 to vector<2x396xf32>
    %c0_57 = arith.constant 0 : index
    %c0_58 = arith.constant 0 : index
    %c0_59 = arith.constant 0 : index
    %208 = vector.load %arg13[%c0_57, %c0_58, %c0_59] : memref<2x2x434xf32, #tpu.memory_space<vmem>>, vector<2x2x396xf32>
    %209 = vector.extract_strided_slice %208 {offsets = [0, 0, 0], sizes = [1, 2, 396], strides = [1, 1, 1]} : vector<2x2x396xf32> to vector<1x2x396xf32>
    %210 = vector.shape_cast %209 : vector<1x2x396xf32> to vector<2x396xf32>
    %211 = vector.broadcast %27 : f32 to vector<2x396xf32>
    %212 = arith.mulf %211, %210 : vector<2x396xf32>
    %213 = arith.addf %207, %212 : vector<2x396xf32>
    %214 = vector.extract_strided_slice %208 {offsets = [1, 0, 0], sizes = [1, 2, 396], strides = [1, 1, 1]} : vector<2x2x396xf32> to vector<1x2x396xf32>
    %215 = vector.shape_cast %214 : vector<1x2x396xf32> to vector<2x396xf32>
    %216 = vector.broadcast %36 : f32 to vector<2x396xf32>
    %217 = arith.mulf %216, %215 : vector<2x396xf32>
    %218 = arith.addf %213, %217 : vector<2x396xf32>
    %c0_60 = arith.constant 0 : index
    %c0_61 = arith.constant 0 : index
    %c1_62 = arith.constant 1 : index
    %219 = vector.load %arg13[%c0_60, %c0_61, %c1_62] : memref<2x2x434xf32, #tpu.memory_space<vmem>>, vector<2x2x396xf32>
    %220 = vector.extract_strided_slice %219 {offsets = [0, 0, 0], sizes = [1, 2, 396], strides = [1, 1, 1]} : vector<2x2x396xf32> to vector<1x2x396xf32>
    %221 = vector.shape_cast %220 : vector<1x2x396xf32> to vector<2x396xf32>
    %222 = vector.broadcast %28 : f32 to vector<2x396xf32>
    %223 = arith.mulf %222, %221 : vector<2x396xf32>
    %224 = arith.addf %218, %223 : vector<2x396xf32>
    %225 = vector.extract_strided_slice %219 {offsets = [1, 0, 0], sizes = [1, 2, 396], strides = [1, 1, 1]} : vector<2x2x396xf32> to vector<1x2x396xf32>
    %226 = vector.shape_cast %225 : vector<1x2x396xf32> to vector<2x396xf32>
    %227 = vector.broadcast %37 : f32 to vector<2x396xf32>
    %228 = arith.mulf %227, %226 : vector<2x396xf32>
    %229 = arith.addf %224, %228 : vector<2x396xf32>
    %c0_63 = arith.constant 0 : index
    %c0_64 = arith.constant 0 : index
    %c2_65 = arith.constant 2 : index
    %230 = vector.load %arg13[%c0_63, %c0_64, %c2_65] : memref<2x2x434xf32, #tpu.memory_space<vmem>>, vector<2x2x396xf32>
    %231 = vector.extract_strided_slice %230 {offsets = [0, 0, 0], sizes = [1, 2, 396], strides = [1, 1, 1]} : vector<2x2x396xf32> to vector<1x2x396xf32>
    %232 = vector.shape_cast %231 : vector<1x2x396xf32> to vector<2x396xf32>
    %233 = vector.broadcast %29 : f32 to vector<2x396xf32>
    %234 = arith.mulf %233, %232 : vector<2x396xf32>
    %235 = arith.addf %229, %234 : vector<2x396xf32>
    %236 = vector.extract_strided_slice %230 {offsets = [1, 0, 0], sizes = [1, 2, 396], strides = [1, 1, 1]} : vector<2x2x396xf32> to vector<1x2x396xf32>
    %237 = vector.shape_cast %236 : vector<1x2x396xf32> to vector<2x396xf32>
    %238 = vector.broadcast %38 : f32 to vector<2x396xf32>
    %239 = arith.mulf %238, %237 : vector<2x396xf32>
    %240 = arith.addf %235, %239 : vector<2x396xf32>
    %c0_66 = arith.constant 0 : index
    %c0_67 = arith.constant 0 : index
    %c18_68 = arith.constant 18 : index
    %241 = vector.load %arg13[%c0_66, %c0_67, %c18_68] : memref<2x2x434xf32, #tpu.memory_space<vmem>>, vector<2x2x396xf32>
    %242 = vector.extract_strided_slice %241 {offsets = [0, 0, 0], sizes = [1, 2, 396], strides = [1, 1, 1]} : vector<2x2x396xf32> to vector<1x2x396xf32>
    %243 = vector.shape_cast %242 : vector<1x2x396xf32> to vector<2x396xf32>
    %244 = vector.broadcast %30 : f32 to vector<2x396xf32>
    %245 = arith.mulf %244, %243 : vector<2x396xf32>
    %246 = arith.addf %240, %245 : vector<2x396xf32>
    %247 = vector.extract_strided_slice %241 {offsets = [1, 0, 0], sizes = [1, 2, 396], strides = [1, 1, 1]} : vector<2x2x396xf32> to vector<1x2x396xf32>
    %248 = vector.shape_cast %247 : vector<1x2x396xf32> to vector<2x396xf32>
    %249 = vector.broadcast %39 : f32 to vector<2x396xf32>
    %250 = arith.mulf %249, %248 : vector<2x396xf32>
    %251 = arith.addf %246, %250 : vector<2x396xf32>
    %c0_69 = arith.constant 0 : index
    %c0_70 = arith.constant 0 : index
    %c19_71 = arith.constant 19 : index
    %252 = vector.load %arg13[%c0_69, %c0_70, %c19_71] : memref<2x2x434xf32, #tpu.memory_space<vmem>>, vector<2x2x396xf32>
    %253 = vector.extract_strided_slice %252 {offsets = [0, 0, 0], sizes = [1, 2, 396], strides = [1, 1, 1]} : vector<2x2x396xf32> to vector<1x2x396xf32>
    %254 = vector.shape_cast %253 : vector<1x2x396xf32> to vector<2x396xf32>
    %255 = vector.broadcast %31 : f32 to vector<2x396xf32>
    %256 = arith.mulf %255, %254 : vector<2x396xf32>
    %257 = arith.addf %251, %256 : vector<2x396xf32>
    %258 = vector.extract_strided_slice %252 {offsets = [1, 0, 0], sizes = [1, 2, 396], strides = [1, 1, 1]} : vector<2x2x396xf32> to vector<1x2x396xf32>
    %259 = vector.shape_cast %258 : vector<1x2x396xf32> to vector<2x396xf32>
    %260 = vector.broadcast %40 : f32 to vector<2x396xf32>
    %261 = arith.mulf %260, %259 : vector<2x396xf32>
    %262 = arith.addf %257, %261 : vector<2x396xf32>
    %c0_72 = arith.constant 0 : index
    %c0_73 = arith.constant 0 : index
    %c20_74 = arith.constant 20 : index
    %263 = vector.load %arg13[%c0_72, %c0_73, %c20_74] : memref<2x2x434xf32, #tpu.memory_space<vmem>>, vector<2x2x396xf32>
    %264 = vector.extract_strided_slice %263 {offsets = [0, 0, 0], sizes = [1, 2, 396], strides = [1, 1, 1]} : vector<2x2x396xf32> to vector<1x2x396xf32>
    %265 = vector.shape_cast %264 : vector<1x2x396xf32> to vector<2x396xf32>
    %266 = vector.broadcast %32 : f32 to vector<2x396xf32>
    %267 = arith.mulf %266, %265 : vector<2x396xf32>
    %268 = arith.addf %262, %267 : vector<2x396xf32>
    %269 = vector.extract_strided_slice %263 {offsets = [1, 0, 0], sizes = [1, 2, 396], strides = [1, 1, 1]} : vector<2x2x396xf32> to vector<1x2x396xf32>
    %270 = vector.shape_cast %269 : vector<1x2x396xf32> to vector<2x396xf32>
    %271 = vector.broadcast %41 : f32 to vector<2x396xf32>
    %272 = arith.mulf %271, %270 : vector<2x396xf32>
    %273 = arith.addf %268, %272 : vector<2x396xf32>
    %c0_75 = arith.constant 0 : index
    %c0_76 = arith.constant 0 : index
    %c36_77 = arith.constant 36 : index
    %274 = vector.load %arg13[%c0_75, %c0_76, %c36_77] : memref<2x2x434xf32, #tpu.memory_space<vmem>>, vector<2x2x396xf32>
    %275 = vector.extract_strided_slice %274 {offsets = [0, 0, 0], sizes = [1, 2, 396], strides = [1, 1, 1]} : vector<2x2x396xf32> to vector<1x2x396xf32>
    %276 = vector.shape_cast %275 : vector<1x2x396xf32> to vector<2x396xf32>
    %277 = vector.broadcast %33 : f32 to vector<2x396xf32>
    %278 = arith.mulf %277, %276 : vector<2x396xf32>
    %279 = arith.addf %273, %278 : vector<2x396xf32>
    %280 = vector.extract_strided_slice %274 {offsets = [1, 0, 0], sizes = [1, 2, 396], strides = [1, 1, 1]} : vector<2x2x396xf32> to vector<1x2x396xf32>
    %281 = vector.shape_cast %280 : vector<1x2x396xf32> to vector<2x396xf32>
    %282 = vector.broadcast %42 : f32 to vector<2x396xf32>
    %283 = arith.mulf %282, %281 : vector<2x396xf32>
    %284 = arith.addf %279, %283 : vector<2x396xf32>
    %c0_78 = arith.constant 0 : index
    %c0_79 = arith.constant 0 : index
    %c37_80 = arith.constant 37 : index
    %285 = vector.load %arg13[%c0_78, %c0_79, %c37_80] : memref<2x2x434xf32, #tpu.memory_space<vmem>>, vector<2x2x396xf32>
    %286 = vector.extract_strided_slice %285 {offsets = [0, 0, 0], sizes = [1, 2, 396], strides = [1, 1, 1]} : vector<2x2x396xf32> to vector<1x2x396xf32>
    %287 = vector.shape_cast %286 : vector<1x2x396xf32> to vector<2x396xf32>
    %288 = vector.broadcast %34 : f32 to vector<2x396xf32>
    %289 = arith.mulf %288, %287 : vector<2x396xf32>
    %290 = arith.addf %284, %289 : vector<2x396xf32>
    %291 = vector.extract_strided_slice %285 {offsets = [1, 0, 0], sizes = [1, 2, 396], strides = [1, 1, 1]} : vector<2x2x396xf32> to vector<1x2x396xf32>
    %292 = vector.shape_cast %291 : vector<1x2x396xf32> to vector<2x396xf32>
    %293 = vector.broadcast %43 : f32 to vector<2x396xf32>
    %294 = arith.mulf %293, %292 : vector<2x396xf32>
    %295 = arith.addf %290, %294 : vector<2x396xf32>
    %c0_81 = arith.constant 0 : index
    %c0_82 = arith.constant 0 : index
    %c38_83 = arith.constant 38 : index
    %296 = vector.load %arg13[%c0_81, %c0_82, %c38_83] : memref<2x2x434xf32, #tpu.memory_space<vmem>>, vector<2x2x396xf32>
    %297 = vector.extract_strided_slice %296 {offsets = [0, 0, 0], sizes = [1, 2, 396], strides = [1, 1, 1]} : vector<2x2x396xf32> to vector<1x2x396xf32>
    %298 = vector.shape_cast %297 : vector<1x2x396xf32> to vector<2x396xf32>
    %299 = vector.broadcast %35 : f32 to vector<2x396xf32>
    %300 = arith.mulf %299, %298 : vector<2x396xf32>
    %301 = arith.addf %295, %300 : vector<2x396xf32>
    %302 = vector.extract_strided_slice %296 {offsets = [1, 0, 0], sizes = [1, 2, 396], strides = [1, 1, 1]} : vector<2x2x396xf32> to vector<1x2x396xf32>
    %303 = vector.shape_cast %302 : vector<1x2x396xf32> to vector<2x396xf32>
    %304 = vector.broadcast %44 : f32 to vector<2x396xf32>
    %305 = arith.mulf %304, %303 : vector<2x396xf32>
    %306 = arith.addf %301, %305 : vector<2x396xf32>
    %307 = vector.broadcast %46 : f32 to vector<2x396xf32>
    %308 = arith.addf %306, %307 : vector<2x396xf32>
    %cst_84 = arith.constant 0.000000e+00 : f32
    %309 = vector.broadcast %cst_84 : f32 to vector<160x16xf32>
    %c0_85 = arith.constant 0 : index
    %c0_86 = arith.constant 0 : index
    %310 = vector.load %arg14[%c0_85, %c0_86] : memref<160x16xf32, #tpu.memory_space<vmem>>, vector<160x16xf32>
    tpu.vector_store %arg14[%c0_85, %c0_86], %309 {strides = array<i32>} : memref<160x16xf32, #tpu.memory_space<vmem>>, vector<160x16xf32>,
    %311 = vector.extract_strided_slice %308 {offsets = [0, 19], sizes = [2, 16], strides = [1, 1]} : vector<2x396xf32> to vector<2x16xf32>
    %c0_87 = arith.constant 0 : index
    %c0_88 = arith.constant 0 : index
    %312 = vector.load %arg14[%c0_87, %c0_88] : memref<160x16xf32, #tpu.memory_space<vmem>>, vector<2x16xf32>
    tpu.vector_store %arg14[%c0_87, %c0_88], %311 {strides = array<i32>} : memref<160x16xf32, #tpu.memory_space<vmem>>, vector<2x16xf32>,
    %313 = vector.extract_strided_slice %308 {offsets = [0, 37], sizes = [2, 16], strides = [1, 1]} : vector<2x396xf32> to vector<2x16xf32>
    %c8_89 = arith.constant 8 : index
    %c0_90 = arith.constant 0 : index
    %314 = vector.load %arg14[%c8_89, %c0_90] : memref<160x16xf32, #tpu.memory_space<vmem>>, vector<2x16xf32>
    tpu.vector_store %arg14[%c8_89, %c0_90], %313 {strides = array<i32>} : memref<160x16xf32, #tpu.memory_space<vmem>>, vector<2x16xf32>,
    %315 = vector.extract_strided_slice %308 {offsets = [0, 55], sizes = [2, 16], strides = [1, 1]} : vector<2x396xf32> to vector<2x16xf32>
    %c16_91 = arith.constant 16 : index
    %c0_92 = arith.constant 0 : index
    %316 = vector.load %arg14[%c16_91, %c0_92] : memref<160x16xf32, #tpu.memory_space<vmem>>, vector<2x16xf32>
    tpu.vector_store %arg14[%c16_91, %c0_92], %315 {strides = array<i32>} : memref<160x16xf32, #tpu.memory_space<vmem>>, vector<2x16xf32>,
    %317 = vector.extract_strided_slice %308 {offsets = [0, 73], sizes = [2, 16], strides = [1, 1]} : vector<2x396xf32> to vector<2x16xf32>
    %c24_93 = arith.constant 24 : index
    %c0_94 = arith.constant 0 : index
    %318 = vector.load %arg14[%c24_93, %c0_94] : memref<160x16xf32, #tpu.memory_space<vmem>>, vector<2x16xf32>
    tpu.vector_store %arg14[%c24_93, %c0_94], %317 {strides = array<i32>} : memref<160x16xf32, #tpu.memory_space<vmem>>, vector<2x16xf32>,
    %319 = vector.extract_strided_slice %308 {offsets = [0, 91], sizes = [2, 16], strides = [1, 1]} : vector<2x396xf32> to vector<2x16xf32>
    %c32 = arith.constant 32 : index
    %c0_95 = arith.constant 0 : index
    %320 = vector.load %arg14[%c32, %c0_95] : memref<160x16xf32, #tpu.memory_space<vmem>>, vector<2x16xf32>
    tpu.vector_store %arg14[%c32, %c0_95], %319 {strides = array<i32>} : memref<160x16xf32, #tpu.memory_space<vmem>>, vector<2x16xf32>,
    %321 = vector.extract_strided_slice %308 {offsets = [0, 109], sizes = [2, 16], strides = [1, 1]} : vector<2x396xf32> to vector<2x16xf32>
    %c40 = arith.constant 40 : index
    %c0_96 = arith.constant 0 : index
    %322 = vector.load %arg14[%c40, %c0_96] : memref<160x16xf32, #tpu.memory_space<vmem>>, vector<2x16xf32>
    tpu.vector_store %arg14[%c40, %c0_96], %321 {strides = array<i32>} : memref<160x16xf32, #tpu.memory_space<vmem>>, vector<2x16xf32>,
    %323 = vector.extract_strided_slice %308 {offsets = [0, 127], sizes = [2, 16], strides = [1, 1]} : vector<2x396xf32> to vector<2x16xf32>
    %c48 = arith.constant 48 : index
    %c0_97 = arith.constant 0 : index
    %324 = vector.load %arg14[%c48, %c0_97] : memref<160x16xf32, #tpu.memory_space<vmem>>, vector<2x16xf32>
    tpu.vector_store %arg14[%c48, %c0_97], %323 {strides = array<i32>} : memref<160x16xf32, #tpu.memory_space<vmem>>, vector<2x16xf32>,
    %325 = vector.extract_strided_slice %308 {offsets = [0, 145], sizes = [2, 16], strides = [1, 1]} : vector<2x396xf32> to vector<2x16xf32>
    %c56 = arith.constant 56 : index
    %c0_98 = arith.constant 0 : index
    %326 = vector.load %arg14[%c56, %c0_98] : memref<160x16xf32, #tpu.memory_space<vmem>>, vector<2x16xf32>
    tpu.vector_store %arg14[%c56, %c0_98], %325 {strides = array<i32>} : memref<160x16xf32, #tpu.memory_space<vmem>>, vector<2x16xf32>,
    %327 = vector.extract_strided_slice %308 {offsets = [0, 163], sizes = [2, 16], strides = [1, 1]} : vector<2x396xf32> to vector<2x16xf32>
    %c64 = arith.constant 64 : index
    %c0_99 = arith.constant 0 : index
    %328 = vector.load %arg14[%c64, %c0_99] : memref<160x16xf32, #tpu.memory_space<vmem>>, vector<2x16xf32>
    tpu.vector_store %arg14[%c64, %c0_99], %327 {strides = array<i32>} : memref<160x16xf32, #tpu.memory_space<vmem>>, vector<2x16xf32>,
    %329 = vector.extract_strided_slice %308 {offsets = [0, 181], sizes = [2, 16], strides = [1, 1]} : vector<2x396xf32> to vector<2x16xf32>
    %c72 = arith.constant 72 : index
    %c0_100 = arith.constant 0 : index
    %330 = vector.load %arg14[%c72, %c0_100] : memref<160x16xf32, #tpu.memory_space<vmem>>, vector<2x16xf32>
    tpu.vector_store %arg14[%c72, %c0_100], %329 {strides = array<i32>} : memref<160x16xf32, #tpu.memory_space<vmem>>, vector<2x16xf32>,
    %331 = vector.extract_strided_slice %308 {offsets = [0, 199], sizes = [2, 16], strides = [1, 1]} : vector<2x396xf32> to vector<2x16xf32>
    %c80 = arith.constant 80 : index
    %c0_101 = arith.constant 0 : index
    %332 = vector.load %arg14[%c80, %c0_101] : memref<160x16xf32, #tpu.memory_space<vmem>>, vector<2x16xf32>
    tpu.vector_store %arg14[%c80, %c0_101], %331 {strides = array<i32>} : memref<160x16xf32, #tpu.memory_space<vmem>>, vector<2x16xf32>,
    %333 = vector.extract_strided_slice %308 {offsets = [0, 217], sizes = [2, 16], strides = [1, 1]} : vector<2x396xf32> to vector<2x16xf32>
    %c88 = arith.constant 88 : index
    %c0_102 = arith.constant 0 : index
    %334 = vector.load %arg14[%c88, %c0_102] : memref<160x16xf32, #tpu.memory_space<vmem>>, vector<2x16xf32>
    tpu.vector_store %arg14[%c88, %c0_102], %333 {strides = array<i32>} : memref<160x16xf32, #tpu.memory_space<vmem>>, vector<2x16xf32>,
    %335 = vector.extract_strided_slice %308 {offsets = [0, 235], sizes = [2, 16], strides = [1, 1]} : vector<2x396xf32> to vector<2x16xf32>
    %c96 = arith.constant 96 : index
    %c0_103 = arith.constant 0 : index
    %336 = vector.load %arg14[%c96, %c0_103] : memref<160x16xf32, #tpu.memory_space<vmem>>, vector<2x16xf32>
    tpu.vector_store %arg14[%c96, %c0_103], %335 {strides = array<i32>} : memref<160x16xf32, #tpu.memory_space<vmem>>, vector<2x16xf32>,
    %337 = vector.extract_strided_slice %308 {offsets = [0, 253], sizes = [2, 16], strides = [1, 1]} : vector<2x396xf32> to vector<2x16xf32>
    %c104 = arith.constant 104 : index
    %c0_104 = arith.constant 0 : index
    %338 = vector.load %arg14[%c104, %c0_104] : memref<160x16xf32, #tpu.memory_space<vmem>>, vector<2x16xf32>
    tpu.vector_store %arg14[%c104, %c0_104], %337 {strides = array<i32>} : memref<160x16xf32, #tpu.memory_space<vmem>>, vector<2x16xf32>,
    %339 = vector.extract_strided_slice %308 {offsets = [0, 271], sizes = [2, 16], strides = [1, 1]} : vector<2x396xf32> to vector<2x16xf32>
    %c112 = arith.constant 112 : index
    %c0_105 = arith.constant 0 : index
    %340 = vector.load %arg14[%c112, %c0_105] : memref<160x16xf32, #tpu.memory_space<vmem>>, vector<2x16xf32>
    tpu.vector_store %arg14[%c112, %c0_105], %339 {strides = array<i32>} : memref<160x16xf32, #tpu.memory_space<vmem>>, vector<2x16xf32>,
    %341 = vector.extract_strided_slice %308 {offsets = [0, 289], sizes = [2, 16], strides = [1, 1]} : vector<2x396xf32> to vector<2x16xf32>
    %c120 = arith.constant 120 : index
    %c0_106 = arith.constant 0 : index
    %342 = vector.load %arg14[%c120, %c0_106] : memref<160x16xf32, #tpu.memory_space<vmem>>, vector<2x16xf32>
    tpu.vector_store %arg14[%c120, %c0_106], %341 {strides = array<i32>} : memref<160x16xf32, #tpu.memory_space<vmem>>, vector<2x16xf32>,
    %343 = vector.extract_strided_slice %308 {offsets = [0, 307], sizes = [2, 16], strides = [1, 1]} : vector<2x396xf32> to vector<2x16xf32>
    %c128 = arith.constant 128 : index
    %c0_107 = arith.constant 0 : index
    %344 = vector.load %arg14[%c128, %c0_107] : memref<160x16xf32, #tpu.memory_space<vmem>>, vector<2x16xf32>
    tpu.vector_store %arg14[%c128, %c0_107], %343 {strides = array<i32>} : memref<160x16xf32, #tpu.memory_space<vmem>>, vector<2x16xf32>,
    %345 = vector.extract_strided_slice %308 {offsets = [0, 325], sizes = [2, 16], strides = [1, 1]} : vector<2x396xf32> to vector<2x16xf32>
    %c136 = arith.constant 136 : index
    %c0_108 = arith.constant 0 : index
    %346 = vector.load %arg14[%c136, %c0_108] : memref<160x16xf32, #tpu.memory_space<vmem>>, vector<2x16xf32>
    tpu.vector_store %arg14[%c136, %c0_108], %345 {strides = array<i32>} : memref<160x16xf32, #tpu.memory_space<vmem>>, vector<2x16xf32>,
    %347 = vector.extract_strided_slice %308 {offsets = [0, 343], sizes = [2, 16], strides = [1, 1]} : vector<2x396xf32> to vector<2x16xf32>
    %c144 = arith.constant 144 : index
    %c0_109 = arith.constant 0 : index
    %348 = vector.load %arg14[%c144, %c0_109] : memref<160x16xf32, #tpu.memory_space<vmem>>, vector<2x16xf32>
    tpu.vector_store %arg14[%c144, %c0_109], %347 {strides = array<i32>} : memref<160x16xf32, #tpu.memory_space<vmem>>, vector<2x16xf32>,
    %349 = vector.extract_strided_slice %308 {offsets = [0, 361], sizes = [2, 16], strides = [1, 1]} : vector<2x396xf32> to vector<2x16xf32>
    %c152 = arith.constant 152 : index
    %c0_110 = arith.constant 0 : index
    %350 = vector.load %arg14[%c152, %c0_110] : memref<160x16xf32, #tpu.memory_space<vmem>>, vector<2x16xf32>
    tpu.vector_store %arg14[%c152, %c0_110], %349 {strides = array<i32>} : memref<160x16xf32, #tpu.memory_space<vmem>>, vector<2x16xf32>,
    %c0_111 = arith.constant 0 : index
    %c0_112 = arith.constant 0 : index
    %351 = vector.load %arg14[%c0_111, %c0_112] : memref<160x16xf32, #tpu.memory_space<vmem>>, vector<160x16xf32>
    %c0_113 = arith.constant 0 : index
    %c0_114 = arith.constant 0 : index
    %352 = vector.load %arg7[%c0_113, %c0_114] : memref<16x128xf32, #tpu.memory_space<vmem>>, vector<16x128xf32>
    %cst_115 = arith.constant dense<0.000000e+00> : vector<160x128xf32>
    %353 = tpu.matmul %351, %352, %cst_115 {dimension_numbers = #tpu.dot_dimension_numbers<[1], [0], [0], [1], [0, 0, 1, 1], [], []>} : vector<160x16xf32>, vector<16x128xf32>, vector<160x128xf32> -> vector<160x128xf32>
    %c0_116 = arith.constant 0 : index
    %c0_117 = arith.constant 0 : index
    %354 = vector.load %arg9[%c0_116, %c0_117] : memref<1x128xf32, #tpu.memory_space<vmem>>, vector<1x128xf32>
    %355 = vector.broadcast %354 : vector<1x128xf32> to vector<160x128xf32>
    %356 = arith.addf %353, %355 : vector<160x128xf32>
    %c0_118 = arith.constant 0 : index
    %c0_119 = arith.constant 0 : index
    %357 = vector.load %arg15[%c0_118, %c0_119] : memref<160x128xf32, #tpu.memory_space<vmem>>, vector<160x128xf32>
    tpu.vector_store %arg15[%c0_118, %c0_119], %356 {strides = array<i32>} : memref<160x128xf32, #tpu.memory_space<vmem>>, vector<160x128xf32>,
    %c0_120 = arith.constant 0 : index
    %c0_121 = arith.constant 0 : index
    %358 = vector.load %arg8[%c0_120, %c0_121] : memref<32x128xf32, #tpu.memory_space<vmem>>, vector<32x128xf32>
    %c0_122 = arith.constant 0 : index
    %c0_123 = arith.constant 0 : index
    %359 = vector.load %arg10[%c0_122, %c0_123] : memref<20x32xf32, #tpu.memory_space<vmem>>, vector<20x32xf32>
    %cst_124 = arith.constant 0.000000e+00 : f32
    %360 = vector.broadcast %cst_124 : f32 to vector<2x32xf32>
    %cst_125 = arith.constant 0.000000e+00 : f32
    %361 = vector.broadcast %cst_125 : f32 to vector<2x32xf32>
    %cst_126 = arith.constant 0.000000e+00 : f32
    %362 = vector.broadcast %cst_126 : f32 to vector<2x1xf32>
    %c0_127 = arith.constant 0 : index
    %c0_128 = arith.constant 0 : index
    %363 = vector.load %arg15[%c0_127, %c0_128] : memref<160x128xf32, #tpu.memory_space<vmem>>, vector<2x128xf32>
    %cst_129 = arith.constant dense<0.000000e+00> : vector<2x128xf32>
    %364 = tpu.matmul %360, %358, %cst_129 {dimension_numbers = #tpu.dot_dimension_numbers<[1], [0], [0], [1], [0, 0, 1, 1], [], []>} : vector<2x32xf32>, vector<32x128xf32>, vector<2x128xf32> -> vector<2x128xf32>
    %365 = arith.addf %363, %364 : vector<2x128xf32>
    %366 = arith.negf %365 : vector<2x128xf32>
    %367 = math.exp %366 : vector<2x128xf32>
    %cst_130 = arith.constant 1.000000e+00 : f32
    %368 = vector.broadcast %cst_130 : f32 to vector<2x128xf32>
    %369 = arith.addf %368, %367 : vector<2x128xf32>
    %370 = arith.divf %368, %369 : vector<2x128xf32>
    %371 = math.tanh %365 : vector<2x128xf32>
    %372 = vector.extract_strided_slice %370 {offsets = [0, 0], sizes = [2, 32], strides = [1, 1]} : vector<2x128xf32> to vector<2x32xf32>
    %373 = vector.extract_strided_slice %370 {offsets = [0, 32], sizes = [2, 32], strides = [1, 1]} : vector<2x128xf32> to vector<2x32xf32>
    %374 = vector.extract_strided_slice %371 {offsets = [0, 64], sizes = [2, 32], strides = [1, 1]} : vector<2x128xf32> to vector<2x32xf32>
    %375 = vector.extract_strided_slice %370 {offsets = [0, 96], sizes = [2, 32], strides = [1, 1]} : vector<2x128xf32> to vector<2x32xf32>
    %376 = arith.mulf %373, %361 : vector<2x32xf32>
    %377 = arith.mulf %372, %374 : vector<2x32xf32>
    %378 = arith.addf %376, %377 : vector<2x32xf32>
    %379 = math.tanh %378 : vector<2x32xf32>
    %380 = arith.mulf %375, %379 : vector<2x32xf32>
    %381 = vector.extract_strided_slice %359 {offsets = [0, 0], sizes = [1, 32], strides = [1, 1]} : vector<20x32xf32> to vector<1x32xf32>
    %382 = vector.broadcast %381 : vector<1x32xf32> to vector<2x32xf32>
    %383 = arith.mulf %380, %382 : vector<2x32xf32>
    %cst_131 = arith.constant dense<0.000000e+00> : vector<2xf32>
    %384 = vector.multi_reduction <add>, %383, %cst_131 [1] : vector<2x32xf32> to vector<2xf32>
    %385 = vector.shape_cast %384 : vector<2xf32> to vector<2x1xf32>
    %386 = arith.addf %362, %385 : vector<2x1xf32>
    %c8_132 = arith.constant 8 : index
    %c0_133 = arith.constant 0 : index
    %387 = vector.load %arg15[%c8_132, %c0_133] : memref<160x128xf32, #tpu.memory_space<vmem>>, vector<2x128xf32>
    %cst_134 = arith.constant dense<0.000000e+00> : vector<2x128xf32>
    %388 = tpu.matmul %380, %358, %cst_134 {dimension_numbers = #tpu.dot_dimension_numbers<[1], [0], [0], [1], [0, 0, 1, 1], [], []>} : vector<2x32xf32>, vector<32x128xf32>, vector<2x128xf32> -> vector<2x128xf32>
    %389 = arith.addf %387, %388 : vector<2x128xf32>
    %390 = arith.negf %389 : vector<2x128xf32>
    %391 = math.exp %390 : vector<2x128xf32>
    %cst_135 = arith.constant 1.000000e+00 : f32
    %392 = vector.broadcast %cst_135 : f32 to vector<2x128xf32>
    %393 = arith.addf %392, %391 : vector<2x128xf32>
    %394 = arith.divf %392, %393 : vector<2x128xf32>
    %395 = math.tanh %389 : vector<2x128xf32>
    %396 = vector.extract_strided_slice %394 {offsets = [0, 0], sizes = [2, 32], strides = [1, 1]} : vector<2x128xf32> to vector<2x32xf32>
    %397 = vector.extract_strided_slice %394 {offsets = [0, 32], sizes = [2, 32], strides = [1, 1]} : vector<2x128xf32> to vector<2x32xf32>
    %398 = vector.extract_strided_slice %395 {offsets = [0, 64], sizes = [2, 32], strides = [1, 1]} : vector<2x128xf32> to vector<2x32xf32>
    %399 = vector.extract_strided_slice %394 {offsets = [0, 96], sizes = [2, 32], strides = [1, 1]} : vector<2x128xf32> to vector<2x32xf32>
    %400 = arith.mulf %397, %378 : vector<2x32xf32>
    %401 = arith.mulf %396, %398 : vector<2x32xf32>
    %402 = arith.addf %400, %401 : vector<2x32xf32>
    %403 = math.tanh %402 : vector<2x32xf32>
    %404 = arith.mulf %399, %403 : vector<2x32xf32>
    %405 = vector.extract_strided_slice %359 {offsets = [1, 0], sizes = [1, 32], strides = [1, 1]} : vector<20x32xf32> to vector<1x32xf32>
    %406 = vector.broadcast %405 : vector<1x32xf32> to vector<2x32xf32>
    %407 = arith.mulf %404, %406 : vector<2x32xf32>
    %cst_136 = arith.constant dense<0.000000e+00> : vector<2xf32>
    %408 = vector.multi_reduction <add>, %407, %cst_136 [1] : vector<2x32xf32> to vector<2xf32>
    %409 = vector.shape_cast %408 : vector<2xf32> to vector<2x1xf32>
    %410 = arith.addf %386, %409 : vector<2x1xf32>
    %c16_137 = arith.constant 16 : index
    %c0_138 = arith.constant 0 : index
    %411 = vector.load %arg15[%c16_137, %c0_138] : memref<160x128xf32, #tpu.memory_space<vmem>>, vector<2x128xf32>
    %cst_139 = arith.constant dense<0.000000e+00> : vector<2x128xf32>
    %412 = tpu.matmul %404, %358, %cst_139 {dimension_numbers = #tpu.dot_dimension_numbers<[1], [0], [0], [1], [0, 0, 1, 1], [], []>} : vector<2x32xf32>, vector<32x128xf32>, vector<2x128xf32> -> vector<2x128xf32>
    %413 = arith.addf %411, %412 : vector<2x128xf32>
    %414 = arith.negf %413 : vector<2x128xf32>
    %415 = math.exp %414 : vector<2x128xf32>
    %cst_140 = arith.constant 1.000000e+00 : f32
    %416 = vector.broadcast %cst_140 : f32 to vector<2x128xf32>
    %417 = arith.addf %416, %415 : vector<2x128xf32>
    %418 = arith.divf %416, %417 : vector<2x128xf32>
    %419 = math.tanh %413 : vector<2x128xf32>
    %420 = vector.extract_strided_slice %418 {offsets = [0, 0], sizes = [2, 32], strides = [1, 1]} : vector<2x128xf32> to vector<2x32xf32>
    %421 = vector.extract_strided_slice %418 {offsets = [0, 32], sizes = [2, 32], strides = [1, 1]} : vector<2x128xf32> to vector<2x32xf32>
    %422 = vector.extract_strided_slice %419 {offsets = [0, 64], sizes = [2, 32], strides = [1, 1]} : vector<2x128xf32> to vector<2x32xf32>
    %423 = vector.extract_strided_slice %418 {offsets = [0, 96], sizes = [2, 32], strides = [1, 1]} : vector<2x128xf32> to vector<2x32xf32>
    %424 = arith.mulf %421, %402 : vector<2x32xf32>
    %425 = arith.mulf %420, %422 : vector<2x32xf32>
    %426 = arith.addf %424, %425 : vector<2x32xf32>
    %427 = math.tanh %426 : vector<2x32xf32>
    %428 = arith.mulf %423, %427 : vector<2x32xf32>
    %429 = vector.extract_strided_slice %359 {offsets = [2, 0], sizes = [1, 32], strides = [1, 1]} : vector<20x32xf32> to vector<1x32xf32>
    %430 = vector.broadcast %429 : vector<1x32xf32> to vector<2x32xf32>
    %431 = arith.mulf %428, %430 : vector<2x32xf32>
    %cst_141 = arith.constant dense<0.000000e+00> : vector<2xf32>
    %432 = vector.multi_reduction <add>, %431, %cst_141 [1] : vector<2x32xf32> to vector<2xf32>
    %433 = vector.shape_cast %432 : vector<2xf32> to vector<2x1xf32>
    %434 = arith.addf %410, %433 : vector<2x1xf32>
    %c24_142 = arith.constant 24 : index
    %c0_143 = arith.constant 0 : index
    %435 = vector.load %arg15[%c24_142, %c0_143] : memref<160x128xf32, #tpu.memory_space<vmem>>, vector<2x128xf32>
    %cst_144 = arith.constant dense<0.000000e+00> : vector<2x128xf32>
    %436 = tpu.matmul %428, %358, %cst_144 {dimension_numbers = #tpu.dot_dimension_numbers<[1], [0], [0], [1], [0, 0, 1, 1], [], []>} : vector<2x32xf32>, vector<32x128xf32>, vector<2x128xf32> -> vector<2x128xf32>
    %437 = arith.addf %435, %436 : vector<2x128xf32>
    %438 = arith.negf %437 : vector<2x128xf32>
    %439 = math.exp %438 : vector<2x128xf32>
    %cst_145 = arith.constant 1.000000e+00 : f32
    %440 = vector.broadcast %cst_145 : f32 to vector<2x128xf32>
    %441 = arith.addf %440, %439 : vector<2x128xf32>
    %442 = arith.divf %440, %441 : vector<2x128xf32>
    %443 = math.tanh %437 : vector<2x128xf32>
    %444 = vector.extract_strided_slice %442 {offsets = [0, 0], sizes = [2, 32], strides = [1, 1]} : vector<2x128xf32> to vector<2x32xf32>
    %445 = vector.extract_strided_slice %442 {offsets = [0, 32], sizes = [2, 32], strides = [1, 1]} : vector<2x128xf32> to vector<2x32xf32>
    %446 = vector.extract_strided_slice %443 {offsets = [0, 64], sizes = [2, 32], strides = [1, 1]} : vector<2x128xf32> to vector<2x32xf32>
    %447 = vector.extract_strided_slice %442 {offsets = [0, 96], sizes = [2, 32], strides = [1, 1]} : vector<2x128xf32> to vector<2x32xf32>
    %448 = arith.mulf %445, %426 : vector<2x32xf32>
    %449 = arith.mulf %444, %446 : vector<2x32xf32>
    %450 = arith.addf %448, %449 : vector<2x32xf32>
    %451 = math.tanh %450 : vector<2x32xf32>
    %452 = arith.mulf %447, %451 : vector<2x32xf32>
    %453 = vector.extract_strided_slice %359 {offsets = [3, 0], sizes = [1, 32], strides = [1, 1]} : vector<20x32xf32> to vector<1x32xf32>
    %454 = vector.broadcast %453 : vector<1x32xf32> to vector<2x32xf32>
    %455 = arith.mulf %452, %454 : vector<2x32xf32>
    %cst_146 = arith.constant dense<0.000000e+00> : vector<2xf32>
    %456 = vector.multi_reduction <add>, %455, %cst_146 [1] : vector<2x32xf32> to vector<2xf32>
    %457 = vector.shape_cast %456 : vector<2xf32> to vector<2x1xf32>
    %458 = arith.addf %434, %457 : vector<2x1xf32>
    %c32_147 = arith.constant 32 : index
    %c0_148 = arith.constant 0 : index
    %459 = vector.load %arg15[%c32_147, %c0_148] : memref<160x128xf32, #tpu.memory_space<vmem>>, vector<2x128xf32>
    %cst_149 = arith.constant dense<0.000000e+00> : vector<2x128xf32>
    %460 = tpu.matmul %452, %358, %cst_149 {dimension_numbers = #tpu.dot_dimension_numbers<[1], [0], [0], [1], [0, 0, 1, 1], [], []>} : vector<2x32xf32>, vector<32x128xf32>, vector<2x128xf32> -> vector<2x128xf32>
    %461 = arith.addf %459, %460 : vector<2x128xf32>
    %462 = arith.negf %461 : vector<2x128xf32>
    %463 = math.exp %462 : vector<2x128xf32>
    %cst_150 = arith.constant 1.000000e+00 : f32
    %464 = vector.broadcast %cst_150 : f32 to vector<2x128xf32>
    %465 = arith.addf %464, %463 : vector<2x128xf32>
    %466 = arith.divf %464, %465 : vector<2x128xf32>
    %467 = math.tanh %461 : vector<2x128xf32>
    %468 = vector.extract_strided_slice %466 {offsets = [0, 0], sizes = [2, 32], strides = [1, 1]} : vector<2x128xf32> to vector<2x32xf32>
    %469 = vector.extract_strided_slice %466 {offsets = [0, 32], sizes = [2, 32], strides = [1, 1]} : vector<2x128xf32> to vector<2x32xf32>
    %470 = vector.extract_strided_slice %467 {offsets = [0, 64], sizes = [2, 32], strides = [1, 1]} : vector<2x128xf32> to vector<2x32xf32>
    %471 = vector.extract_strided_slice %466 {offsets = [0, 96], sizes = [2, 32], strides = [1, 1]} : vector<2x128xf32> to vector<2x32xf32>
    %472 = arith.mulf %469, %450 : vector<2x32xf32>
    %473 = arith.mulf %468, %470 : vector<2x32xf32>
    %474 = arith.addf %472, %473 : vector<2x32xf32>
    %475 = math.tanh %474 : vector<2x32xf32>
    %476 = arith.mulf %471, %475 : vector<2x32xf32>
    %477 = vector.extract_strided_slice %359 {offsets = [4, 0], sizes = [1, 32], strides = [1, 1]} : vector<20x32xf32> to vector<1x32xf32>
    %478 = vector.broadcast %477 : vector<1x32xf32> to vector<2x32xf32>
    %479 = arith.mulf %476, %478 : vector<2x32xf32>
    %cst_151 = arith.constant dense<0.000000e+00> : vector<2xf32>
    %480 = vector.multi_reduction <add>, %479, %cst_151 [1] : vector<2x32xf32> to vector<2xf32>
    %481 = vector.shape_cast %480 : vector<2xf32> to vector<2x1xf32>
    %482 = arith.addf %458, %481 : vector<2x1xf32>
    %c40_152 = arith.constant 40 : index
    %c0_153 = arith.constant 0 : index
    %483 = vector.load %arg15[%c40_152, %c0_153] : memref<160x128xf32, #tpu.memory_space<vmem>>, vector<2x128xf32>
    %cst_154 = arith.constant dense<0.000000e+00> : vector<2x128xf32>
    %484 = tpu.matmul %476, %358, %cst_154 {dimension_numbers = #tpu.dot_dimension_numbers<[1], [0], [0], [1], [0, 0, 1, 1], [], []>} : vector<2x32xf32>, vector<32x128xf32>, vector<2x128xf32> -> vector<2x128xf32>
    %485 = arith.addf %483, %484 : vector<2x128xf32>
    %486 = arith.negf %485 : vector<2x128xf32>
    %487 = math.exp %486 : vector<2x128xf32>
    %cst_155 = arith.constant 1.000000e+00 : f32
    %488 = vector.broadcast %cst_155 : f32 to vector<2x128xf32>
    %489 = arith.addf %488, %487 : vector<2x128xf32>
    %490 = arith.divf %488, %489 : vector<2x128xf32>
    %491 = math.tanh %485 : vector<2x128xf32>
    %492 = vector.extract_strided_slice %490 {offsets = [0, 0], sizes = [2, 32], strides = [1, 1]} : vector<2x128xf32> to vector<2x32xf32>
    %493 = vector.extract_strided_slice %490 {offsets = [0, 32], sizes = [2, 32], strides = [1, 1]} : vector<2x128xf32> to vector<2x32xf32>
    %494 = vector.extract_strided_slice %491 {offsets = [0, 64], sizes = [2, 32], strides = [1, 1]} : vector<2x128xf32> to vector<2x32xf32>
    %495 = vector.extract_strided_slice %490 {offsets = [0, 96], sizes = [2, 32], strides = [1, 1]} : vector<2x128xf32> to vector<2x32xf32>
    %496 = arith.mulf %493, %474 : vector<2x32xf32>
    %497 = arith.mulf %492, %494 : vector<2x32xf32>
    %498 = arith.addf %496, %497 : vector<2x32xf32>
    %499 = math.tanh %498 : vector<2x32xf32>
    %500 = arith.mulf %495, %499 : vector<2x32xf32>
    %501 = vector.extract_strided_slice %359 {offsets = [5, 0], sizes = [1, 32], strides = [1, 1]} : vector<20x32xf32> to vector<1x32xf32>
    %502 = vector.broadcast %501 : vector<1x32xf32> to vector<2x32xf32>
    %503 = arith.mulf %500, %502 : vector<2x32xf32>
    %cst_156 = arith.constant dense<0.000000e+00> : vector<2xf32>
    %504 = vector.multi_reduction <add>, %503, %cst_156 [1] : vector<2x32xf32> to vector<2xf32>
    %505 = vector.shape_cast %504 : vector<2xf32> to vector<2x1xf32>
    %506 = arith.addf %482, %505 : vector<2x1xf32>
    %c48_157 = arith.constant 48 : index
    %c0_158 = arith.constant 0 : index
    %507 = vector.load %arg15[%c48_157, %c0_158] : memref<160x128xf32, #tpu.memory_space<vmem>>, vector<2x128xf32>
    %cst_159 = arith.constant dense<0.000000e+00> : vector<2x128xf32>
    %508 = tpu.matmul %500, %358, %cst_159 {dimension_numbers = #tpu.dot_dimension_numbers<[1], [0], [0], [1], [0, 0, 1, 1], [], []>} : vector<2x32xf32>, vector<32x128xf32>, vector<2x128xf32> -> vector<2x128xf32>
    %509 = arith.addf %507, %508 : vector<2x128xf32>
    %510 = arith.negf %509 : vector<2x128xf32>
    %511 = math.exp %510 : vector<2x128xf32>
    %cst_160 = arith.constant 1.000000e+00 : f32
    %512 = vector.broadcast %cst_160 : f32 to vector<2x128xf32>
    %513 = arith.addf %512, %511 : vector<2x128xf32>
    %514 = arith.divf %512, %513 : vector<2x128xf32>
    %515 = math.tanh %509 : vector<2x128xf32>
    %516 = vector.extract_strided_slice %514 {offsets = [0, 0], sizes = [2, 32], strides = [1, 1]} : vector<2x128xf32> to vector<2x32xf32>
    %517 = vector.extract_strided_slice %514 {offsets = [0, 32], sizes = [2, 32], strides = [1, 1]} : vector<2x128xf32> to vector<2x32xf32>
    %518 = vector.extract_strided_slice %515 {offsets = [0, 64], sizes = [2, 32], strides = [1, 1]} : vector<2x128xf32> to vector<2x32xf32>
    %519 = vector.extract_strided_slice %514 {offsets = [0, 96], sizes = [2, 32], strides = [1, 1]} : vector<2x128xf32> to vector<2x32xf32>
    %520 = arith.mulf %517, %498 : vector<2x32xf32>
    %521 = arith.mulf %516, %518 : vector<2x32xf32>
    %522 = arith.addf %520, %521 : vector<2x32xf32>
    %523 = math.tanh %522 : vector<2x32xf32>
    %524 = arith.mulf %519, %523 : vector<2x32xf32>
    %525 = vector.extract_strided_slice %359 {offsets = [6, 0], sizes = [1, 32], strides = [1, 1]} : vector<20x32xf32> to vector<1x32xf32>
    %526 = vector.broadcast %525 : vector<1x32xf32> to vector<2x32xf32>
    %527 = arith.mulf %524, %526 : vector<2x32xf32>
    %cst_161 = arith.constant dense<0.000000e+00> : vector<2xf32>
    %528 = vector.multi_reduction <add>, %527, %cst_161 [1] : vector<2x32xf32> to vector<2xf32>
    %529 = vector.shape_cast %528 : vector<2xf32> to vector<2x1xf32>
    %530 = arith.addf %506, %529 : vector<2x1xf32>
    %c56_162 = arith.constant 56 : index
    %c0_163 = arith.constant 0 : index
    %531 = vector.load %arg15[%c56_162, %c0_163] : memref<160x128xf32, #tpu.memory_space<vmem>>, vector<2x128xf32>
    %cst_164 = arith.constant dense<0.000000e+00> : vector<2x128xf32>
    %532 = tpu.matmul %524, %358, %cst_164 {dimension_numbers = #tpu.dot_dimension_numbers<[1], [0], [0], [1], [0, 0, 1, 1], [], []>} : vector<2x32xf32>, vector<32x128xf32>, vector<2x128xf32> -> vector<2x128xf32>
    %533 = arith.addf %531, %532 : vector<2x128xf32>
    %534 = arith.negf %533 : vector<2x128xf32>
    %535 = math.exp %534 : vector<2x128xf32>
    %cst_165 = arith.constant 1.000000e+00 : f32
    %536 = vector.broadcast %cst_165 : f32 to vector<2x128xf32>
    %537 = arith.addf %536, %535 : vector<2x128xf32>
    %538 = arith.divf %536, %537 : vector<2x128xf32>
    %539 = math.tanh %533 : vector<2x128xf32>
    %540 = vector.extract_strided_slice %538 {offsets = [0, 0], sizes = [2, 32], strides = [1, 1]} : vector<2x128xf32> to vector<2x32xf32>
    %541 = vector.extract_strided_slice %538 {offsets = [0, 32], sizes = [2, 32], strides = [1, 1]} : vector<2x128xf32> to vector<2x32xf32>
    %542 = vector.extract_strided_slice %539 {offsets = [0, 64], sizes = [2, 32], strides = [1, 1]} : vector<2x128xf32> to vector<2x32xf32>
    %543 = vector.extract_strided_slice %538 {offsets = [0, 96], sizes = [2, 32], strides = [1, 1]} : vector<2x128xf32> to vector<2x32xf32>
    %544 = arith.mulf %541, %522 : vector<2x32xf32>
    %545 = arith.mulf %540, %542 : vector<2x32xf32>
    %546 = arith.addf %544, %545 : vector<2x32xf32>
    %547 = math.tanh %546 : vector<2x32xf32>
    %548 = arith.mulf %543, %547 : vector<2x32xf32>
    %549 = vector.extract_strided_slice %359 {offsets = [7, 0], sizes = [1, 32], strides = [1, 1]} : vector<20x32xf32> to vector<1x32xf32>
    %550 = vector.broadcast %549 : vector<1x32xf32> to vector<2x32xf32>
    %551 = arith.mulf %548, %550 : vector<2x32xf32>
    %cst_166 = arith.constant dense<0.000000e+00> : vector<2xf32>
    %552 = vector.multi_reduction <add>, %551, %cst_166 [1] : vector<2x32xf32> to vector<2xf32>
    %553 = vector.shape_cast %552 : vector<2xf32> to vector<2x1xf32>
    %554 = arith.addf %530, %553 : vector<2x1xf32>
    %c64_167 = arith.constant 64 : index
    %c0_168 = arith.constant 0 : index
    %555 = vector.load %arg15[%c64_167, %c0_168] : memref<160x128xf32, #tpu.memory_space<vmem>>, vector<2x128xf32>
    %cst_169 = arith.constant dense<0.000000e+00> : vector<2x128xf32>
    %556 = tpu.matmul %548, %358, %cst_169 {dimension_numbers = #tpu.dot_dimension_numbers<[1], [0], [0], [1], [0, 0, 1, 1], [], []>} : vector<2x32xf32>, vector<32x128xf32>, vector<2x128xf32> -> vector<2x128xf32>
    %557 = arith.addf %555, %556 : vector<2x128xf32>
    %558 = arith.negf %557 : vector<2x128xf32>
    %559 = math.exp %558 : vector<2x128xf32>
    %cst_170 = arith.constant 1.000000e+00 : f32
    %560 = vector.broadcast %cst_170 : f32 to vector<2x128xf32>
    %561 = arith.addf %560, %559 : vector<2x128xf32>
    %562 = arith.divf %560, %561 : vector<2x128xf32>
    %563 = math.tanh %557 : vector<2x128xf32>
    %564 = vector.extract_strided_slice %562 {offsets = [0, 0], sizes = [2, 32], strides = [1, 1]} : vector<2x128xf32> to vector<2x32xf32>
    %565 = vector.extract_strided_slice %562 {offsets = [0, 32], sizes = [2, 32], strides = [1, 1]} : vector<2x128xf32> to vector<2x32xf32>
    %566 = vector.extract_strided_slice %563 {offsets = [0, 64], sizes = [2, 32], strides = [1, 1]} : vector<2x128xf32> to vector<2x32xf32>
    %567 = vector.extract_strided_slice %562 {offsets = [0, 96], sizes = [2, 32], strides = [1, 1]} : vector<2x128xf32> to vector<2x32xf32>
    %568 = arith.mulf %565, %546 : vector<2x32xf32>
    %569 = arith.mulf %564, %566 : vector<2x32xf32>
    %570 = arith.addf %568, %569 : vector<2x32xf32>
    %571 = math.tanh %570 : vector<2x32xf32>
    %572 = arith.mulf %567, %571 : vector<2x32xf32>
    %573 = vector.extract_strided_slice %359 {offsets = [8, 0], sizes = [1, 32], strides = [1, 1]} : vector<20x32xf32> to vector<1x32xf32>
    %574 = vector.broadcast %573 : vector<1x32xf32> to vector<2x32xf32>
    %575 = arith.mulf %572, %574 : vector<2x32xf32>
    %cst_171 = arith.constant dense<0.000000e+00> : vector<2xf32>
    %576 = vector.multi_reduction <add>, %575, %cst_171 [1] : vector<2x32xf32> to vector<2xf32>
    %577 = vector.shape_cast %576 : vector<2xf32> to vector<2x1xf32>
    %578 = arith.addf %554, %577 : vector<2x1xf32>
    %c72_172 = arith.constant 72 : index
    %c0_173 = arith.constant 0 : index
    %579 = vector.load %arg15[%c72_172, %c0_173] : memref<160x128xf32, #tpu.memory_space<vmem>>, vector<2x128xf32>
    %cst_174 = arith.constant dense<0.000000e+00> : vector<2x128xf32>
    %580 = tpu.matmul %572, %358, %cst_174 {dimension_numbers = #tpu.dot_dimension_numbers<[1], [0], [0], [1], [0, 0, 1, 1], [], []>} : vector<2x32xf32>, vector<32x128xf32>, vector<2x128xf32> -> vector<2x128xf32>
    %581 = arith.addf %579, %580 : vector<2x128xf32>
    %582 = arith.negf %581 : vector<2x128xf32>
    %583 = math.exp %582 : vector<2x128xf32>
    %cst_175 = arith.constant 1.000000e+00 : f32
    %584 = vector.broadcast %cst_175 : f32 to vector<2x128xf32>
    %585 = arith.addf %584, %583 : vector<2x128xf32>
    %586 = arith.divf %584, %585 : vector<2x128xf32>
    %587 = math.tanh %581 : vector<2x128xf32>
    %588 = vector.extract_strided_slice %586 {offsets = [0, 0], sizes = [2, 32], strides = [1, 1]} : vector<2x128xf32> to vector<2x32xf32>
    %589 = vector.extract_strided_slice %586 {offsets = [0, 32], sizes = [2, 32], strides = [1, 1]} : vector<2x128xf32> to vector<2x32xf32>
    %590 = vector.extract_strided_slice %587 {offsets = [0, 64], sizes = [2, 32], strides = [1, 1]} : vector<2x128xf32> to vector<2x32xf32>
    %591 = vector.extract_strided_slice %586 {offsets = [0, 96], sizes = [2, 32], strides = [1, 1]} : vector<2x128xf32> to vector<2x32xf32>
    %592 = arith.mulf %589, %570 : vector<2x32xf32>
    %593 = arith.mulf %588, %590 : vector<2x32xf32>
    %594 = arith.addf %592, %593 : vector<2x32xf32>
    %595 = math.tanh %594 : vector<2x32xf32>
    %596 = arith.mulf %591, %595 : vector<2x32xf32>
    %597 = vector.extract_strided_slice %359 {offsets = [9, 0], sizes = [1, 32], strides = [1, 1]} : vector<20x32xf32> to vector<1x32xf32>
    %598 = vector.broadcast %597 : vector<1x32xf32> to vector<2x32xf32>
    %599 = arith.mulf %596, %598 : vector<2x32xf32>
    %cst_176 = arith.constant dense<0.000000e+00> : vector<2xf32>
    %600 = vector.multi_reduction <add>, %599, %cst_176 [1] : vector<2x32xf32> to vector<2xf32>
    %601 = vector.shape_cast %600 : vector<2xf32> to vector<2x1xf32>
    %602 = arith.addf %578, %601 : vector<2x1xf32>
    %c80_177 = arith.constant 80 : index
    %c0_178 = arith.constant 0 : index
    %603 = vector.load %arg15[%c80_177, %c0_178] : memref<160x128xf32, #tpu.memory_space<vmem>>, vector<2x128xf32>
    %cst_179 = arith.constant dense<0.000000e+00> : vector<2x128xf32>
    %604 = tpu.matmul %596, %358, %cst_179 {dimension_numbers = #tpu.dot_dimension_numbers<[1], [0], [0], [1], [0, 0, 1, 1], [], []>} : vector<2x32xf32>, vector<32x128xf32>, vector<2x128xf32> -> vector<2x128xf32>
    %605 = arith.addf %603, %604 : vector<2x128xf32>
    %606 = arith.negf %605 : vector<2x128xf32>
    %607 = math.exp %606 : vector<2x128xf32>
    %cst_180 = arith.constant 1.000000e+00 : f32
    %608 = vector.broadcast %cst_180 : f32 to vector<2x128xf32>
    %609 = arith.addf %608, %607 : vector<2x128xf32>
    %610 = arith.divf %608, %609 : vector<2x128xf32>
    %611 = math.tanh %605 : vector<2x128xf32>
    %612 = vector.extract_strided_slice %610 {offsets = [0, 0], sizes = [2, 32], strides = [1, 1]} : vector<2x128xf32> to vector<2x32xf32>
    %613 = vector.extract_strided_slice %610 {offsets = [0, 32], sizes = [2, 32], strides = [1, 1]} : vector<2x128xf32> to vector<2x32xf32>
    %614 = vector.extract_strided_slice %611 {offsets = [0, 64], sizes = [2, 32], strides = [1, 1]} : vector<2x128xf32> to vector<2x32xf32>
    %615 = vector.extract_strided_slice %610 {offsets = [0, 96], sizes = [2, 32], strides = [1, 1]} : vector<2x128xf32> to vector<2x32xf32>
    %616 = arith.mulf %613, %594 : vector<2x32xf32>
    %617 = arith.mulf %612, %614 : vector<2x32xf32>
    %618 = arith.addf %616, %617 : vector<2x32xf32>
    %619 = math.tanh %618 : vector<2x32xf32>
    %620 = arith.mulf %615, %619 : vector<2x32xf32>
    %621 = vector.extract_strided_slice %359 {offsets = [10, 0], sizes = [1, 32], strides = [1, 1]} : vector<20x32xf32> to vector<1x32xf32>
    %622 = vector.broadcast %621 : vector<1x32xf32> to vector<2x32xf32>
    %623 = arith.mulf %620, %622 : vector<2x32xf32>
    %cst_181 = arith.constant dense<0.000000e+00> : vector<2xf32>
    %624 = vector.multi_reduction <add>, %623, %cst_181 [1] : vector<2x32xf32> to vector<2xf32>
    %625 = vector.shape_cast %624 : vector<2xf32> to vector<2x1xf32>
    %626 = arith.addf %602, %625 : vector<2x1xf32>
    %c88_182 = arith.constant 88 : index
    %c0_183 = arith.constant 0 : index
    %627 = vector.load %arg15[%c88_182, %c0_183] : memref<160x128xf32, #tpu.memory_space<vmem>>, vector<2x128xf32>
    %cst_184 = arith.constant dense<0.000000e+00> : vector<2x128xf32>
    %628 = tpu.matmul %620, %358, %cst_184 {dimension_numbers = #tpu.dot_dimension_numbers<[1], [0], [0], [1], [0, 0, 1, 1], [], []>} : vector<2x32xf32>, vector<32x128xf32>, vector<2x128xf32> -> vector<2x128xf32>
    %629 = arith.addf %627, %628 : vector<2x128xf32>
    %630 = arith.negf %629 : vector<2x128xf32>
    %631 = math.exp %630 : vector<2x128xf32>
    %cst_185 = arith.constant 1.000000e+00 : f32
    %632 = vector.broadcast %cst_185 : f32 to vector<2x128xf32>
    %633 = arith.addf %632, %631 : vector<2x128xf32>
    %634 = arith.divf %632, %633 : vector<2x128xf32>
    %635 = math.tanh %629 : vector<2x128xf32>
    %636 = vector.extract_strided_slice %634 {offsets = [0, 0], sizes = [2, 32], strides = [1, 1]} : vector<2x128xf32> to vector<2x32xf32>
    %637 = vector.extract_strided_slice %634 {offsets = [0, 32], sizes = [2, 32], strides = [1, 1]} : vector<2x128xf32> to vector<2x32xf32>
    %638 = vector.extract_strided_slice %635 {offsets = [0, 64], sizes = [2, 32], strides = [1, 1]} : vector<2x128xf32> to vector<2x32xf32>
    %639 = vector.extract_strided_slice %634 {offsets = [0, 96], sizes = [2, 32], strides = [1, 1]} : vector<2x128xf32> to vector<2x32xf32>
    %640 = arith.mulf %637, %618 : vector<2x32xf32>
    %641 = arith.mulf %636, %638 : vector<2x32xf32>
    %642 = arith.addf %640, %641 : vector<2x32xf32>
    %643 = math.tanh %642 : vector<2x32xf32>
    %644 = arith.mulf %639, %643 : vector<2x32xf32>
    %645 = vector.extract_strided_slice %359 {offsets = [11, 0], sizes = [1, 32], strides = [1, 1]} : vector<20x32xf32> to vector<1x32xf32>
    %646 = vector.broadcast %645 : vector<1x32xf32> to vector<2x32xf32>
    %647 = arith.mulf %644, %646 : vector<2x32xf32>
    %cst_186 = arith.constant dense<0.000000e+00> : vector<2xf32>
    %648 = vector.multi_reduction <add>, %647, %cst_186 [1] : vector<2x32xf32> to vector<2xf32>
    %649 = vector.shape_cast %648 : vector<2xf32> to vector<2x1xf32>
    %650 = arith.addf %626, %649 : vector<2x1xf32>
    %c96_187 = arith.constant 96 : index
    %c0_188 = arith.constant 0 : index
    %651 = vector.load %arg15[%c96_187, %c0_188] : memref<160x128xf32, #tpu.memory_space<vmem>>, vector<2x128xf32>
    %cst_189 = arith.constant dense<0.000000e+00> : vector<2x128xf32>
    %652 = tpu.matmul %644, %358, %cst_189 {dimension_numbers = #tpu.dot_dimension_numbers<[1], [0], [0], [1], [0, 0, 1, 1], [], []>} : vector<2x32xf32>, vector<32x128xf32>, vector<2x128xf32> -> vector<2x128xf32>
    %653 = arith.addf %651, %652 : vector<2x128xf32>
    %654 = arith.negf %653 : vector<2x128xf32>
    %655 = math.exp %654 : vector<2x128xf32>
    %cst_190 = arith.constant 1.000000e+00 : f32
    %656 = vector.broadcast %cst_190 : f32 to vector<2x128xf32>
    %657 = arith.addf %656, %655 : vector<2x128xf32>
    %658 = arith.divf %656, %657 : vector<2x128xf32>
    %659 = math.tanh %653 : vector<2x128xf32>
    %660 = vector.extract_strided_slice %658 {offsets = [0, 0], sizes = [2, 32], strides = [1, 1]} : vector<2x128xf32> to vector<2x32xf32>
    %661 = vector.extract_strided_slice %658 {offsets = [0, 32], sizes = [2, 32], strides = [1, 1]} : vector<2x128xf32> to vector<2x32xf32>
    %662 = vector.extract_strided_slice %659 {offsets = [0, 64], sizes = [2, 32], strides = [1, 1]} : vector<2x128xf32> to vector<2x32xf32>
    %663 = vector.extract_strided_slice %658 {offsets = [0, 96], sizes = [2, 32], strides = [1, 1]} : vector<2x128xf32> to vector<2x32xf32>
    %664 = arith.mulf %661, %642 : vector<2x32xf32>
    %665 = arith.mulf %660, %662 : vector<2x32xf32>
    %666 = arith.addf %664, %665 : vector<2x32xf32>
    %667 = math.tanh %666 : vector<2x32xf32>
    %668 = arith.mulf %663, %667 : vector<2x32xf32>
    %669 = vector.extract_strided_slice %359 {offsets = [12, 0], sizes = [1, 32], strides = [1, 1]} : vector<20x32xf32> to vector<1x32xf32>
    %670 = vector.broadcast %669 : vector<1x32xf32> to vector<2x32xf32>
    %671 = arith.mulf %668, %670 : vector<2x32xf32>
    %cst_191 = arith.constant dense<0.000000e+00> : vector<2xf32>
    %672 = vector.multi_reduction <add>, %671, %cst_191 [1] : vector<2x32xf32> to vector<2xf32>
    %673 = vector.shape_cast %672 : vector<2xf32> to vector<2x1xf32>
    %674 = arith.addf %650, %673 : vector<2x1xf32>
    %c104_192 = arith.constant 104 : index
    %c0_193 = arith.constant 0 : index
    %675 = vector.load %arg15[%c104_192, %c0_193] : memref<160x128xf32, #tpu.memory_space<vmem>>, vector<2x128xf32>
    %cst_194 = arith.constant dense<0.000000e+00> : vector<2x128xf32>
    %676 = tpu.matmul %668, %358, %cst_194 {dimension_numbers = #tpu.dot_dimension_numbers<[1], [0], [0], [1], [0, 0, 1, 1], [], []>} : vector<2x32xf32>, vector<32x128xf32>, vector<2x128xf32> -> vector<2x128xf32>
    %677 = arith.addf %675, %676 : vector<2x128xf32>
    %678 = arith.negf %677 : vector<2x128xf32>
    %679 = math.exp %678 : vector<2x128xf32>
    %cst_195 = arith.constant 1.000000e+00 : f32
    %680 = vector.broadcast %cst_195 : f32 to vector<2x128xf32>
    %681 = arith.addf %680, %679 : vector<2x128xf32>
    %682 = arith.divf %680, %681 : vector<2x128xf32>
    %683 = math.tanh %677 : vector<2x128xf32>
    %684 = vector.extract_strided_slice %682 {offsets = [0, 0], sizes = [2, 32], strides = [1, 1]} : vector<2x128xf32> to vector<2x32xf32>
    %685 = vector.extract_strided_slice %682 {offsets = [0, 32], sizes = [2, 32], strides = [1, 1]} : vector<2x128xf32> to vector<2x32xf32>
    %686 = vector.extract_strided_slice %683 {offsets = [0, 64], sizes = [2, 32], strides = [1, 1]} : vector<2x128xf32> to vector<2x32xf32>
    %687 = vector.extract_strided_slice %682 {offsets = [0, 96], sizes = [2, 32], strides = [1, 1]} : vector<2x128xf32> to vector<2x32xf32>
    %688 = arith.mulf %685, %666 : vector<2x32xf32>
    %689 = arith.mulf %684, %686 : vector<2x32xf32>
    %690 = arith.addf %688, %689 : vector<2x32xf32>
    %691 = math.tanh %690 : vector<2x32xf32>
    %692 = arith.mulf %687, %691 : vector<2x32xf32>
    %693 = vector.extract_strided_slice %359 {offsets = [13, 0], sizes = [1, 32], strides = [1, 1]} : vector<20x32xf32> to vector<1x32xf32>
    %694 = vector.broadcast %693 : vector<1x32xf32> to vector<2x32xf32>
    %695 = arith.mulf %692, %694 : vector<2x32xf32>
    %cst_196 = arith.constant dense<0.000000e+00> : vector<2xf32>
    %696 = vector.multi_reduction <add>, %695, %cst_196 [1] : vector<2x32xf32> to vector<2xf32>
    %697 = vector.shape_cast %696 : vector<2xf32> to vector<2x1xf32>
    %698 = arith.addf %674, %697 : vector<2x1xf32>
    %c112_197 = arith.constant 112 : index
    %c0_198 = arith.constant 0 : index
    %699 = vector.load %arg15[%c112_197, %c0_198] : memref<160x128xf32, #tpu.memory_space<vmem>>, vector<2x128xf32>
    %cst_199 = arith.constant dense<0.000000e+00> : vector<2x128xf32>
    %700 = tpu.matmul %692, %358, %cst_199 {dimension_numbers = #tpu.dot_dimension_numbers<[1], [0], [0], [1], [0, 0, 1, 1], [], []>} : vector<2x32xf32>, vector<32x128xf32>, vector<2x128xf32> -> vector<2x128xf32>
    %701 = arith.addf %699, %700 : vector<2x128xf32>
    %702 = arith.negf %701 : vector<2x128xf32>
    %703 = math.exp %702 : vector<2x128xf32>
    %cst_200 = arith.constant 1.000000e+00 : f32
    %704 = vector.broadcast %cst_200 : f32 to vector<2x128xf32>
    %705 = arith.addf %704, %703 : vector<2x128xf32>
    %706 = arith.divf %704, %705 : vector<2x128xf32>
    %707 = math.tanh %701 : vector<2x128xf32>
    %708 = vector.extract_strided_slice %706 {offsets = [0, 0], sizes = [2, 32], strides = [1, 1]} : vector<2x128xf32> to vector<2x32xf32>
    %709 = vector.extract_strided_slice %706 {offsets = [0, 32], sizes = [2, 32], strides = [1, 1]} : vector<2x128xf32> to vector<2x32xf32>
    %710 = vector.extract_strided_slice %707 {offsets = [0, 64], sizes = [2, 32], strides = [1, 1]} : vector<2x128xf32> to vector<2x32xf32>
    %711 = vector.extract_strided_slice %706 {offsets = [0, 96], sizes = [2, 32], strides = [1, 1]} : vector<2x128xf32> to vector<2x32xf32>
    %712 = arith.mulf %709, %690 : vector<2x32xf32>
    %713 = arith.mulf %708, %710 : vector<2x32xf32>
    %714 = arith.addf %712, %713 : vector<2x32xf32>
    %715 = math.tanh %714 : vector<2x32xf32>
    %716 = arith.mulf %711, %715 : vector<2x32xf32>
    %717 = vector.extract_strided_slice %359 {offsets = [14, 0], sizes = [1, 32], strides = [1, 1]} : vector<20x32xf32> to vector<1x32xf32>
    %718 = vector.broadcast %717 : vector<1x32xf32> to vector<2x32xf32>
    %719 = arith.mulf %716, %718 : vector<2x32xf32>
    %cst_201 = arith.constant dense<0.000000e+00> : vector<2xf32>
    %720 = vector.multi_reduction <add>, %719, %cst_201 [1] : vector<2x32xf32> to vector<2xf32>
    %721 = vector.shape_cast %720 : vector<2xf32> to vector<2x1xf32>
    %722 = arith.addf %698, %721 : vector<2x1xf32>
    %c120_202 = arith.constant 120 : index
    %c0_203 = arith.constant 0 : index
    %723 = vector.load %arg15[%c120_202, %c0_203] : memref<160x128xf32, #tpu.memory_space<vmem>>, vector<2x128xf32>
    %cst_204 = arith.constant dense<0.000000e+00> : vector<2x128xf32>
    %724 = tpu.matmul %716, %358, %cst_204 {dimension_numbers = #tpu.dot_dimension_numbers<[1], [0], [0], [1], [0, 0, 1, 1], [], []>} : vector<2x32xf32>, vector<32x128xf32>, vector<2x128xf32> -> vector<2x128xf32>
    %725 = arith.addf %723, %724 : vector<2x128xf32>
    %726 = arith.negf %725 : vector<2x128xf32>
    %727 = math.exp %726 : vector<2x128xf32>
    %cst_205 = arith.constant 1.000000e+00 : f32
    %728 = vector.broadcast %cst_205 : f32 to vector<2x128xf32>
    %729 = arith.addf %728, %727 : vector<2x128xf32>
    %730 = arith.divf %728, %729 : vector<2x128xf32>
    %731 = math.tanh %725 : vector<2x128xf32>
    %732 = vector.extract_strided_slice %730 {offsets = [0, 0], sizes = [2, 32], strides = [1, 1]} : vector<2x128xf32> to vector<2x32xf32>
    %733 = vector.extract_strided_slice %730 {offsets = [0, 32], sizes = [2, 32], strides = [1, 1]} : vector<2x128xf32> to vector<2x32xf32>
    %734 = vector.extract_strided_slice %731 {offsets = [0, 64], sizes = [2, 32], strides = [1, 1]} : vector<2x128xf32> to vector<2x32xf32>
    %735 = vector.extract_strided_slice %730 {offsets = [0, 96], sizes = [2, 32], strides = [1, 1]} : vector<2x128xf32> to vector<2x32xf32>
    %736 = arith.mulf %733, %714 : vector<2x32xf32>
    %737 = arith.mulf %732, %734 : vector<2x32xf32>
    %738 = arith.addf %736, %737 : vector<2x32xf32>
    %739 = math.tanh %738 : vector<2x32xf32>
    %740 = arith.mulf %735, %739 : vector<2x32xf32>
    %741 = vector.extract_strided_slice %359 {offsets = [15, 0], sizes = [1, 32], strides = [1, 1]} : vector<20x32xf32> to vector<1x32xf32>
    %742 = vector.broadcast %741 : vector<1x32xf32> to vector<2x32xf32>
    %743 = arith.mulf %740, %742 : vector<2x32xf32>
    %cst_206 = arith.constant dense<0.000000e+00> : vector<2xf32>
    %744 = vector.multi_reduction <add>, %743, %cst_206 [1] : vector<2x32xf32> to vector<2xf32>
    %745 = vector.shape_cast %744 : vector<2xf32> to vector<2x1xf32>
    %746 = arith.addf %722, %745 : vector<2x1xf32>
    %c128_207 = arith.constant 128 : index
    %c0_208 = arith.constant 0 : index
    %747 = vector.load %arg15[%c128_207, %c0_208] : memref<160x128xf32, #tpu.memory_space<vmem>>, vector<2x128xf32>
    %cst_209 = arith.constant dense<0.000000e+00> : vector<2x128xf32>
    %748 = tpu.matmul %740, %358, %cst_209 {dimension_numbers = #tpu.dot_dimension_numbers<[1], [0], [0], [1], [0, 0, 1, 1], [], []>} : vector<2x32xf32>, vector<32x128xf32>, vector<2x128xf32> -> vector<2x128xf32>
    %749 = arith.addf %747, %748 : vector<2x128xf32>
    %750 = arith.negf %749 : vector<2x128xf32>
    %751 = math.exp %750 : vector<2x128xf32>
    %cst_210 = arith.constant 1.000000e+00 : f32
    %752 = vector.broadcast %cst_210 : f32 to vector<2x128xf32>
    %753 = arith.addf %752, %751 : vector<2x128xf32>
    %754 = arith.divf %752, %753 : vector<2x128xf32>
    %755 = math.tanh %749 : vector<2x128xf32>
    %756 = vector.extract_strided_slice %754 {offsets = [0, 0], sizes = [2, 32], strides = [1, 1]} : vector<2x128xf32> to vector<2x32xf32>
    %757 = vector.extract_strided_slice %754 {offsets = [0, 32], sizes = [2, 32], strides = [1, 1]} : vector<2x128xf32> to vector<2x32xf32>
    %758 = vector.extract_strided_slice %755 {offsets = [0, 64], sizes = [2, 32], strides = [1, 1]} : vector<2x128xf32> to vector<2x32xf32>
    %759 = vector.extract_strided_slice %754 {offsets = [0, 96], sizes = [2, 32], strides = [1, 1]} : vector<2x128xf32> to vector<2x32xf32>
    %760 = arith.mulf %757, %738 : vector<2x32xf32>
    %761 = arith.mulf %756, %758 : vector<2x32xf32>
    %762 = arith.addf %760, %761 : vector<2x32xf32>
    %763 = math.tanh %762 : vector<2x32xf32>
    %764 = arith.mulf %759, %763 : vector<2x32xf32>
    %765 = vector.extract_strided_slice %359 {offsets = [16, 0], sizes = [1, 32], strides = [1, 1]} : vector<20x32xf32> to vector<1x32xf32>
    %766 = vector.broadcast %765 : vector<1x32xf32> to vector<2x32xf32>
    %767 = arith.mulf %764, %766 : vector<2x32xf32>
    %cst_211 = arith.constant dense<0.000000e+00> : vector<2xf32>
    %768 = vector.multi_reduction <add>, %767, %cst_211 [1] : vector<2x32xf32> to vector<2xf32>
    %769 = vector.shape_cast %768 : vector<2xf32> to vector<2x1xf32>
    %770 = arith.addf %746, %769 : vector<2x1xf32>
    %c136_212 = arith.constant 136 : index
    %c0_213 = arith.constant 0 : index
    %771 = vector.load %arg15[%c136_212, %c0_213] : memref<160x128xf32, #tpu.memory_space<vmem>>, vector<2x128xf32>
    %cst_214 = arith.constant dense<0.000000e+00> : vector<2x128xf32>
    %772 = tpu.matmul %764, %358, %cst_214 {dimension_numbers = #tpu.dot_dimension_numbers<[1], [0], [0], [1], [0, 0, 1, 1], [], []>} : vector<2x32xf32>, vector<32x128xf32>, vector<2x128xf32> -> vector<2x128xf32>
    %773 = arith.addf %771, %772 : vector<2x128xf32>
    %774 = arith.negf %773 : vector<2x128xf32>
    %775 = math.exp %774 : vector<2x128xf32>
    %cst_215 = arith.constant 1.000000e+00 : f32
    %776 = vector.broadcast %cst_215 : f32 to vector<2x128xf32>
    %777 = arith.addf %776, %775 : vector<2x128xf32>
    %778 = arith.divf %776, %777 : vector<2x128xf32>
    %779 = math.tanh %773 : vector<2x128xf32>
    %780 = vector.extract_strided_slice %778 {offsets = [0, 0], sizes = [2, 32], strides = [1, 1]} : vector<2x128xf32> to vector<2x32xf32>
    %781 = vector.extract_strided_slice %778 {offsets = [0, 32], sizes = [2, 32], strides = [1, 1]} : vector<2x128xf32> to vector<2x32xf32>
    %782 = vector.extract_strided_slice %779 {offsets = [0, 64], sizes = [2, 32], strides = [1, 1]} : vector<2x128xf32> to vector<2x32xf32>
    %783 = vector.extract_strided_slice %778 {offsets = [0, 96], sizes = [2, 32], strides = [1, 1]} : vector<2x128xf32> to vector<2x32xf32>
    %784 = arith.mulf %781, %762 : vector<2x32xf32>
    %785 = arith.mulf %780, %782 : vector<2x32xf32>
    %786 = arith.addf %784, %785 : vector<2x32xf32>
    %787 = math.tanh %786 : vector<2x32xf32>
    %788 = arith.mulf %783, %787 : vector<2x32xf32>
    %789 = vector.extract_strided_slice %359 {offsets = [17, 0], sizes = [1, 32], strides = [1, 1]} : vector<20x32xf32> to vector<1x32xf32>
    %790 = vector.broadcast %789 : vector<1x32xf32> to vector<2x32xf32>
    %791 = arith.mulf %788, %790 : vector<2x32xf32>
    %cst_216 = arith.constant dense<0.000000e+00> : vector<2xf32>
    %792 = vector.multi_reduction <add>, %791, %cst_216 [1] : vector<2x32xf32> to vector<2xf32>
    %793 = vector.shape_cast %792 : vector<2xf32> to vector<2x1xf32>
    %794 = arith.addf %770, %793 : vector<2x1xf32>
    %c144_217 = arith.constant 144 : index
    %c0_218 = arith.constant 0 : index
    %795 = vector.load %arg15[%c144_217, %c0_218] : memref<160x128xf32, #tpu.memory_space<vmem>>, vector<2x128xf32>
    %cst_219 = arith.constant dense<0.000000e+00> : vector<2x128xf32>
    %796 = tpu.matmul %788, %358, %cst_219 {dimension_numbers = #tpu.dot_dimension_numbers<[1], [0], [0], [1], [0, 0, 1, 1], [], []>} : vector<2x32xf32>, vector<32x128xf32>, vector<2x128xf32> -> vector<2x128xf32>
    %797 = arith.addf %795, %796 : vector<2x128xf32>
    %798 = arith.negf %797 : vector<2x128xf32>
    %799 = math.exp %798 : vector<2x128xf32>
    %cst_220 = arith.constant 1.000000e+00 : f32
    %800 = vector.broadcast %cst_220 : f32 to vector<2x128xf32>
    %801 = arith.addf %800, %799 : vector<2x128xf32>
    %802 = arith.divf %800, %801 : vector<2x128xf32>
    %803 = math.tanh %797 : vector<2x128xf32>
    %804 = vector.extract_strided_slice %802 {offsets = [0, 0], sizes = [2, 32], strides = [1, 1]} : vector<2x128xf32> to vector<2x32xf32>
    %805 = vector.extract_strided_slice %802 {offsets = [0, 32], sizes = [2, 32], strides = [1, 1]} : vector<2x128xf32> to vector<2x32xf32>
    %806 = vector.extract_strided_slice %803 {offsets = [0, 64], sizes = [2, 32], strides = [1, 1]} : vector<2x128xf32> to vector<2x32xf32>
    %807 = vector.extract_strided_slice %802 {offsets = [0, 96], sizes = [2, 32], strides = [1, 1]} : vector<2x128xf32> to vector<2x32xf32>
    %808 = arith.mulf %805, %786 : vector<2x32xf32>
    %809 = arith.mulf %804, %806 : vector<2x32xf32>
    %810 = arith.addf %808, %809 : vector<2x32xf32>
    %811 = math.tanh %810 : vector<2x32xf32>
    %812 = arith.mulf %807, %811 : vector<2x32xf32>
    %813 = vector.extract_strided_slice %359 {offsets = [18, 0], sizes = [1, 32], strides = [1, 1]} : vector<20x32xf32> to vector<1x32xf32>
    %814 = vector.broadcast %813 : vector<1x32xf32> to vector<2x32xf32>
    %815 = arith.mulf %812, %814 : vector<2x32xf32>
    %cst_221 = arith.constant dense<0.000000e+00> : vector<2xf32>
    %816 = vector.multi_reduction <add>, %815, %cst_221 [1] : vector<2x32xf32> to vector<2xf32>
    %817 = vector.shape_cast %816 : vector<2xf32> to vector<2x1xf32>
    %818 = arith.addf %794, %817 : vector<2x1xf32>
    %c152_222 = arith.constant 152 : index
    %c0_223 = arith.constant 0 : index
    %819 = vector.load %arg15[%c152_222, %c0_223] : memref<160x128xf32, #tpu.memory_space<vmem>>, vector<2x128xf32>
    %cst_224 = arith.constant dense<0.000000e+00> : vector<2x128xf32>
    %820 = tpu.matmul %812, %358, %cst_224 {dimension_numbers = #tpu.dot_dimension_numbers<[1], [0], [0], [1], [0, 0, 1, 1], [], []>} : vector<2x32xf32>, vector<32x128xf32>, vector<2x128xf32> -> vector<2x128xf32>
    %821 = arith.addf %819, %820 : vector<2x128xf32>
    %822 = arith.negf %821 : vector<2x128xf32>
    %823 = math.exp %822 : vector<2x128xf32>
    %cst_225 = arith.constant 1.000000e+00 : f32
    %824 = vector.broadcast %cst_225 : f32 to vector<2x128xf32>
    %825 = arith.addf %824, %823 : vector<2x128xf32>
    %826 = arith.divf %824, %825 : vector<2x128xf32>
    %827 = math.tanh %821 : vector<2x128xf32>
    %828 = vector.extract_strided_slice %826 {offsets = [0, 0], sizes = [2, 32], strides = [1, 1]} : vector<2x128xf32> to vector<2x32xf32>
    %829 = vector.extract_strided_slice %826 {offsets = [0, 32], sizes = [2, 32], strides = [1, 1]} : vector<2x128xf32> to vector<2x32xf32>
    %830 = vector.extract_strided_slice %827 {offsets = [0, 64], sizes = [2, 32], strides = [1, 1]} : vector<2x128xf32> to vector<2x32xf32>
    %831 = vector.extract_strided_slice %826 {offsets = [0, 96], sizes = [2, 32], strides = [1, 1]} : vector<2x128xf32> to vector<2x32xf32>
    %832 = arith.mulf %829, %810 : vector<2x32xf32>
    %833 = arith.mulf %828, %830 : vector<2x32xf32>
    %834 = arith.addf %832, %833 : vector<2x32xf32>
    %835 = math.tanh %834 : vector<2x32xf32>
    %836 = arith.mulf %831, %835 : vector<2x32xf32>
    %837 = vector.extract_strided_slice %359 {offsets = [19, 0], sizes = [1, 32], strides = [1, 1]} : vector<20x32xf32> to vector<1x32xf32>
    %838 = vector.broadcast %837 : vector<1x32xf32> to vector<2x32xf32>
    %839 = arith.mulf %836, %838 : vector<2x32xf32>
    %cst_226 = arith.constant dense<0.000000e+00> : vector<2xf32>
    %840 = vector.multi_reduction <add>, %839, %cst_226 [1] : vector<2x32xf32> to vector<2xf32>
    %841 = vector.shape_cast %840 : vector<2xf32> to vector<2x1xf32>
    %842 = arith.addf %818, %841 : vector<2x1xf32>
    %c0_227 = arith.constant 0 : index
    %c0_228 = arith.constant 0 : index
    %843 = vector.load %arg11[%c0_227, %c0_228] : memref<1x1xf32, #tpu.memory_space<vmem>>, vector<1x1xf32>
    %844 = vector.broadcast %843 : vector<1x1xf32> to vector<2x1xf32>
    %845 = arith.addf %842, %844 : vector<2x1xf32>
    %c0_229 = arith.constant 0 : index
    %c0_230 = arith.constant 0 : index
    %846 = vector.load %arg12[%c0_229, %c0_230] : memref<2x1xf32, #tpu.memory_space<vmem>>, vector<2x1xf32>
    tpu.vector_store %arg12[%c0_229, %c0_230], %845 {strides = array<i32>} : memref<2x1xf32, #tpu.memory_space<vmem>>, vector<2x1xf32>,
    return
  }
  func.func @transform_0(%arg0: i32) -> (i32, i32, i32) {
    %c0_i32 = arith.constant 0 : i32
    %c0_i32_0 = arith.constant 0 : i32
    %c0_i32_1 = arith.constant 0 : i32
    %c0_i32_2 = arith.constant 0 : i32
    return %c0_i32, %c0_i32_0, %c0_i32_1 : i32, i32, i32
  }
  func.func @transform_1(%arg0: i32) -> (i32, i32) {
    %c0_i32 = arith.constant 0 : i32
    %c0_i32_0 = arith.constant 0 : i32
    %c0_i32_1 = arith.constant 0 : i32
    return %c0_i32, %c0_i32_0 : i32, i32
  }
  func.func @transform_2(%arg0: i32) -> i32 {
    %c0_i32 = arith.constant 0 : i32
    %c0_i32_0 = arith.constant 0 : i32
    return %c0_i32 : i32
  }
  func.func @transform_3(%arg0: i32) -> i32 {
    %c0_i32 = arith.constant 0 : i32
    %c0_i32_0 = arith.constant 0 : i32
    return %c0_i32 : i32
  }
  func.func @transform_4(%arg0: i32) -> i32 {
    %c0_i32 = arith.constant 0 : i32
    %c0_i32_0 = arith.constant 0 : i32
    return %c0_i32 : i32
  }
  func.func @transform_5(%arg0: i32) -> i32 {
    %c0_i32 = arith.constant 0 : i32
    %c0_i32_0 = arith.constant 0 : i32
    return %c0_i32 : i32
  }
  func.func @transform_6(%arg0: i32) -> (i32, i32) {
    %c0_i32 = arith.constant 0 : i32
    %c0_i32_0 = arith.constant 0 : i32
    %c0_i32_1 = arith.constant 0 : i32
    return %c0_i32, %c0_i32_0 : i32, i32
  }
  func.func @transform_7(%arg0: i32) -> (i32, i32) {
    %c0_i32 = arith.constant 0 : i32
    %c0_i32_0 = arith.constant 0 : i32
    %c0_i32_1 = arith.constant 0 : i32
    return %c0_i32, %c0_i32_0 : i32, i32
  }
  func.func @transform_8(%arg0: i32) -> (i32, i32) {
    %c0_i32 = arith.constant 0 : i32
    %c0_i32_0 = arith.constant 0 : i32
    %c0_i32_1 = arith.constant 0 : i32
    return %c0_i32, %c0_i32_0 : i32, i32
  }
  func.func @transform_9(%arg0: i32) -> (i32, i32) {
    %c0_i32 = arith.constant 0 : i32
    %c0_i32_0 = arith.constant 0 : i32
    %c0_i32_1 = arith.constant 0 : i32
    return %c0_i32, %c0_i32_0 : i32, i32
  }
  func.func @transform_10(%arg0: i32) -> (i32, i32) {
    %c0_i32 = arith.constant 0 : i32
    %c0_i32_0 = arith.constant 0 : i32
    %c0_i32_1 = arith.constant 0 : i32
    return %c0_i32, %c0_i32_0 : i32, i32
  }
  func.func @transform_11(%arg0: i32) -> (i32, i32) {
    %c0_i32 = arith.constant 0 : i32
    %c0_i32_0 = arith.constant 0 : i32
    %c0_i32_1 = arith.constant 0 : i32
    return %c0_i32, %c0_i32_0 : i32, i32
  }
}

</mosaic_0001>

<bundles_post_ra>
// kernel: net_forward.1
= control target key start
LH: loop header
LB: loop body
LE: loop exit
PB: predicated region body
PF: predicated region fallthrough
CT: control target
= control target key end

     0   :  { %s4137_s0 = inlined_call_operand.vmem [shape: f32[3,4,434], index: 0, kind: input, shape index: {}]   ;;  %s4138_s1 = inlined_call_operand.vmem [shape: f32[1,396], index: 1, kind: input, shape index: {}]   ;;  %s4139_s2 = inlined_call_operand.vmem [shape: f32[27], index: 2, kind: input, shape index: {}]   ;;  %s4140_s3 = inlined_call_operand.<no memory space> [shape: f32[1], index: 3, kind: input, shape index: {}]   ;;  %s4141_s4 = inlined_call_operand.vmem [shape: f32[18], index: 4, kind: input, shape index: {}]   ;;  %s4142_s5 = inlined_call_operand.<no memory space> [shape: f32[1], index: 5, kind: input, shape index: {}]   ;;  %s4143_s6 = inlined_call_operand.vmem [shape: f32[16,128], index: 6, kind: input, shape index: {}]   ;;  %s4144_s7 = inlined_call_operand.vmem [shape: f32[32,128], index: 7, kind: input, shape index: {}]   ;;  %s4145_s8 = inlined_call_operand.vmem [shape: f32[1,128], index: 8, kind: input, shape index: {}]   ;;  %s4146_s9 = inlined_call_operand.vmem [shape: f32[20,32], index: 9, kind: input, shape index: {}]   ;;  %s4147_s10 = inlined_call_operand.<no memory space> [shape: f32[1,1], index: 10, kind: input, shape index: {}]   ;;  %s4148_s11 = inlined_call_operand.vmem [shape: f32[2,1], index: 11, kind: output, shape index: {}]  }
   0x1   :  { %v18_v0 = vstv %s4147_s10 }
   0x2   :  { %19 = vst [vmem:[#allocation7] sm:$0x1] %v18_v0 }
   0x3   :  { %20 = vsyncpa [#allocation9], 0  ;;  %s31_s21 = sshll.u32 %s4139_s2, 4  ;;  %s32_s21 = int_to_ptr.vmem [resolvable:$true] %s31_s21 }
   0x4   :  { %21 = vsyncpa [#allocation11], 0  ;;  %s42_s24 = sshll.u32 %s4141_s4, 4  ;;  %s3038_s25 = smov [#allocation8]   ;;  %s43_s24 = int_to_ptr.vmem [resolvable:$true] %s42_s24 }
   0x5   :  { %34 = dma.vmem_to_smem %s32_s21, 16, %s3038_s25, [#allocation9]  }
   0x6   :  { %s3039_s26 = smov [#allocation10]  }
   0x7   :  { %45 = dma.vmem_to_smem %s43_s24, 16, %s3039_s26, [#allocation11]  }
   0x8   :  { %3034 = dma.done.wait [#allocation9], 16  }
   0x9   :  { %3035 = vsyncadd [#allocation9], 4294967280 }
   0xa   :  { %3036 = dma.done.wait [#allocation11], 16  }
   0xb   :  { %3037 = vsyncadd [#allocation11], 4294967280 }
   0xc   :  { %66 = sfence }
   0xd   :  { %s2712_s10 = sld [smem:[#allocation8 + $0xa]]  ;;  %v3142_v1 = vld [vmem:[%s4137_s0 + $0x10] sm:$0xff]  ;;  %v3147_v2 = vld [vmem:[%s4137_s0] sm:$0xff]  ;;  %s3040_s14 = smov 127   ;;  %v3161_v10 = vld [vmem:[%s4137_s0 + $0x18] sm:$0xff]  ;;  %vm147_vm0 = vcmask 1043456  }
   0xe   :  { %s2703_s27 = sld [smem:[#allocation8 + $0x1]]  ;;  %v3152_v4 = vld [vmem:[%s4137_s0 + $0x20] sm:$0xff]  ;;  %v3167_v11 = vld [vmem:[%s4137_s0 + $0x8] sm:$0xff]  ;;  %s3043_s29 = smov 109   ;;  %vm149_vm1 = vcmask 1039360   ;;  %vm204_vm2 = vcmask 1031168  }
   0xf   :  { %s2721_s28 = sld [smem:[#allocation8 + $0x13]]  ;;  %v3173_v12 = vld [vmem:[%s4137_s0 + $0x28] sm:$0xff]  ;;  %s3041_s0 = smov 126   ;;  %vm259_vm3 = vcmask 900096   ;;  %vm314_vm4 = vcmask 891904   ;;  %vm369_vm5 = vcmask 883712  }
  0x10   :  { %s2704_s17 = sld [smem:[#allocation8 + $0x2]]  ;;  %s3044_s13 = smov 108   ;;  %vm424_vm6 = vcmask 752640   ;;  %vm594_vm7 = vcmask 1043458   ;;  %vm593_vm8 = vcmask 1041408   ;;  %vm616_vm10 = vcmask 1041560  }
  0x11   :  { %s2713_s22 = sld [smem:[#allocation8 + $0xb]]  ;;  %s3045_s18 = smov 92   ;;  %vm595_vm9 = vmor %vm594_vm7, %vm593_vm8  ;;  %vm596_vm11 = vcmask 1045508   ;;  %vm479_vm15 = vcmask 744448  }
  0x12   :  { %s2722_s23 = sld [smem:[#allocation8 + $0x14]]  ;;  %vm617_vm12 = vmor %vm594_vm7, %vm616_vm10  ;;  %vm598_vm7 = vcmask 408582  }
  0x13   :  { %v156_v3 = vstv %s2712_s10  ;;  %s2705_s24 = sld [smem:[#allocation8 + $0x3]]  ;;  %s3042_s10 = smov 110   ;;  %vm3456_vm13 = vmor %vm596_vm11, %vm617_vm12  ;;  %vm619_vm12 = vcmask 252934  }
  0x14   :  { %v157_v5 = vmul.f32 %v156_v3, %v3142_v1  ;;  %v136_v6 = vstv %s2703_s27  ;;  %v158_v13 = vmul.f32 %v156_v3, %v3161_v10  ;;  %s2714_s25 = sld [smem:[#allocation8 + $0xc]]  ;;  %vm597_vm14 = vmor %vm596_vm11, %vm595_vm9  ;;  %vm534_vm9 = vcmask 736256  }
  0x15   :  { %v137_v7 = vmul.f32 %v136_v6, %v3147_v2  ;;  %v174_v8 = vstv %s2721_s28  ;;  %v138_v14 = vmul.f32 %v136_v6, %v3167_v11  ;;  %s2723_s26 = sld [smem:[#allocation8 + $0x15]]  ;;  %vm599_vm10 = vmor %vm598_vm7, %vm597_vm14  ;;  %vm613_vm14 = vcmask 154624  }
  0x16   :  { %161 = vrot.lane.b32.xlu1 %v157_v5, %s3040_s14  ;;  %v175_v9 = vmul.f32 %v174_v8, %v3152_v4  ;;  %v176_v15 = vmul.f32 %v174_v8, %v3173_v12  ;;  %v192_v16 = vstv %s2704_s17  ;;  %s2706_s27 = sld [smem:[#allocation8 + $0x4]]  ;;  %vm620_vm7 = vmor %vm619_vm12, %vm3456_vm13 }
  0x17   :  { %141 = vrot.lane.b32.xlu0 %v137_v7, %s3040_s14  ;;  %v194_v17 = vmul.f32 %v192_v16, %v3167_v11  ;;  %v193_v18 = vmul.f32 %v192_v16, %v3147_v2  ;;  %v211_v19 = vstv %s2713_s22  ;;  %s2715_s28 = sld [smem:[#allocation8 + $0xd]]  ;;  %s3046_s22 = smov 91  }
  0x18   :  { %179 = vrot.lane.b32.xlu2 %v175_v9, %s3040_s14  ;;  %v212_v20 = vmul.f32 %v211_v19, %v3142_v1  ;;  %v229_v21 = vstv %s2722_s23  ;;  %v213_v23 = vmul.f32 %v211_v19, %v3161_v10  ;;  %s2724_s2 = sld [smem:[#allocation8 + $0x16]] }
  0x19   :  { %v230_v22 = vmul.f32 %v229_v21, %v3152_v4  ;;  %v231_v24 = vmul.f32 %v229_v21, %v3173_v12  ;;  %v247_v25 = vstv %s2705_s24  ;;  %s2707_s30 = sld [smem:[#allocation8 + $0x5]] }
  0x1a   :  { %v249_v26 = vmul.f32 %v247_v25, %v3167_v11  ;;  %v248_v27 = vmul.f32 %v247_v25, %v3147_v2  ;;  %v266_v28 = vstv %s2714_s25  ;;  %s2716_s4 = sld [smem:[#allocation8 + $0xe]] }
  0x1b   :  { %v267_v29 = vmul.f32 %v266_v28, %v3142_v1  ;;  %v284_v30 = vstv %s2723_s26  ;;  %v268_v32 = vmul.f32 %v266_v28, %v3161_v10  ;;  %s2725_s12 = sld [smem:[#allocation8 + $0x17]]  ;;  %s3047_s26 = smov 90  }
  0x1c   :  { %v285_v31 = vmul.f32 %v284_v30, %v3152_v4  ;;  %v286_v33 = vmul.f32 %v284_v30, %v3173_v12  ;;  %v302_v34 = vstv %s2706_s27  ;;  %s2708_s15 = sld [smem:[#allocation8 + $0x6]] }
  0x1d   :  { %v304_v35 = vmul.f32 %v302_v34, %v3167_v11  ;;  %v303_v36 = vmul.f32 %v302_v34, %v3147_v2  ;;  %v321_v37 = vstv %s2715_s28  ;;  %s2717_s16 = sld [smem:[#allocation8 + $0xf]] }
  0x1e   :  { %163 = vrot.lane.b32.xlu1 %v158_v13, %s3040_s14  ;;  %v322_v38 = vmul.f32 %v321_v37, %v3142_v1  ;;  %v339_v39 = vstv %s2724_s2  ;;  %v323_v41 = vmul.f32 %v321_v37, %v3161_v10  ;;  %s2726_s17 = sld [smem:[#allocation8 + $0x18]] }
  0x1f   :  { %143 = vrot.lane.b32.xlu0 %v138_v14, %s3040_s14  ;;  %v340_v40 = vmul.f32 %v339_v39, %v3152_v4  ;;  %v341_v42 = vmul.f32 %v339_v39, %v3173_v12  ;;  %v357_v43 = vstv %s2707_s30  ;;  %s2709_s19 = sld [smem:[#allocation8 + $0x7]] }
  0x20   :  { %181 = vrot.lane.b32.xlu2 %v176_v15, %s3040_s14  ;;  %v359_v44 = vmul.f32 %v357_v43, %v3167_v11  ;;  %v358_v45 = vmul.f32 %v357_v43, %v3147_v2  ;;  %v376_v46 = vstv %s2716_s4  ;;  %s2718_s20 = sld [smem:[#allocation8 + $0x10]] }
  0x21   :  { %v377_v47 = vmul.f32 %v376_v46, %v3142_v1  ;;  %v394_v48 = vstv %s2725_s12  ;;  %v378_v50 = vmul.f32 %v376_v46, %v3161_v10  ;;  %s2727_s21 = sld [smem:[#allocation8 + $0x19]] }
  0x22   :  { %v395_v49 = vmul.f32 %v394_v48, %v3152_v4  ;;  %v396_v51 = vmul.f32 %v394_v48, %v3173_v12  ;;  %v412_v52 = vstv %s2708_s15  ;;  %s2710_s23 = sld [smem:[#allocation8 + $0x8]] }
  0x23   :  { %v414_v53 = vmul.f32 %v412_v52, %v3167_v11  ;;  %v413_v54 = vmul.f32 %v412_v52, %v3147_v2  ;;  %v431_v55 = vstv %s2717_s16  ;;  %s2719_s24 = sld [smem:[#allocation8 + $0x11]] }
  0x24   :  { %v432_v56 = vmul.f32 %v431_v55, %v3142_v1  ;;  %v449_v57 = vstv %s2726_s17  ;;  %v433_v59 = vmul.f32 %v431_v55, %v3161_v10  ;;  %s2728_s25 = sld [smem:[#allocation8 + $0x1a]] }
  0x25   :  { %v450_v58 = vmul.f32 %v449_v57, %v3152_v4  ;;  %v451_v60 = vmul.f32 %v449_v57, %v3173_v12  ;;  %v467_v61 = vstv %s2709_s19  ;;  %s2711_s27 = sld [smem:[#allocation8 + $0x9]] }
  0x26   :  { %199 = vrot.lane.b32.xlu1 %v194_v17, %s3041_s0  ;;  %v469_v62 = vmul.f32 %v467_v61, %v3167_v11  ;;  %v468_v0 = vmul.f32 %v467_v61, %v3147_v2  ;;  %v486_v3 = vstv %s2718_s20  ;;  %s67_s28 = sld [smem:[#allocation8]] }
  0x27   :  { %197 = vrot.lane.b32.xlu0 %v193_v18, %s3041_s0  ;;  %v487_v5 = vmul.f32 %v486_v3, %v3142_v1  ;;  %v504_v6 = vstv %s2727_s21  ;;  %v488_v9 = vmul.f32 %v486_v3, %v3161_v10  ;;  %s2720_s2 = sld [smem:[#allocation8 + $0x12]] }
  0x28   :  { %216 = vrot.lane.b32.xlu2 %v212_v20, %s3041_s0  ;;  %v505_v7 = vmul.f32 %v504_v6, %v3152_v4  ;;  %v506_v13 = vmul.f32 %v504_v6, %v3173_v12  ;;  %v522_v14 = vstv %s2710_s23  ;;  %s2731_s15 = sld [smem:[#allocation10 + $0x3]] }
  0x29   :  { %v524_v15 = vmul.f32 %v522_v14, %v3167_v11  ;;  %v523_v17 = vmul.f32 %v522_v14, %v3147_v2  ;;  %v541_v18 = vstv %s2719_s24  ;;  %s2730_s16 = sld [smem:[#allocation10 + $0x2]] }
  0x2a   :  { %v542_v19 = vmul.f32 %v541_v18, %v3142_v1  ;;  %v559_v20 = vstv %s2728_s25  ;;  %v543_v25 = vmul.f32 %v541_v18, %v3161_v10  ;;  %s2729_s17 = sld [smem:[#allocation10 + $0x1]] }
  0x2b   :  { %s94_s19 = sld [smem:[#allocation10]] }
  0x2c   :  { %v121_v43 = vstv %s67_s28  ;;  %s2737_s20 = sld [smem:[#allocation10 + $0x9]] }
  0x2d   :  { %s2738_s21 = sld [smem:[#allocation10 + $0xa]] }
  0x2e   :  { %234 = vrot.lane.b32.xlu1 %v230_v22, %s3041_s0  ;;  %s2740_s23 = sld [smem:[#allocation10 + $0xc]] }
  0x2f   :  { %218 = vrot.lane.b32.xlu0 %v213_v23, %s3041_s0  ;;  %v560_v23 = vmul.f32 %v559_v20, %v3152_v4  ;;  %s2732_s24 = sld [smem:[#allocation10 + $0x4]] }
  0x30   :  { %236 = vrot.lane.b32.xlu2 %v231_v24, %s3041_s0  ;;  %s2741_s25 = sld [smem:[#allocation10 + $0xd]] }
  0x31   :  { %s2739_s28 = sld [smem:[#allocation10 + $0xb]] }
  0x32   :  { %s2743_s30 = sld [smem:[#allocation10 + $0xf]] }
  0x33   :  { %s2742_s4 = sld [smem:[#allocation10 + $0xe]] }
  0x34   :  { %s2745_s12 = sld [smem:[#allocation10 + $0x11]] }
  0x36   :  { %254 = vrot.lane.b32.xlu1 %v249_v26, %s3042_s10  ;;  %v561_v26 = vmul.f32 %v559_v20, %v3173_v12 }
  0x37   :  { %252 = vrot.lane.b32.xlu0 %v248_v27, %s3042_s10 }
  0x38   :  { %271 = vrot.lane.b32.xlu2 %v267_v29, %s3042_s10 }
  0x3e   :  { %289 = vrot.lane.b32.xlu1 %v285_v31, %s3042_s10 }
  0x3f   :  { %273 = vrot.lane.b32.xlu0 %v268_v32, %s3042_s10 }
  0x40   :  { %291 = vrot.lane.b32.xlu2 %v286_v33, %s3042_s10 }
  0x46   :  { %309 = vrot.lane.b32.xlu1 %v304_v35, %s3043_s29 }
  0x47   :  { %307 = vrot.lane.b32.xlu0 %v303_v36, %s3043_s29 }
  0x48   :  { %326 = vrot.lane.b32.xlu2 %v322_v38, %s3043_s29 }
  0x4e   :  { %344 = vrot.lane.b32.xlu1 %v340_v40, %s3043_s29 }
  0x4f   :  { %328 = vrot.lane.b32.xlu0 %v323_v41, %s3043_s29 }
  0x50   :  { %346 = vrot.lane.b32.xlu2 %v341_v42, %s3043_s29  ;;  %v126_v42 = vstv %s2711_s27  ;;  %s2733_s27 = sld [smem:[#allocation10 + $0x5]] }
  0x51   :  { %v128_v46 = vmul.f32 %v126_v42, %v3161_v10  ;;  %v127_v48 = vmul.f32 %v126_v42, %v3142_v1 }
  0x56   :  { %364 = vrot.lane.b32.xlu1 %v359_v44, %s3044_s13 }
  0x57   :  { %362 = vrot.lane.b32.xlu0 %v358_v45, %s3044_s13 }
  0x58   :  { %381 = vrot.lane.b32.xlu2 %v377_v47, %s3044_s13  ;;  %v123_v47 = vmul.f32 %v121_v43, %v3167_v11 }
  0x5e   :  { %399 = vrot.lane.b32.xlu1 %v395_v49, %s3044_s13  ;;  %v131_v49 = vstv %s2720_s2  ;;  %s2734_s2 = sld [smem:[#allocation10 + $0x6]] }
  0x5f   :  { %383 = vrot.lane.b32.xlu0 %v378_v50, %s3044_s13  ;;  %v122_v50 = vmul.f32 %v121_v43, %v3147_v2  ;;  %v133_v52 = vmul.f32 %v131_v49, %v3173_v12  ;;  %v132_v55 = vmul.f32 %v131_v49, %v3152_v4 }
  0x60   :  { %401 = vrot.lane.b32.xlu2 %v396_v51, %s3044_s13 }
  0x66   :  { %419 = vrot.lane.b32.xlu1 %v414_v53, %s3045_s18  ;;  %v130_v53 = vadd.f32 %v128_v46, %v123_v47 }
  0x67   :  { %417 = vrot.lane.b32.xlu0 %v413_v54, %s3045_s18 }
  0x68   :  { %436 = vrot.lane.b32.xlu2 %v432_v56, %s3045_s18  ;;  %v129_v56 = vadd.f32 %v127_v48, %v122_v50  ;;  %v135_v11 = vadd.f32 %v133_v52, %v130_v53 }
  0x6a   :  { %v134_v12 = vadd.f32 %v132_v55, %v129_v56 }
  0x6e   :  { %454 = vrot.lane.b32.xlu1 %v450_v58, %s3045_s18 }
  0x6f   :  { %438 = vrot.lane.b32.xlu0 %v433_v59, %s3045_s18 }
  0x70   :  { %456 = vrot.lane.b32.xlu2 %v451_v60, %s3045_s18 }
  0x72   :  { %v3242_v63 = vpop.permute.xlu2 %179 }
  0x73   :  { %v183_v61 = vrot.slane %v3242_v63, 4 }
  0x76   :  { %474 = vrot.lane.b32.xlu1 %v469_v62, %s3046_s22 }
  0x77   :  { %472 = vrot.lane.b32.xlu0 %v468_v0, %s3046_s22 }
  0x78   :  { %491 = vrot.lane.b32.xlu2 %v487_v5, %s3046_s22 }
  0x7a   :  { %v3250_v8 = vpop.permute.xlu2 %181 }
  0x7b   :  { %v184_v62 = vrot.slane %v3250_v8, 4 }
  0x7e   :  { %509 = vrot.lane.b32.xlu1 %v505_v7, %s3046_s22 }
  0x7f   :  { %493 = vrot.lane.b32.xlu0 %v488_v9, %s3046_s22 }
  0x80   :  { %511 = vrot.lane.b32.xlu2 %v506_v13, %s3046_s22 }
  0x82   :  { %v3258_v16 = vpop.permute.xlu2 %216 }
  0x86   :  { %529 = vrot.lane.b32.xlu1 %v524_v15, %s3047_s26 }
  0x87   :  { %527 = vrot.lane.b32.xlu0 %v523_v17, %s3047_s26  ;;  %v185_v17 = vsel %vm147_vm0, %v183_v61, %v184_v62 }
  0x88   :  { %v3264_v21 = vpop.permute.xlu1 %161  ;;  %546 = vrot.lane.b32.xlu2 %v542_v19, %s3047_s26 }
  0x89   :  { %v142_v22 = vpop.permute.xlu0 %141  ;;  %v165_v4 = vrot.slane %v3264_v21, 4 }
  0x8a   :  { %v3268_v24 = vpop.permute.xlu2 %236  ;;  %v145_v54 = vrot.slane %v142_v22, 4 }
  0x8b   :  { %v239_v46 = vrot.slane %v3268_v24, 4 }
  0x8e   :  { %564 = vrot.lane.b32.xlu1 %v560_v23, %s3047_s26 }
  0x8f   :  { %548 = vrot.lane.b32.xlu0 %v543_v25, %s3047_s26 }
  0x90   :  { %v164_v27 = vpop.permute.xlu1 %163  ;;  %566 = vrot.lane.b32.xlu2 %v561_v26, %s3047_s26  ;;  %v187_v26 = vsel %vm149_vm1, %v3250_v8, %v184_v62 }
  0x91   :  { %v144_v28 = vpop.permute.xlu0 %143  ;;  %v166_v2 = vrot.slane %v164_v27, 4 }
  0x92   :  { %v3275_v29 = vpop.permute.xlu2 %271  ;;  %v146_v51 = vrot.slane %v144_v28, 4 }
  0x93   :  { %v167_v3 = vsel %vm147_vm0, %v165_v4, %v166_v2  ;;  %v169_v14 = vsel %vm149_vm1, %v164_v27, %v166_v2  ;;  %v186_v27 = vsel %vm149_vm1, %v3242_v63, %v185_v17 }
  0x94   :  { %v148_v1 = vsel %vm147_vm0, %v145_v54, %v146_v51  ;;  %v151_v59 = vsel %vm149_vm1, %v144_v28, %v146_v51  ;;  %v168_v19 = vsel %vm149_vm1, %v3264_v21, %v167_v3  ;;  %v275_v54 = vrot.slane %v3275_v29, 4 }
  0x95   :  { %v150_v60 = vsel %vm149_vm1, %v142_v22, %v148_v1  ;;  %v155_v0 = vadd.f32 %v151_v59, %v135_v11  ;;  %v220_v22 = vrot.slane %v3258_v16, 4 }
  0x96   :  { %v154_v6 = vadd.f32 %v150_v60, %v134_v12 }
  0x97   :  { %v173_v18 = vadd.f32 %v169_v14, %v155_v0 }
  0x98   :  { %v3277_v30 = vpop.permute.xlu1 %199  ;;  %v172_v23 = vadd.f32 %v168_v19, %v154_v6 }
  0x99   :  { %v3279_v31 = vpop.permute.xlu0 %197  ;;  %v202_v5 = vrot.slane %v3277_v30, 4  ;;  %v191_v42 = vadd.f32 %v187_v26, %v173_v18 }
  0x9a   :  { %v3281_v32 = vpop.permute.xlu2 %291  ;;  %v201_v7 = vrot.slane %v3279_v31, 4  ;;  %v190_v47 = vadd.f32 %v186_v27, %v172_v23 }
  0x9b   :  { %v206_v21 = vsel %vm204_vm2, %v3277_v30, %v202_v5  ;;  %v294_v62 = vrot.slane %v3281_v32, 4 }
  0x9c   :  { %v203_v25 = vsel %vm147_vm0, %v201_v7, %v202_v5 }
  0x9d   :  { %v205_v43 = vsel %vm204_vm2, %v3279_v31, %v203_v25  ;;  %v210_v31 = vadd.f32 %v206_v21, %v191_v42 }
  0x9e   :  { %v209_v52 = vadd.f32 %v205_v43, %v190_v47 }
  0xa0   :  { %v3283_v33 = vpop.permute.xlu1 %234 }
  0xa1   :  { %v3285_v34 = vpop.permute.xlu0 %218  ;;  %v238_v48 = vrot.slane %v3283_v33, 4 }
  0xa2   :  { %v3287_v35 = vpop.permute.xlu2 %326  ;;  %v221_v15 = vrot.slane %v3285_v34, 4 }
  0xa3   :  { %v240_v55 = vsel %vm147_vm0, %v238_v48, %v239_v46 }
  0xa4   :  { %v222_v28 = vsel %vm147_vm0, %v220_v22, %v221_v15  ;;  %v224_v63 = vsel %vm204_vm2, %v3285_v34, %v221_v15  ;;  %v241_v59 = vsel %vm204_vm2, %v3283_v33, %v240_v55 }
  0xa5   :  { %v223_v30 = vsel %vm204_vm2, %v3258_v16, %v222_v28  ;;  %v228_v56 = vadd.f32 %v224_v63, %v210_v31  ;;  %v242_v16 = vsel %vm204_vm2, %v3268_v24, %v239_v46 }
  0xa6   :  { %v227_v1 = vadd.f32 %v223_v30, %v209_v52 }
  0xa7   :  { %v246_v4 = vadd.f32 %v242_v16, %v228_v56 }
  0xa8   :  { %v3289_v36 = vpop.permute.xlu1 %254  ;;  %v245_v61 = vadd.f32 %v241_v59, %v227_v1 }
  0xa9   :  { %v3291_v37 = vpop.permute.xlu0 %252  ;;  %v257_v49 = vrot.slane %v3289_v36, 4 }
  0xaa   :  { %v3293_v38 = vpop.permute.xlu2 %346  ;;  %v256_v8 = vrot.slane %v3291_v37, 4 }
  0xab   :  { %v261_v12 = vsel %vm259_vm3, %v3289_v36, %v257_v49  ;;  %v349_v21 = vrot.slane %v3293_v38, 4 }
  0xac   :  { %v258_v11 = vsel %vm147_vm0, %v256_v8, %v257_v49 }
  0xad   :  { %v260_v60 = vsel %vm259_vm3, %v3291_v37, %v258_v11  ;;  %v265_v37 = vadd.f32 %v261_v12, %v246_v4 }
  0xae   :  { %v264_v7 = vadd.f32 %v260_v60, %v245_v61 }
  0xb0   :  { %v3295_v39 = vpop.permute.xlu1 %289 }
  0xb1   :  { %v3297_v40 = vpop.permute.xlu0 %273  ;;  %v293_v0 = vrot.slane %v3295_v39, 4 }
  0xb2   :  { %v3299_v41 = vpop.permute.xlu2 %381  ;;  %v276_v53 = vrot.slane %v3297_v40, 4 }
  0xb3   :  { %v295_v15 = vsel %vm147_vm0, %v293_v0, %v294_v62  ;;  %v385_v31 = vrot.slane %v3299_v41, 4 }
  0xb4   :  { %v277_v34 = vsel %vm147_vm0, %v275_v54, %v276_v53  ;;  %v279_v24 = vsel %vm259_vm3, %v3297_v40, %v276_v53  ;;  %v330_v40 = vrot.slane %v3287_v35, 4  ;;  %v296_v22 = vsel %vm259_vm3, %v3295_v39, %v295_v15 }
  0xb5   :  { %v278_v33 = vsel %vm259_vm3, %v3275_v29, %v277_v34  ;;  %v283_v17 = vadd.f32 %v279_v24, %v265_v37  ;;  %v297_v29 = vsel %vm259_vm3, %v3281_v32, %v294_v62  ;;  %v352_v53 = vsel %vm314_vm4, %v3293_v38, %v349_v21 }
  0xb6   :  { %v282_v18 = vadd.f32 %v278_v33, %v264_v7 }
  0xb7   :  { %v301_v27 = vadd.f32 %v297_v29, %v283_v17 }
  0xb8   :  { %v3301_v44 = vpop.permute.xlu1 %309  ;;  %v300_v28 = vadd.f32 %v296_v22, %v282_v18 }
  0xb9   :  { %v3303_v45 = vpop.permute.xlu0 %307  ;;  %v312_v5 = vrot.slane %v3301_v44, 4 }
  0xba   :  { %v3315_v10 = vpop.permute.xlu2 %401  ;;  %v311_v36 = vrot.slane %v3303_v45, 4 }
  0xbb   :  { %v316_v23 = vsel %vm314_vm4, %v3301_v44, %v312_v5 }
  0xbc   :  { %v313_v19 = vsel %vm147_vm0, %v311_v36, %v312_v5  ;;  %v320_v48 = vadd.f32 %v316_v23, %v301_v27 }
  0xbd   :  { %v315_v42 = vsel %vm314_vm4, %v3303_v45, %v313_v19 }
  0xbe   :  { %v319_v8 = vadd.f32 %v315_v42, %v300_v28 }
  0xc0   :  { %v3311_v57 = vpop.permute.xlu1 %344 }
  0xc1   :  { %v3313_v58 = vpop.permute.xlu0 %328  ;;  %v348_v32 = vrot.slane %v3311_v57, 4 }
  0xc2   :  { %v3335_v20 = vpop.permute.xlu2 %436  ;;  %v331_v14 = vrot.slane %v3313_v58, 4 }
  0xc3   :  { %v350_v30 = vsel %vm147_vm0, %v348_v32, %v349_v21  ;;  %v440_v5 = vrot.slane %v3335_v20, 4 }
  0xc4   :  { %v332_v25 = vsel %vm147_vm0, %v330_v40, %v331_v14  ;;  %v334_v39 = vsel %vm314_vm4, %v3313_v58, %v331_v14  ;;  %v351_v56 = vsel %vm314_vm4, %v3311_v57, %v350_v30 }
  0xc5   :  { %v333_v49 = vsel %vm314_vm4, %v3287_v35, %v332_v25  ;;  %v338_v63 = vadd.f32 %v334_v39, %v320_v48  ;;  %v404_v35 = vrot.slane %v3315_v10, 4 }
  0xc6   :  { %v337_v52 = vadd.f32 %v333_v49, %v319_v8  ;;  %v3048_v8 = vmov 0.0  }
  0xc7   :  { %v356_v1 = vadd.f32 %v352_v53, %v338_v63  ;;  %v407_v36 = vsel %vm369_vm5, %v3315_v10, %v404_v35  ;;  %600 = vst.msk [vmem:[#allocation2] sm:$0xff] %vm599_vm10, %v3048_v8 }
  0xc8   :  { %v3326_v9 = vpop.permute.xlu1 %364  ;;  %v355_v59 = vadd.f32 %v351_v56, %v337_v52  ;;  %601 = vst.msk [vmem:[#allocation2 + $0x8] sm:$0xff] %vm599_vm10, %v3048_v8  ;;  %v114_v56 = vld [vmem:[%s4138_s1] sm:$0xf]  ;;  %s2735_s1 = sld [smem:[#allocation10 + $0x7]] }
  0xc9   :  { %v3328_v13 = vpop.permute.xlu0 %362  ;;  %v367_v44 = vrot.slane %v3326_v9, 4 }
  0xca   :  { %v3364_v2 = vpop.permute.xlu2 %456  ;;  %v366_v46 = vrot.slane %v3328_v13, 4 }
  0xcb   :  { %v371_v54 = vsel %vm369_vm5, %v3326_v9, %v367_v44 }
  0xcc   :  { %v368_v58 = vsel %vm147_vm0, %v366_v46, %v367_v44  ;;  %v375_v61 = vadd.f32 %v371_v54, %v356_v1 }
  0xcd   :  { %v370_v11 = vsel %vm369_vm5, %v3328_v13, %v368_v58 }
  0xce   :  { %v374_v62 = vadd.f32 %v370_v11, %v355_v59 }
  0xd0   :  { %v3352_v50 = vpop.permute.xlu1 %399 }
  0xd1   :  { %v3358_v51 = vpop.permute.xlu0 %383  ;;  %v403_v34 = vrot.slane %v3352_v50, 4 }
  0xd2   :  { %v3398_v26 = vpop.permute.xlu2 %491  ;;  %v386_v45 = vrot.slane %v3358_v51, 4 }
  0xd3   :  { %v405_v0 = vsel %vm147_vm0, %v403_v34, %v404_v35  ;;  %v495_v32 = vrot.slane %v3398_v26, 4 }
  0xd4   :  { %v387_v55 = vsel %vm147_vm0, %v385_v31, %v386_v45  ;;  %v389_v38 = vsel %vm369_vm5, %v3358_v51, %v386_v45  ;;  %v406_v37 = vsel %vm369_vm5, %v3352_v50, %v405_v0 }
  0xd5   :  { %v388_v57 = vsel %vm369_vm5, %v3299_v41, %v387_v55  ;;  %v393_v24 = vadd.f32 %v389_v38, %v375_v61  ;;  %v459_v41 = vrot.slane %v3364_v2, 4  ;;  %v584_v38 = vperm.slane %v114_v56, 3 }
  0xd6   :  { %v392_v51 = vadd.f32 %v388_v57, %v374_v62  ;;  %v582_v61 = vperm.slane %v114_v56, 1 }
  0xd7   :  { %v411_v14 = vadd.f32 %v407_v36, %v393_v24  ;;  %v462_v44 = vsel %vm424_vm6, %v3364_v2, %v459_v41 }
  0xd8   :  { %v3377_v3 = vpop.permute.xlu1 %419  ;;  %v410_v40 = vadd.f32 %v406_v37, %v392_v51  ;;  %v583_v37 = vperm.slane %v114_v56, 2 }
  0xd9   :  { %v3385_v6 = vpop.permute.xlu0 %417  ;;  %v422_v9 = vrot.slane %v3377_v3, 4 }
  0xda   :  { %v421_v12 = vrot.slane %v3385_v6, 4  ;;  %v3431_v4 = vpop.permute.xlu2 %511 }
  0xdb   :  { %v426_v15 = vsel %vm424_vm6, %v3377_v3, %v422_v9  ;;  %v514_v31 = vrot.slane %v3431_v4, 4 }
  0xdc   :  { %v423_v33 = vsel %vm147_vm0, %v421_v12, %v422_v9 }
  0xdd   :  { %v425_v17 = vsel %vm424_vm6, %v3385_v6, %v423_v33  ;;  %v430_v6 = vadd.f32 %v426_v15, %v411_v14  ;;  %v517_v9 = vsel %vm479_vm15, %v3431_v4, %v514_v31 }
  0xde   :  { %v429_v23 = vadd.f32 %v425_v17, %v410_v40  ;;  %v581_v40 = vperm.slane %v114_v56, 0 }
  0xe0   :  { %v3403_v43 = vpop.permute.xlu1 %454 }
  0xe1   :  { %v439_v47 = vpop.permute.xlu0 %438  ;;  %v458_v19 = vrot.slane %v3403_v43, 4 }
  0xe2   :  { %v441_v13 = vrot.slane %v439_v47, 4  ;;  %v547_v25 = vpop.permute.xlu2 %546 }
  0xe3   :  { %v460_v42 = vsel %vm147_vm0, %v458_v19, %v459_v41  ;;  %v586_v41 = vrot.slane %v584_v38, 4  ;;  %v585_v19 = vrot.slane %v582_v61, 4 }
  0xe4   :  { %v442_v7 = vsel %vm147_vm0, %v440_v5, %v441_v13  ;;  %v444_v10 = vsel %vm424_vm6, %v439_v47, %v441_v13  ;;  %v461_v46 = vsel %vm424_vm6, %v3403_v43, %v460_v42  ;;  %v550_v5 = vrot.slane %v547_v25, 4 }
  0xe5   :  { %v443_v22 = vsel %vm424_vm6, %v3335_v20, %v442_v7  ;;  %v448_v21 = vadd.f32 %v444_v10, %v430_v6  ;;  %v588_v6 = vsel %vm147_vm0, %v583_v37, %v586_v41  ;;  %v587_v42 = vsel %vm147_vm0, %v581_v40, %v585_v19 }
  0xe6   :  { %v447_v20 = vadd.f32 %v443_v22, %v429_v23  ;;  %v776_v19 = vstv %s2745_s12  ;;  %s3059_s12 = smov 23  }
  0xe7   :  { %v466_v45 = vadd.f32 %v462_v44, %v448_v21 }
  0xe8   :  { %v475_v16 = vpop.permute.xlu1 %474  ;;  %v465_v63 = vadd.f32 %v461_v46, %v447_v20 }
  0xe9   :  { %v473_v60 = vpop.permute.xlu0 %472  ;;  %v477_v50 = vrot.slane %v475_v16, 4 }
  0xea   :  { %v476_v3 = vrot.slane %v473_v60, 4  ;;  %v567_v11 = vpop.permute.xlu2 %566 }
  0xeb   :  { %v481_v47 = vsel %vm479_vm15, %v475_v16, %v477_v50 }
  0xec   :  { %v478_v39 = vsel %vm147_vm0, %v476_v3, %v477_v50  ;;  %v485_v54 = vadd.f32 %v481_v47, %v466_v45 }
  0xed   :  { %v480_v30 = vsel %vm479_vm15, %v473_v60, %v478_v39 }
  0xee   :  { %v484_v55 = vadd.f32 %v480_v30, %v465_v63 }
  0xf0   :  { %v510_v18 = vpop.permute.xlu1 %509 }
  0xf1   :  { %v494_v29 = vpop.permute.xlu0 %493  ;;  %v513_v2 = vrot.slane %v510_v18, 4 }
  0xf2   :  { %v496_v28 = vrot.slane %v494_v29, 4 }
  0xf3   :  { %v515_v34 = vsel %vm147_vm0, %v513_v2, %v514_v31 }
  0xf4   :  { %v497_v48 = vsel %vm147_vm0, %v495_v32, %v496_v28  ;;  %v499_v43 = vsel %vm479_vm15, %v494_v29, %v496_v28  ;;  %v516_v57 = vsel %vm479_vm15, %v510_v18, %v515_v34  ;;  %v577_v29 = vstv %s4140_s3  ;;  %s3049_s3 = smov 19  }
  0xf5   :  { %v498_v35 = vsel %vm479_vm15, %v3398_v26, %v497_v48  ;;  %v503_v1 = vadd.f32 %v499_v43, %v485_v54  ;;  %v569_v26 = vrot.slane %v567_v11, 4  ;;  %v677_v43 = vstv %s2731_s15  ;;  %s3051_s15 = smov 39  }
  0xf6   :  { %v502_v16 = vadd.f32 %v498_v35, %v484_v55  ;;  %v650_v34 = vstv %s2738_s21 }
  0xf7   :  { %v521_v62 = vadd.f32 %v517_v9, %v503_v1  ;;  %v572_v10 = vsel %vm534_vm9, %v567_v11, %v569_v26  ;;  %v635_v1 = vstv %s94_s19  ;;  %v638_v11 = vstv %s2737_s20 }
  0xf8   :  { %v530_v49 = vpop.permute.xlu1 %529  ;;  %v520_v51 = vadd.f32 %v516_v57, %v502_v16  ;;  %v686_v16 = vstv %s2740_s23  ;;  %v704_v57 = vstv %s2741_s25  ;;  %s3068_s25 = smov 75  }
  0xf9   :  { %v528_v52 = vpop.permute.xlu0 %527  ;;  %v532_v58 = vrot.slane %v530_v49, 4 }
  0xfa   :  { %v531_v53 = vrot.slane %v528_v52, 4 }
  0xfb   :  { %v536_v12 = vsel %vm534_vm9, %v530_v49, %v532_v58 }
  0xfc   :  { %v533_v59 = vsel %vm147_vm0, %v531_v53, %v532_v58  ;;  %v540_v36 = vadd.f32 %v536_v12, %v521_v62  ;;  %v659_v58 = vstv %s2730_s16  ;;  %v641_v53 = vstv %s2729_s17  ;;  %s3052_s16 = smov 21  }
  0xfd   :  { %v535_v13 = vsel %vm534_vm9, %v528_v52, %v533_v59  ;;  %v695_v59 = vstv %s2732_s24  ;;  %v713_v62 = vstv %s2733_s27 }
  0xfe   :  { %v539_v7 = vadd.f32 %v535_v13, %v520_v51  ;;  %v668_v13 = vstv %s2739_s28  ;;  %v731_v51 = vstv %s2734_s2  ;;  %s3069_s2 = smov 96  }
 0x100   :  { %v565_v60 = vpop.permute.xlu1 %564 }
 0x101   :  { %v568_v0 = vrot.slane %v565_v60, 4  ;;  %v549_v24 = vpop.permute.xlu0 %548 }
 0x102   :  { %v551_v33 = vrot.slane %v549_v24, 4 }
 0x103   :  { %v570_v4 = vsel %vm147_vm0, %v568_v0, %v569_v26 }
 0x104   :  { %v552_v14 = vsel %vm147_vm0, %v550_v5, %v551_v33  ;;  %v554_v15 = vsel %vm534_vm9, %v549_v24, %v551_v33  ;;  %v571_v22 = vsel %vm534_vm9, %v565_v60, %v570_v4  ;;  %v740_v33 = vstv %s2743_s30  ;;  %s3053_s30 = smov 64  }
 0x105   :  { %v553_v17 = vsel %vm534_vm9, %v547_v25, %v552_v14  ;;  %v558_v18 = vadd.f32 %v554_v15, %v540_v36  ;;  %v722_v36 = vstv %s2742_s4  ;;  %v749_v15 = vstv %s2735_s1  ;;  %s3054_s4 = smov 3   ;;  %s3058_s1 = smov 77  }
 0x106   :  { %v557_v50 = vadd.f32 %v553_v17, %v539_v7 }
 0x107   :  { %v576_v3 = vadd.f32 %v572_v10, %v558_v18 }
 0x108   :  { %v575_v23 = vadd.f32 %v571_v22, %v557_v50 }
 0x109   :  { %v579_v28 = vadd.f32 %v577_v29, %v576_v3 }
 0x10a   :  { %v578_v25 = vadd.f32 %v577_v29, %v575_v23 }
 0x10b   :  { %v592_v21 = vmul.f32 %v588_v6, %v579_v28 }
 0x10c   :  { %v591_v20 = vmul.f32 %v587_v42, %v578_v25 }
 0x10d   :  { %623 = vst.sshfl [vmem:[#allocation1 + $0x8] sm:$0xff pattern:$0x75643120] %v592_v21  ;;  %v605_v32 = vrot.slane %v592_v21, 4  ;;  %v606_v39 = vrot.slane %v592_v21, 6 }
 0x10e   :  { %v604_v44 = vrot.slane %v591_v20, 2  ;;  %622 = vst.sshfl [vmem:[#allocation1] sm:$0xff pattern:$0x75643120] %v591_v20 }
 0x10f   :  { %v608_v46 = vsel %vm596_vm11, %v605_v32, %v606_v39 }
 0x110   :  { %v607_v47 = vsel %vm593_vm8, %v591_v20, %v604_v44  ;;  %vm1131_vm8 = vcmask 261120  }
 0x111   :  { %v609_v48 = vsel %vm147_vm0, %v607_v47, %v608_v46  ;;  %vm787_vm0 = vcmask 130048  }
 0x112   :  { %610 = vrot.lane.b32.xlu0 %v609_v48, %s3049_s3  ;;  %788 = vst.msk [vmem:[#allocation3] sm:$0xff] %vm787_vm0, %v3048_v8 }
 0x113   :  { %789 = vst.msk [vmem:[#allocation3 + $0x8] sm:$0xff] %vm787_vm0, %v3048_v8 }
 0x114   :  { %790 = vst.msk [vmem:[#allocation3 + $0x10] sm:$0xff] %vm787_vm0, %v3048_v8 }
 0x115   :  { %v625_v49 = vld [vmem:[#allocation1 + $0x1] ss:$2 sm:$0xff]  ;;  %791 = vst.msk [vmem:[#allocation3 + $0x18] sm:$0xff] %vm787_vm0, %v3048_v8 }
 0x116   :  { %626 = vrot.lane.b32.xlu1 %v625_v49, %s3049_s3  ;;  %792 = vst.msk [vmem:[#allocation3 + $0x20] sm:$0xff] %vm787_vm0, %v3048_v8 }
 0x117   :  { %793 = vst.msk [vmem:[#allocation3 + $0x28] sm:$0xff] %vm787_vm0, %v3048_v8 }
 0x118   :  { %794 = vst.msk [vmem:[#allocation3 + $0x30] sm:$0xff] %vm787_vm0, %v3048_v8 }
 0x119   :  { %795 = vst.msk [vmem:[#allocation3 + $0x38] sm:$0xff] %vm787_vm0, %v3048_v8 }
 0x11a   :  { %796 = vst.msk [vmem:[#allocation3 + $0x40] sm:$0xff] %vm787_vm0, %v3048_v8 }
 0x11b   :  { %797 = vst.msk [vmem:[#allocation3 + $0x48] sm:$0xff] %vm787_vm0, %v3048_v8 }
 0x11c   :  { %798 = vst.msk [vmem:[#allocation3 + $0x50] sm:$0xff] %vm787_vm0, %v3048_v8 }
 0x11d   :  { %799 = vst.msk [vmem:[#allocation3 + $0x58] sm:$0xff] %vm787_vm0, %v3048_v8 }
 0x11e   :  { %800 = vst.msk [vmem:[#allocation3 + $0x60] sm:$0xff] %vm787_vm0, %v3048_v8 }
 0x11f   :  { %801 = vst.msk [vmem:[#allocation3 + $0x68] sm:$0xff] %vm787_vm0, %v3048_v8 }
 0x120   :  { %802 = vst.msk [vmem:[#allocation3 + $0x70] sm:$0xff] %vm787_vm0, %v3048_v8 }
 0x121   :  { %803 = vst.msk [vmem:[#allocation3 + $0x78] sm:$0xff] %vm787_vm0, %v3048_v8 }
 0x122   :  { %804 = vst.msk [vmem:[#allocation3 + $0x80] sm:$0xff] %vm787_vm0, %v3048_v8 }
 0x123   :  { %805 = vst.msk [vmem:[#allocation3 + $0x88] sm:$0xff] %vm787_vm0, %v3048_v8 }
 0x124   :  { %806 = vst.msk [vmem:[#allocation3 + $0x90] sm:$0xff] %vm787_vm0, %v3048_v8 }
 0x125   :  { %807 = vst.msk [vmem:[#allocation3 + $0x98] sm:$0xff] %vm787_vm0, %v3048_v8 }
 0x184   :  { %v611_v45 = vpop.permute.xlu0 %610 }
 0x185   :  { %v612_v63 = vrot.slane %v611_v45, 6 }
 0x187   :  { %v614_v30 = vsel %vm613_vm14, %v612_v63, %v611_v45 }
 0x188   :  { %621 = vst.msk [vmem:[#allocation2] sm:$0xff] %vm620_vm7, %v614_v30  ;;  %v627_v31 = vpop.permute.xlu1 %626 }
 0x189   :  { %v628_v52 = vrot.slane %v627_v31, 6 }
 0x18b   :  { %v629_v2 = vsel %vm613_vm14, %v628_v52, %v627_v31 }
 0x18c   :  { %632 = vst.msk [vmem:[#allocation2 + $0x8] sm:$0xff] %vm620_vm7, %v629_v2 }
 0x18f   :  { %v633_v54 = vld [vmem:[#allocation2] sm:$0xff] }
 0x190   :  { %v678_v35 = vmul.f32 %v677_v43, %v633_v54  ;;  %v660_v27 = vmul.f32 %v659_v58, %v633_v54  ;;  %v642_v55 = vmul.f32 %v641_v53, %v633_v54  ;;  %v636_v9 = vmul.f32 %v635_v1, %v633_v54 }
 0x191   :  { %v696_v61 = vmul.f32 %v695_v59, %v633_v54  ;;  %v714_v24 = vmul.f32 %v713_v62, %v633_v54  ;;  %v732_v37 = vmul.f32 %v731_v51, %v633_v54  ;;  %v750_v40 = vmul.f32 %v749_v15, %v633_v54 }
 0x192   :  { %680 = vrot.lane.b32.xlu0 %v678_v35, %s3042_s10  ;;  %662 = vrot.lane.b32.xlu1 %v660_v27, %s3041_s0 }
 0x193   :  { %644 = vrot.lane.b32.xlu2 %v642_v55, %s3040_s14  ;;  %v634_v56 = vld [vmem:[#allocation2 + $0x8] sm:$0xff] }
 0x194   :  { %v639_v38 = vmul.f32 %v638_v11, %v634_v56  ;;  %v651_v12 = vmul.f32 %v650_v34, %v634_v56  ;;  %v687_v26 = vmul.f32 %v686_v16, %v634_v56  ;;  %v705_v0 = vmul.f32 %v704_v57, %v634_v56 }
 0x195   :  { %v669_v5 = vmul.f32 %v668_v13, %v634_v56  ;;  %v741_v41 = vmul.f32 %v740_v33, %v634_v56  ;;  %v723_v7 = vmul.f32 %v722_v36, %v634_v56  ;;  %v777_v10 = vmul.f32 %v776_v19, %v634_v56 }
 0x196   :  { %v640_v60 = vadd.f32 %v639_v38, %v636_v9 }
 0x19a   :  { %653 = vrot.lane.b32.xlu0 %v651_v12, %s3040_s14  ;;  %689 = vrot.lane.b32.xlu1 %v687_v26, %s3042_s10  ;;  %s2744_s14 = sld [smem:[#allocation10 + $0x10]] }
 0x19b   :  { %698 = vrot.lane.b32.xlu2 %v696_v61, %s3043_s29  ;;  %s2736_s10 = sld [smem:[#allocation10 + $0x8]] }
 0x1a0   :  { %v758_v4 = vstv %s2744_s14  ;;  %s3055_s14 = smov 95  }
 0x1a1   :  { %v767_v14 = vstv %s2736_s10  ;;  %v759_v17 = vmul.f32 %v758_v4, %v634_v56  ;;  %s3056_s10 = smov 32  }
 0x1a2   :  { %707 = vrot.lane.b32.xlu0 %v705_v0, %s3043_s29  ;;  %716 = vrot.lane.b32.xlu1 %v714_v24, %s3044_s13  ;;  %v768_v18 = vmul.f32 %v767_v14, %v633_v54 }
 0x1a3   :  { %671 = vrot.lane.b32.xlu2 %v669_v5, %s3041_s0  ;;  %s3060_s0 = smov 59  }
 0x1aa   :  { %734 = vrot.lane.b32.xlu0 %v732_v37, %s3045_s18  ;;  %743 = vrot.lane.b32.xlu1 %v741_v41, %s3045_s18  ;;  %s3064_s18 = smov 37  }
 0x1ab   :  { %725 = vrot.lane.b32.xlu2 %v723_v7, %s3044_s13  ;;  %s3061_s13 = smov 73  }
 0x1b2   :  { %761 = vrot.lane.b32.xlu0 %v759_v17, %s3046_s22  ;;  %770 = vrot.lane.b32.xlu1 %v768_v18, %s3047_s26 }
 0x1b3   :  { %752 = vrot.lane.b32.xlu2 %v750_v40, %s3046_s22 }
 0x1bb   :  { %779 = vrot.lane.b32.xlu2 %v777_v10, %s3047_s26  ;;  %s3066_s26 = smov 111  }
 0x1ed   :  { %v645_v29 = vpop.permute.xlu2 %644 }
 0x1ee   :  { %v646_v23 = vrot.slane %v645_v29, 2 }
 0x1f0   :  { %v647_v28 = vsel %vm149_vm1, %v645_v29, %v646_v23  ;;  %v785_v29 = vstv %s4142_s5  ;;  %s3062_s5 = smov 41  }
 0x1f1   :  { %v649_v32 = vadd.f32 %v647_v28, %v640_v60 }
 0x1f5   :  { %v699_v50 = vpop.permute.xlu2 %698 }
 0x1f6   :  { %v700_v43 = vrot.slane %v699_v50, 2 }
 0x1f8   :  { %v701_v55 = vsel %vm314_vm4, %v699_v50, %v700_v43 }
 0x1fd   :  { %v672_v6 = vpop.permute.xlu2 %671 }
 0x1fe   :  { %v673_v39 = vrot.slane %v672_v6, 2 }
 0x200   :  { %v674_v63 = vsel %vm204_vm2, %v672_v6, %v673_v39  ;;  %v961_v39 = vld [vmem:[%s4143_s6 + $0x8] sm:$0xff] }
 0x201   :  { %1040 = vmatpush.msra.mxu0 %v961_v39  ;;  %2805 = vmatpush.msra.mxu1 %v961_v39 }
 0x202   :  { %2806 = vmatpush.msra.mxu2 %v961_v39  ;;  %2807 = vmatpush.msra.mxu3 %v961_v39 }
 0x204   :  { %v681_v22 = vpop.permute.xlu0 %680  ;;  %v663_v3 = vpop.permute.xlu1 %662 }
 0x205   :  { %v664_v21 = vrot.slane %v663_v3, 2  ;;  %v726_v44 = vpop.permute.xlu2 %725  ;;  %v682_v48 = vrot.slane %v681_v22, 2 }
 0x206   :  { %v727_v34 = vrot.slane %v726_v44, 2 }
 0x207   :  { %v665_v49 = vsel %vm204_vm2, %v663_v3, %v664_v21  ;;  %v683_v58 = vsel %vm259_vm3, %v681_v22, %v682_v48 }
 0x208   :  { %v728_v61 = vsel %vm369_vm5, %v726_v44, %v727_v34 }
 0x20c   :  { %v654_v42 = vpop.permute.xlu0 %653  ;;  %v690_v25 = vpop.permute.xlu1 %689 }
 0x20d   :  { %v655_v20 = vrot.slane %v654_v42, 2  ;;  %v691_v30 = vrot.slane %v690_v25, 2  ;;  %v753_v56 = vpop.permute.xlu2 %752 }
 0x20e   :  { %v754_v13 = vrot.slane %v753_v56, 2 }
 0x20f   :  { %v656_v46 = vsel %vm149_vm1, %v654_v42, %v655_v20  ;;  %v692_v54 = vsel %vm259_vm3, %v690_v25, %v691_v30  ;;  %vm814_vm1 = vcmask 123904  }
 0x210   :  { %v658_v47 = vadd.f32 %v656_v46, %v649_v32  ;;  %v755_v41 = vsel %vm479_vm15, %v753_v56, %v754_v13  ;;  %v960_v46 = vld [vmem:[%s4143_s6] sm:$0xff]  ;;  %s3050_s6 = smov 57  }
 0x211   :  { %1041 = vmatpush.msra.mxu0 %v960_v46  ;;  %2808 = vmatpush.msra.mxu1 %v960_v46  ;;  %v3672_v56 = vld [vmem:[%s4144_s7] sm:$0xff] }
 0x212   :  { %v667_v45 = vadd.f32 %v665_v49, %v658_v47  ;;  %2809 = vmatpush.msra.mxu2 %v960_v46  ;;  %2810 = vmatpush.msra.mxu3 %v960_v46 }
 0x214   :  { %v676_v31 = vadd.f32 %v674_v63, %v667_v45  ;;  %v708_v52 = vpop.permute.xlu0 %707  ;;  %v717_v2 = vpop.permute.xlu1 %716 }
 0x215   :  { %v709_v35 = vrot.slane %v708_v52, 2  ;;  %v718_v1 = vrot.slane %v717_v2, 2  ;;  %v780_v5 = vpop.permute.xlu2 %779 }
 0x216   :  { %v685_v53 = vadd.f32 %v683_v58, %v676_v31  ;;  %v781_v15 = vrot.slane %v780_v5, 2 }
 0x217   :  { %v710_v16 = vsel %vm314_vm4, %v708_v52, %v709_v35  ;;  %v719_v12 = vsel %vm369_vm5, %v717_v2, %v718_v1  ;;  %v3648_v35 = vld [vmem:[%s4144_s7 + $0x18] sm:$0xff] }
 0x218   :  { %v694_v27 = vadd.f32 %v692_v54, %v685_v53  ;;  %v782_v10 = vsel %vm534_vm9, %v780_v5, %v781_v15  ;;  %1147 = vmatpush.msrb.mxu1 %v3648_v35  ;;  %1226 = vmatpush.msrb.mxu2 %v3648_v35 }
 0x219   :  { %1304 = vmatpush.msrb.mxu3 %v3648_v35 }
 0x21a   :  { %v703_v11 = vadd.f32 %v701_v55, %v694_v27  ;;  %v3653_v27 = vld [vmem:[%s4144_s7 + $0x10] sm:$0xff]  ;;  %v3664_v55 = vld [vmem:[%s4144_s7 + $0x8] sm:$0xff] }
 0x21b   :  { %1148 = vmatpush.msrb.mxu1 %v3653_v27  ;;  %1227 = vmatpush.msrb.mxu2 %v3653_v27 }
 0x21c   :  { %v712_v59 = vadd.f32 %v710_v16, %v703_v11  ;;  %v735_v38 = vpop.permute.xlu0 %734  ;;  %v744_v9 = vpop.permute.xlu1 %743  ;;  %1305 = vmatpush.msrb.mxu3 %v3653_v27 }
 0x21d   :  { %v736_v26 = vrot.slane %v735_v38, 2  ;;  %v745_v57 = vrot.slane %v744_v9, 2  ;;  %1149 = vmatpush.msrb.mxu1 %v3664_v55  ;;  %1228 = vmatpush.msrb.mxu2 %v3664_v55 }
 0x21e   :  { %v721_v60 = vadd.f32 %v719_v12, %v712_v59  ;;  %1306 = vmatpush.msrb.mxu3 %v3664_v55 }
 0x21f   :  { %v737_v0 = vsel %vm424_vm6, %v735_v38, %v736_v26  ;;  %v746_v51 = vsel %vm424_vm6, %v744_v9, %v745_v57  ;;  %1150 = vmatpush.msrb.mxu1 %v3672_v56  ;;  %1229 = vmatpush.msrb.mxu2 %v3672_v56  ;;  %v3690_v9 = vld [vmem:[%s4145_s8] ss:$0 sm:$0xff]  ;;  %vm900_vm6 = vcmask 23552  }
 0x220   :  { %v730_v62 = vadd.f32 %v728_v61, %v721_v60  ;;  %1307 = vmatpush.msrb.mxu3 %v3672_v56 }
 0x222   :  { %v739_v24 = vadd.f32 %v737_v0, %v730_v62 }
 0x224   :  { %v748_v33 = vadd.f32 %v746_v51, %v739_v24  ;;  %v762_v36 = vpop.permute.xlu0 %761  ;;  %v771_v37 = vpop.permute.xlu1 %770 }
 0x225   :  { %v763_v7 = vrot.slane %v762_v36, 2  ;;  %v772_v4 = vrot.slane %v771_v37, 2 }
 0x226   :  { %v757_v14 = vadd.f32 %v755_v41, %v748_v33 }
 0x227   :  { %v764_v17 = vsel %vm479_vm15, %v762_v36, %v763_v7  ;;  %v773_v40 = vsel %vm534_vm9, %v771_v37, %v772_v4 }
 0x228   :  { %v766_v18 = vadd.f32 %v764_v17, %v757_v14 }
 0x22a   :  { %v775_v19 = vadd.f32 %v773_v40, %v766_v18 }
 0x22c   :  { %v784_v50 = vadd.f32 %v782_v10, %v775_v19 }
 0x22e   :  { %v3540_v22 = vadd.f32 %v785_v29, %v784_v50 }
 0x230   :  { %809 = vst [vmem:[#allocation1] ss:$4 sm:$0xff] %v3540_v22 }
 0x237   :  { %v810_v3 = vld.sshfl [vmem:[#allocation1] sm:$0xff pattern:$0x73625140] }
 0x238   :  { %811 = vrot.lane.b32.xlu2 %v810_v3, %s3043_s29  ;;  %816 = vst [vmem:[#allocation1] ss:$4 sm:$0xff] %v3540_v22  ;;  %s3063_s29 = smov 55  }
 0x23f   :  { %v3545_v6 = vld.sshfl [vmem:[#allocation1] sm:$0xff pattern:$0x73625140] }
 0x240   :  { %822 = vst [vmem:[#allocation1] ss:$4 sm:$0xff] %v3540_v22 }
 0x247   :  { %v3548_v23 = vld.sshfl [vmem:[#allocation1] sm:$0xff pattern:$0x73625140] }
 0x248   :  { %828 = vst [vmem:[#allocation1] ss:$4 sm:$0xff] %v3540_v22 }
 0x24f   :  { %v3551_v28 = vld.sshfl [vmem:[#allocation1] sm:$0xff pattern:$0x73625140] }
 0x250   :  { %834 = vst [vmem:[#allocation1] ss:$4 sm:$0xff] %v3540_v22 }
 0x257   :  { %v3554_v42 = vld.sshfl [vmem:[#allocation1] sm:$0xff pattern:$0x73625140] }
 0x258   :  { %840 = vst [vmem:[#allocation1] ss:$4 sm:$0xff] %v3540_v22 }
 0x25f   :  { %v3557_v25 = vld.sshfl [vmem:[#allocation1] sm:$0xff pattern:$0x73625140] }
 0x260   :  { %846 = vst [vmem:[#allocation1] ss:$4 sm:$0xff] %v3540_v22 }
 0x267   :  { %v3560_v21 = vld.sshfl [vmem:[#allocation1] sm:$0xff pattern:$0x73625140]  ;;  %v3562_v20 = vld.sshfl [vmem:[#allocation1 + $0x8] sm:$0xff pattern:$0x73625140] }
 0x268   :  { %857 = vst [vmem:[#allocation1] ss:$4 sm:$0xff] %v3540_v22 }
 0x26f   :  { %v3565_v32 = vld.sshfl [vmem:[#allocation1 + $0x8] sm:$0xff pattern:$0x73625140] }
 0x270   :  { %863 = vst [vmem:[#allocation1] ss:$4 sm:$0xff] %v3540_v22 }
 0x277   :  { %v3583_v44 = vld.sshfl [vmem:[#allocation1 + $0x8] sm:$0xff pattern:$0x73625140] }
 0x278   :  { %869 = vst [vmem:[#allocation1] ss:$4 sm:$0xff] %v3540_v22 }
 0x27f   :  { %v3603_v47 = vld.sshfl [vmem:[#allocation1 + $0x8] sm:$0xff pattern:$0x73625140] }
 0x280   :  { %875 = vst [vmem:[#allocation1] ss:$4 sm:$0xff] %v3540_v22 }
 0x287   :  { %v876_v48 = vld.sshfl [vmem:[#allocation1 + $0x8] sm:$0xff pattern:$0x73625140] }
 0x288   :  { %877 = vrot.lane.b32.xlu0 %v876_v48, %s3050_s6  ;;  %881 = vst [vmem:[#allocation1] ss:$4 sm:$0xff] %v3540_v22  ;;  %s3067_s6 = smov 93  }
 0x28f   :  { %v882_v49 = vld.sshfl [vmem:[#allocation1 + $0x8] sm:$0xff pattern:$0x73625140] }
 0x290   :  { %883 = vrot.lane.b32.xlu1 %v882_v49, %s3051_s15  ;;  %887 = vst [vmem:[#allocation1] ss:$4 sm:$0xff] %v3540_v22 }
 0x292   :  { %v812_v45 = vpop.permute.xlu2 %811 }
 0x293   :  { %815 = vst.msk [vmem:[#allocation3] sm:$0x3] %vm814_vm1, %v812_v45 }
 0x297   :  { %v888_v63 = vld.sshfl [vmem:[#allocation1 + $0x8] sm:$0xff pattern:$0x73625140] }
 0x298   :  { %889 = vrot.lane.b32.xlu0 %v888_v63, %s3052_s16  ;;  %893 = vst [vmem:[#allocation1] ss:$4 sm:$0xff] %v3540_v22 }
 0x29a   :  { %v940_v30 = vld [vmem:[#allocation3] sm:$0xff] }
 0x29b   :  { %2746 = vmatmul.msk.f32.vlgmr.msra.gmra.mxu0 %vm787_vm0, %v940_v30 }
 0x29f   :  { %v3625_v31 = vld.sshfl [vmem:[#allocation1 + $0x8] sm:$0xff pattern:$0x73625140]  ;;  %v3627_v52 = vld.sshfl [vmem:[#allocation1 + $0x10] sm:$0xff pattern:$0x73625140] }
 0x2a0   :  { %904 = vst [vmem:[#allocation1] ss:$4 sm:$0xff] %v3540_v22 }
 0x2a7   :  { %v3630_v2 = vld.sshfl [vmem:[#allocation1 + $0x10] sm:$0xff pattern:$0x73625140] }
 0x2a8   :  { %910 = vst [vmem:[#allocation1] ss:$4 sm:$0xff] %v3540_v22 }
 0x2af   :  { %v3633_v43 = vld.sshfl [vmem:[#allocation1 + $0x10] sm:$0xff pattern:$0x73625140] }
 0x2b0   :  { %916 = vst [vmem:[#allocation1] ss:$4 sm:$0xff] %v3540_v22 }
 0x2b7   :  { %v3636_v58 = vld.sshfl [vmem:[#allocation1 + $0x10] sm:$0xff pattern:$0x73625140] }
 0x2b8   :  { %922 = vst [vmem:[#allocation1] ss:$4 sm:$0xff] %v3540_v22 }
 0x2bf   :  { %v3639_v53 = vld.sshfl [vmem:[#allocation1 + $0x10] sm:$0xff pattern:$0x73625140] }
 0x2c0   :  { %928 = vst [vmem:[#allocation1] ss:$4 sm:$0xff] %v3540_v22 }
 0x2c7   :  { %v3642_v54 = vld.sshfl [vmem:[#allocation1 + $0x10] sm:$0xff pattern:$0x73625140] }
 0x2c8   :  { %934 = vst [vmem:[#allocation1] ss:$4 sm:$0xff] %v3540_v22 }
 0x2fa   :  { %v878_v1 = vpop.permute.xlu0 %877 }
 0x2fb   :  { %880 = vst.msk [vmem:[#allocation3 + $0x50] sm:$0x3] %vm814_vm1, %v878_v1 }
 0x302   :  { %v884_v11 = vpop.permute.xlu1 %883  ;;  %v950_v34 = vld [vmem:[#allocation3 + $0x50] sm:$0xff] }
 0x303   :  { %886 = vst.msk [vmem:[#allocation3 + $0x58] sm:$0x3] %vm814_vm1, %v884_v11  ;;  %2756 = vmatmul.msk.f32.vlgmr.msra.gmra.mxu1 %vm787_vm0, %v950_v34 }
 0x304   :  { %1382 = vmatpush.msra.mxu1 %v3648_v35 }
 0x306   :  { %1383 = vmatpush.msra.mxu1 %v3653_v27 }
 0x308   :  { %1384 = vmatpush.msra.mxu1 %v3664_v55 }
 0x30a   :  { %v890_v16 = vpop.permute.xlu0 %889  ;;  %v951_v59 = vld [vmem:[#allocation3 + $0x58] sm:$0xff]  ;;  %1385 = vmatpush.msra.mxu1 %v3672_v56 }
 0x30b   :  { %892 = vst.msk [vmem:[#allocation3 + $0x60] sm:$0x3] %vm814_vm1, %v890_v16  ;;  %2757 = vmatmul.msk.f32.gmra.mxu1 %vm787_vm0, %v951_v59 }
 0x312   :  { %v952_v38 = vld [vmem:[#allocation3 + $0x60] sm:$0xff] }
 0x313   :  { %2758 = vmatmul.msk.f32.gmra.mxu1 %vm787_vm0, %v952_v38 }
 0x318   :  { %v1043_v12 = vpop.f32.mrf.mxu0 }
 0x319   :  { %v1044_v26 = vadd.f32 %v3690_v9, %v1043_v12 }
 0x31b   :  { %1103 = vst [vmem:[#allocation4] sm:$0xff] %v1044_v26  ;;  %1151 = vmatmul.f32.vlgmr.msrb.gmra.mxu1 %v3048_v8 }
 0x31c   :  { %1616 = vmatpush.msrb.mxu1 %v3648_v35 }
 0x31e   :  { %1617 = vmatpush.msrb.mxu1 %v3653_v27 }
 0x320   :  { %1618 = vmatpush.msrb.mxu1 %v3664_v55 }
 0x322   :  { %1619 = vmatpush.msrb.mxu1 %v3672_v56  ;;  %v1130_v8 = vld [vmem:[#allocation4] sm:$0x3] }
 0x380   :  { %v1073_v60 = vpop.f32.mrf.mxu1 }
 0x381   :  { %v1074_v61 = vadd.f32 %v3690_v9, %v1073_v60 }
 0x383   :  { %1113 = vst [vmem:[#allocation4 + $0x28] sm:$0xff] %v1074_v61 }
 0x388   :  { %v1076_v57 = vpop.f32.mrf.mxu1 }
 0x389   :  { %v1077_v62 = vadd.f32 %v3690_v9, %v1076_v57 }
 0x38b   :  { %1114 = vst [vmem:[#allocation4 + $0x40] sm:$0xff] %v1077_v62 }
 0x390   :  { %v1079_v13 = vpop.f32.mrf.mxu1 }
 0x391   :  { %v1080_v0 = vadd.f32 %v3690_v9, %v1079_v13 }
 0x393   :  { %1115 = vst [vmem:[#allocation4 + $0x58] sm:$0xff] %v1080_v0 }
 0x398   :  { %v1152_v24 = vpop.f32.mrf.mxu1 }
 0x399   :  { %v1155_v5 = vadd.f32 %v1152_v24, %v1130_v8  ;;  %v935_v24 = vld.sshfl [vmem:[#allocation1 + $0x10] sm:$0xff pattern:$0x73625140] }
 0x39b   :  { %2845 = vtanh.f32 %v1155_v5  ;;  %v2766_v33 = vmul.f32 -1.442695, %v1155_v5 }
 0x39d   :  { %2847 = vpow2.f32 %v2766_v33 }
 0x3a1   :  { %v2846_v51 = vpop.eup %2845 }
 0x3a2   :  { %1178 = vrot.lane.b32.xlu1 %v2846_v51, %s3053_s30 }
 0x3a3   :  { %v2848_v36 = vpop.eup %2847 }
 0x3a4   :  { %v1159_v37 = vadd.f32 1.0, %v2848_v36 }
 0x3a6   :  { %2849 = vrcp.f32 %v1159_v37  ;;  %v1171_v17 = vand.u32 2147483648, %v1159_v37  ;;  %vm1165_vm3 = vweird.f32 %v1159_v37  ;;  %v1169_v18 = vand.u32 2147483647, %v1159_v37 }
 0x3a8   :  { %v1172_v19 = vor.u32 1.1754944e-38, %v1171_v17  ;;  %vm1170_vm5 = vcmp.eq.f32.partialorder %v1169_v18, 8.507059e+37 }
 0x3aa   :  { %896 = vrot.lane.b32.xlu1 %v3625_v31, %s3054_s4 }
 0x3ac   :  { %v2850_v41 = vpop.eup %2849 }
 0x3ad   :  { %v1161_v7 = vmul.f32 %v2850_v41, %v1159_v37  ;;  %vm1166_vm2 = vweird.f32 %v2850_v41 }
 0x3ae   :  { %vm1167_vm4 = vmor %vm1165_vm3, %vm1166_vm2 }
 0x3af   :  { %v1162_v4 = vsub.f32 1.0, %v1161_v7 }
 0x3b1   :  { %v1163_v14 = vmul.f32 %v2850_v41, %v1162_v4 }
 0x3b2   :  { %912 = vrot.lane.b32.xlu1 %v3633_v43, %s3055_s14 }
 0x3b3   :  { %v1164_v15 = vadd.f32 %v2850_v41, %v1163_v14 }
 0x3b5   :  { %v1168_v40 = vsel %vm1167_vm4, %v2850_v41, %v1164_v15 }
 0x3b6   :  { %v1173_v29 = vsel %vm1170_vm5, %v1172_v19, %v1168_v40 }
 0x3b7   :  { %v1176_v39 = vmul.f32 0.0, %v1173_v29 }
 0x414   :  { %v1179_v10 = vpop.permute.xlu1 %1178 }
 0x415   :  { %v1181_v50 = vmul.f32 %v1179_v10, %v1173_v29 }
 0x417   :  { %1183 = vrot.lane.b32.xlu2 %v1181_v50, %s3056_s10 }
 0x41c   :  { %v897_v22 = vpop.permute.xlu1 %896 }
 0x41f   :  { %898 = vrot.lane.b32.xlu2 %v3627_v52, %s3054_s4 }
 0x424   :  { %v913_v3 = vpop.permute.xlu1 %912 }
 0x425   :  { %915 = vst.msk [vmem:[#allocation3 + $0x78] sm:$0x3] %vm814_vm1, %v913_v3 }
 0x427   :  { %818 = vrot.lane.b32.xlu2 %v3545_v6, %s3046_s22  ;;  %s3057_s22 = smov 113  }
 0x42c   :  { %v955_v11 = vld [vmem:[#allocation3 + $0x78] sm:$0xff] }
 0x471   :  { %v1184_v46 = vpop.permute.xlu2 %1183 }
 0x472   :  { %v3709_v48 = vadd.f32 %v1184_v46, %v1176_v39 }
 0x474   :  { %2851 = vtanh.f32 %v3709_v48 }
 0x479   :  { %v899_v49 = vpop.permute.xlu2 %898 }
 0x47a   :  { %v2852_v45 = vpop.eup %2851  ;;  %v901_v63 = vsel %vm900_vm6, %v897_v22, %v899_v49 }
 0x47b   :  { %903 = vst.msk [vmem:[#allocation3 + $0x68] sm:$0x3] %vm814_vm1, %v901_v63  ;;  %1189 = vrot.lane.b32.xlu0 %v2852_v45, %s3053_s30 }
 0x481   :  { %v819_v30 = vpop.permute.xlu2 %818 }
 0x482   :  { %821 = vst.msk [vmem:[#allocation3 + $0x8] sm:$0x3] %vm814_vm1, %v819_v30  ;;  %v953_v31 = vld [vmem:[#allocation3 + $0x68] sm:$0xff] }
 0x483   :  { %2759 = vmatmul.msk.f32.vlgmr.msra.gmra.mxu2 %vm787_vm0, %v953_v31  ;;  %906 = vrot.lane.b32.xlu0 %v3630_v2, %s3057_s22 }
 0x484   :  { %1460 = vmatpush.msra.mxu2 %v3648_v35 }
 0x486   :  { %1461 = vmatpush.msra.mxu2 %v3653_v27 }
 0x488   :  { %1462 = vmatpush.msra.mxu2 %v3664_v55 }
 0x489   :  { %v941_v6 = vld [vmem:[#allocation3 + $0x8] sm:$0xff] }
 0x48a   :  { %2747 = vmatmul.msk.f32.gmra.mxu0 %vm787_vm0, %v941_v6  ;;  %1463 = vmatpush.msra.mxu2 %v3672_v56 }
 0x4ed   :  { %v1190_v52 = vpop.permute.xlu0 %1189 }
 0x4ee   :  { %v3722_v43 = vmul.f32 %v1190_v52, %v1173_v29 }
 0x4f0   :  { %1210 = vrot.lane.b32.xlu0 %v3722_v43, %s3056_s10 }
 0x4f5   :  { %v907_v1 = vpop.permute.xlu0 %906 }
 0x4f6   :  { %909 = vst.msk [vmem:[#allocation3 + $0x70] sm:$0x3] %vm814_vm1, %v907_v1 }
 0x4fd   :  { %v954_v2 = vld [vmem:[#allocation3 + $0x70] sm:$0xff] }
 0x4fe   :  { %2760 = vmatmul.msk.f32.gmra.mxu2 %vm787_vm0, %v954_v2 }
 0x506   :  { %v1082_v34 = vpop.f32.mrf.mxu2  ;;  %2761 = vmatmul.msk.f32.gmra.mxu2 %vm787_vm0, %v955_v11 }
 0x507   :  { %v1083_v16 = vadd.f32 %v3690_v9, %v1082_v34  ;;  %v1046_v59 = vpop.f32.mrf.mxu0 }
 0x508   :  { %v1047_v38 = vadd.f32 %v3690_v9, %v1046_v59 }
 0x509   :  { %1116 = vst [vmem:[#allocation4 + $0x10] sm:$0xff] %v1083_v16 }
 0x50a   :  { %1104 = vst [vmem:[#allocation4 + $0x38] sm:$0xff] %v1047_v38 }
 0x511   :  { %v1208_v62 = vld [vmem:[#allocation4 + $0x38] sm:$0x3] }
 0x562   :  { %v1211_v12 = vpop.permute.xlu0 %1210 }
 0x563   :  { %2767 = vmatmul.msk.f32.vlgmr.msrb.gmra.mxu2 %vm1131_vm8, %v1211_v12 }
 0x564   :  { %1694 = vmatpush.msrb.mxu2 %v3648_v35 }
 0x566   :  { %1695 = vmatpush.msrb.mxu2 %v3653_v27 }
 0x568   :  { %1696 = vmatpush.msrb.mxu2 %v3664_v55 }
 0x56a   :  { %1697 = vmatpush.msrb.mxu2 %v3672_v56 }
 0x581   :  { %v1085_v26 = vpop.f32.mrf.mxu2 }
 0x582   :  { %v1086_v60 = vadd.f32 %v3690_v9, %v1085_v26 }
 0x584   :  { %1117 = vst [vmem:[#allocation4 + $0x98] sm:$0xff] %v1086_v60 }
 0x589   :  { %v1088_v61 = vpop.f32.mrf.mxu2 }
 0x58a   :  { %v1089_v57 = vadd.f32 %v3690_v9, %v1088_v61 }
 0x58c   :  { %1118 = vst [vmem:[#allocation4 + $0x60] sm:$0xff] %v1089_v57 }
 0x5e6   :  { %v1231_v13 = vpop.f32.mrf.mxu2 }
 0x5e7   :  { %v1234_v0 = vadd.f32 %v1231_v13, %v1208_v62 }
 0x5e9   :  { %2853 = vtanh.f32 %v1234_v0  ;;  %v2768_v5 = vmul.f32 -1.442695, %v1234_v0 }
 0x5eb   :  { %2855 = vpow2.f32 %v2768_v5 }
 0x5ef   :  { %v2854_v8 = vpop.eup %2853 }
 0x5f0   :  { %1257 = vrot.lane.b32.xlu1 %v2854_v8, %s3053_s30 }
 0x5f1   :  { %v2856_v51 = vpop.eup %2855 }
 0x5f2   :  { %v1238_v33 = vadd.f32 1.0, %v2856_v51 }
 0x5f4   :  { %2857 = vrcp.f32 %v1238_v33  ;;  %v1250_v14 = vand.u32 2147483648, %v1238_v33  ;;  %vm1244_vm13 = vweird.f32 %v1238_v33  ;;  %v1248_v15 = vand.u32 2147483647, %v1238_v33 }
 0x5f6   :  { %vm1249_vm10 = vcmp.eq.f32.partialorder %v1248_v15, 8.507059e+37 }
 0x5f8   :  { %918 = vrot.lane.b32.xlu1 %v3636_v58, %s3058_s1  ;;  %v1251_v58 = vor.u32 1.1754944e-38, %v1250_v14 }
 0x5fa   :  { %v2858_v36 = vpop.eup %2857 }
 0x5fb   :  { %v1240_v37 = vmul.f32 %v2858_v36, %v1238_v33  ;;  %vm1245_vm11 = vweird.f32 %v2858_v36 }
 0x5fc   :  { %vm1246_vm15 = vmor %vm1244_vm13, %vm1245_vm11 }
 0x5fd   :  { %v1241_v41 = vsub.f32 1.0, %v1240_v37 }
 0x5ff   :  { %v1242_v7 = vmul.f32 %v2858_v36, %v1241_v41 }
 0x600   :  { %936 = vrot.lane.b32.xlu1 %v935_v24, %s3059_s12 }
 0x601   :  { %v1243_v4 = vadd.f32 %v2858_v36, %v1242_v7 }
 0x603   :  { %v1247_v17 = vsel %vm1246_vm15, %v2858_v36, %v1243_v4 }
 0x604   :  { %v1252_v40 = vsel %vm1249_vm10, %v1251_v58, %v1247_v17 }
 0x605   :  { %v1255_v22 = vmul.f32 %v1252_v40, %v3709_v48 }
 0x662   :  { %v1258_v18 = vpop.permute.xlu1 %1257 }
 0x663   :  { %v1260_v19 = vmul.f32 %v1258_v18, %v1252_v40 }
 0x665   :  { %1262 = vrot.lane.b32.xlu2 %v1260_v19, %s3056_s10 }
 0x66a   :  { %v919_v10 = vpop.permute.xlu1 %918 }
 0x66b   :  { %921 = vst.msk [vmem:[#allocation3 + $0x80] sm:$0x3] %vm814_vm1, %v919_v10 }
 0x66d   :  { %924 = vrot.lane.b32.xlu2 %v3639_v53, %s3060_s0 }
 0x672   :  { %v937_v29 = vpop.permute.xlu1 %936  ;;  %v956_v50 = vld [vmem:[#allocation3 + $0x80] sm:$0xff] }
 0x673   :  { %939 = vst.msk [vmem:[#allocation3 + $0x98] sm:$0x3] %vm814_vm1, %v937_v29  ;;  %2762 = vmatmul.msk.f32.vlgmr.msra.gmra.mxu3 %vm787_vm0, %v956_v50 }
 0x674   :  { %1538 = vmatpush.msra.mxu3 %v3648_v35 }
 0x675   :  { %824 = vrot.lane.b32.xlu2 %v3548_v23, %s3061_s13 }
 0x676   :  { %1539 = vmatpush.msra.mxu3 %v3653_v27 }
 0x678   :  { %1540 = vmatpush.msra.mxu3 %v3664_v55 }
 0x67a   :  { %1541 = vmatpush.msra.mxu3 %v3672_v56  ;;  %v959_v1 = vld [vmem:[#allocation3 + $0x98] sm:$0xff] }
 0x6bf   :  { %v1263_v53 = vpop.permute.xlu2 %1262 }
 0x6c0   :  { %v3751_v3 = vadd.f32 %v1263_v53, %v1255_v22 }
 0x6c2   :  { %2859 = vtanh.f32 %v3751_v3 }
 0x6c7   :  { %v925_v39 = vpop.permute.xlu2 %924 }
 0x6c8   :  { %v2860_v46 = vpop.eup %2859  ;;  %927 = vst.msk [vmem:[#allocation3 + $0x88] sm:$0x3] %vm814_vm1, %v925_v39 }
 0x6c9   :  { %1268 = vrot.lane.b32.xlu0 %v2860_v46, %s3053_s30 }
 0x6cf   :  { %v825_v23 = vpop.permute.xlu2 %824  ;;  %v957_v49 = vld [vmem:[#allocation3 + $0x88] sm:$0xff] }
 0x6d0   :  { %827 = vst.msk [vmem:[#allocation3 + $0x10] sm:$0x3] %vm814_vm1, %v825_v23  ;;  %2763 = vmatmul.msk.f32.gmra.mxu3 %vm787_vm0, %v957_v49 }
 0x6d1   :  { %930 = vrot.lane.b32.xlu0 %v3642_v54, %s3062_s5 }
 0x6d7   :  { %v942_v48 = vld [vmem:[#allocation3 + $0x10] sm:$0xff] }
 0x6d8   :  { %2748 = vmatmul.msk.f32.gmra.mxu0 %vm787_vm0, %v942_v48 }
 0x6f6   :  { %v1091_v45 = vpop.f32.mrf.mxu3 }
 0x6f7   :  { %v1092_v63 = vadd.f32 %v3690_v9, %v1091_v45 }
 0x6f9   :  { %1119 = vst [vmem:[#allocation4 + $0x20] sm:$0xff] %v1092_v63 }
 0x73b   :  { %v1269_v30 = vpop.permute.xlu0 %1268 }
 0x73c   :  { %v3761_v31 = vmul.f32 %v1269_v30, %v1252_v40 }
 0x73e   :  { %1288 = vrot.lane.b32.xlu0 %v3761_v31, %s3056_s10 }
 0x743   :  { %v931_v6 = vpop.permute.xlu0 %930 }
 0x744   :  { %933 = vst.msk [vmem:[#allocation3 + $0x90] sm:$0x3] %vm814_vm1, %v931_v6 }
 0x74b   :  { %v958_v52 = vld [vmem:[#allocation3 + $0x90] sm:$0xff] }
 0x74c   :  { %2764 = vmatmul.msk.f32.gmra.mxu3 %vm787_vm0, %v958_v52 }
 0x753   :  { %v1094_v54 = vpop.f32.mrf.mxu3 }
 0x754   :  { %v1095_v2 = vadd.f32 %v3690_v9, %v1094_v54  ;;  %2765 = vmatmul.msk.f32.gmra.mxu3 %vm787_vm0, %v959_v1 }
 0x755   :  { %v1049_v11 = vpop.f32.mrf.mxu0 }
 0x756   :  { %1120 = vst [vmem:[#allocation4 + $0x48] sm:$0xff] %v1095_v2  ;;  %v1050_v34 = vadd.f32 %v3690_v9, %v1049_v11 }
 0x758   :  { %1105 = vst [vmem:[#allocation4 + $0x50] sm:$0xff] %v1050_v34 }
 0x75f   :  { %v1286_v60 = vld [vmem:[#allocation4 + $0x50] sm:$0x3] }
 0x7b0   :  { %v1289_v16 = vpop.permute.xlu0 %1288 }
 0x7b1   :  { %2769 = vmatmul.msk.f32.vlgmr.msrb.gmra.mxu3 %vm1131_vm8, %v1289_v16 }
 0x7b2   :  { %1772 = vmatpush.msrb.mxu3 %v3648_v35 }
 0x7b4   :  { %1773 = vmatpush.msrb.mxu3 %v3653_v27 }
 0x7b6   :  { %1774 = vmatpush.msrb.mxu3 %v3664_v55 }
 0x7b8   :  { %1775 = vmatpush.msrb.mxu3 %v3672_v56 }
 0x7cf   :  { %v1097_v59 = vpop.f32.mrf.mxu3 }
 0x7d0   :  { %v1098_v38 = vadd.f32 %v3690_v9, %v1097_v59 }
 0x7d2   :  { %1121 = vst [vmem:[#allocation4 + $0x70] sm:$0xff] %v1098_v38 }
 0x7d7   :  { %v1100_v12 = vpop.f32.mrf.mxu3 }
 0x7d8   :  { %v1101_v26 = vadd.f32 %v3690_v9, %v1100_v12 }
 0x7da   :  { %1122 = vst [vmem:[#allocation4 + $0x90] sm:$0xff] %v1101_v26 }
 0x834   :  { %v1309_v61 = vpop.f32.mrf.mxu3 }
 0x835   :  { %v1312_v57 = vadd.f32 %v1309_v61, %v1286_v60 }
 0x837   :  { %2861 = vtanh.f32 %v1312_v57  ;;  %v2770_v13 = vmul.f32 -1.442695, %v1312_v57 }
 0x839   :  { %2863 = vpow2.f32 %v2770_v13 }
 0x83d   :  { %v2862_v62 = vpop.eup %2861 }
 0x83e   :  { %1335 = vrot.lane.b32.xlu1 %v2862_v62, %s3053_s30 }
 0x83f   :  { %v2864_v0 = vpop.eup %2863 }
 0x840   :  { %v1316_v8 = vadd.f32 1.0, %v2864_v0 }
 0x842   :  { %2865 = vrcp.f32 %v1316_v8  ;;  %v1328_v37 = vand.u32 2147483648, %v1316_v8  ;;  %vm1322_vm12 = vweird.f32 %v1316_v8  ;;  %v1326_v41 = vand.u32 2147483647, %v1316_v8 }
 0x844   :  { %v1329_v4 = vor.u32 1.1754944e-38, %v1328_v37  ;;  %vm1327_vm7 = vcmp.eq.f32.partialorder %v1326_v41, 8.507059e+37 }
 0x846   :  { %830 = vrot.lane.b32.xlu1 %v3551_v28, %s3063_s29 }
 0x848   :  { %v2866_v24 = vpop.eup %2865 }
 0x849   :  { %v1318_v5 = vmul.f32 %v2866_v24, %v1316_v8  ;;  %vm1323_vm9 = vweird.f32 %v2866_v24 }
 0x84a   :  { %vm1324_vm14 = vmor %vm1322_vm12, %vm1323_vm9 }
 0x84b   :  { %v1319_v51 = vsub.f32 1.0, %v1318_v5 }
 0x84d   :  { %v1320_v33 = vmul.f32 %v2866_v24, %v1319_v51 }
 0x84f   :  { %v1321_v36 = vadd.f32 %v2866_v24, %v1320_v33 }
 0x851   :  { %v1325_v7 = vsel %vm1324_vm14, %v2866_v24, %v1321_v36 }
 0x852   :  { %v1330_v28 = vsel %vm1327_vm7, %v1329_v4, %v1325_v7  ;;  %vm853_vm7 = vcmask 7168  }
 0x853   :  { %v1333_v18 = vmul.f32 %v1330_v28, %v3751_v3 }
 0x8b0   :  { %v1336_v14 = vpop.permute.xlu1 %1335 }
 0x8b1   :  { %v1338_v15 = vmul.f32 %v1336_v14, %v1330_v28 }
 0x8b3   :  { %1340 = vrot.lane.b32.xlu2 %v1338_v15, %s3056_s10 }
 0x8b8   :  { %v831_v17 = vpop.permute.xlu1 %830 }
 0x8b9   :  { %833 = vst.msk [vmem:[#allocation3 + $0x18] sm:$0x3] %vm814_vm1, %v831_v17 }
 0x8c0   :  { %v943_v58 = vld [vmem:[#allocation3 + $0x18] sm:$0xff] }
 0x8c1   :  { %2749 = vmatmul.msk.f32.gmra.mxu0 %vm787_vm0, %v943_v58 }
 0x90d   :  { %v1341_v40 = vpop.permute.xlu2 %1340 }
 0x90e   :  { %v1343_v19 = vadd.f32 %v1341_v40, %v1333_v18 }
 0x910   :  { %2867 = vtanh.f32 %v1343_v19 }
 0x916   :  { %v2868_v10 = vpop.eup %2867 }
 0x917   :  { %1346 = vrot.lane.b32.xlu0 %v2868_v10, %s3053_s30 }
 0x93e   :  { %v1052_v29 = vpop.f32.mrf.mxu0 }
 0x93f   :  { %v1053_v50 = vadd.f32 %v3690_v9, %v1052_v29 }
 0x941   :  { %1106 = vst [vmem:[#allocation4 + $0x18] sm:$0xff] %v1053_v50 }
 0x948   :  { %v1364_v3 = vld [vmem:[#allocation4 + $0x18] sm:$0x3] }
 0x989   :  { %v1347_v22 = vpop.permute.xlu0 %1346 }
 0x98a   :  { %v3785_v53 = vmul.f32 %v1347_v22, %v1330_v28 }
 0x98c   :  { %1366 = vrot.lane.b32.xlu2 %v3785_v53, %s3056_s10 }
 0x9e6   :  { %v1367_v39 = vpop.permute.xlu2 %1366 }
 0x9e7   :  { %2771 = vmatmul.msk.f32.vlgmr.msra.gmra.mxu1 %vm1131_vm8, %v1367_v39 }
 0x9e8   :  { %1850 = vmatpush.msra.mxu1 %v3648_v35 }
 0x9ea   :  { %1851 = vmatpush.msra.mxu1 %v3653_v27 }
 0x9ec   :  { %1852 = vmatpush.msra.mxu1 %v3664_v55 }
 0x9ee   :  { %1853 = vmatpush.msra.mxu1 %v3672_v56 }
 0xa64   :  { %v1387_v46 = vpop.f32.mrf.mxu1 }
 0xa65   :  { %v1390_v23 = vadd.f32 %v1387_v46, %v1364_v3 }
 0xa67   :  { %2869 = vtanh.f32 %v1390_v23  ;;  %v2772_v48 = vmul.f32 -1.442695, %v1390_v23 }
 0xa69   :  { %2871 = vpow2.f32 %v2772_v48 }
 0xa6d   :  { %v2870_v49 = vpop.eup %2869 }
 0xa6e   :  { %1413 = vrot.lane.b32.xlu0 %v2870_v49, %s3053_s30 }
 0xa6f   :  { %v2872_v45 = vpop.eup %2871 }
 0xa70   :  { %v1394_v63 = vadd.f32 1.0, %v2872_v45 }
 0xa72   :  { %2873 = vrcp.f32 %v1394_v63  ;;  %v1406_v2 = vand.u32 2147483648, %v1394_v63  ;;  %vm1400_vm3 = vweird.f32 %v1394_v63  ;;  %v1404_v11 = vand.u32 2147483647, %v1394_v63 }
 0xa74   :  { %v1407_v16 = vor.u32 1.1754944e-38, %v1406_v2  ;;  %vm1405_vm5 = vcmp.eq.f32.partialorder %v1404_v11, 8.507059e+37 }
 0xa76   :  { %836 = vrot.lane.b32.xlu0 %v3554_v42, %s3064_s18 }
 0xa78   :  { %v2874_v30 = vpop.eup %2873 }
 0xa79   :  { %v1396_v6 = vmul.f32 %v2874_v30, %v1394_v63  ;;  %vm1401_vm2 = vweird.f32 %v2874_v30 }
 0xa7a   :  { %vm1402_vm4 = vmor %vm1400_vm3, %vm1401_vm2 }
 0xa7b   :  { %v1397_v52 = vsub.f32 1.0, %v1396_v6 }
 0xa7d   :  { %v1398_v54 = vmul.f32 %v2874_v30, %v1397_v52 }
 0xa7f   :  { %v1399_v1 = vadd.f32 %v2874_v30, %v1398_v54 }
 0xa81   :  { %v1403_v34 = vsel %vm1402_vm4, %v2874_v30, %v1399_v1 }
 0xa82   :  { %v1408_v42 = vsel %vm1405_vm5, %v1407_v16, %v1403_v34 }
 0xa83   :  { %v1411_v60 = vmul.f32 %v1408_v42, %v1343_v19 }
 0xae0   :  { %v1414_v59 = vpop.permute.xlu0 %1413 }
 0xae1   :  { %v1416_v38 = vmul.f32 %v1414_v59, %v1408_v42 }
 0xae3   :  { %1418 = vrot.lane.b32.xlu1 %v1416_v38, %s3056_s10 }
 0xae8   :  { %v837_v12 = vpop.permute.xlu0 %836 }
 0xae9   :  { %839 = vst.msk [vmem:[#allocation3 + $0x20] sm:$0x3] %vm814_vm1, %v837_v12 }
 0xaf0   :  { %v944_v26 = vld [vmem:[#allocation3 + $0x20] sm:$0xff] }
 0xaf1   :  { %2750 = vmatmul.msk.f32.gmra.mxu0 %vm787_vm0, %v944_v26 }
 0xb55   :  { %v1419_v61 = vpop.permute.xlu1 %1418 }
 0xb56   :  { %v1421_v57 = vadd.f32 %v1419_v61, %v1411_v60 }
 0xb58   :  { %2875 = vtanh.f32 %v1421_v57 }
 0xb5e   :  { %v2876_v62 = vpop.eup %2875 }
 0xb5f   :  { %1424 = vrot.lane.b32.xlu2 %v2876_v62, %s3053_s30 }
 0xb6e   :  { %v1055_v13 = vpop.f32.mrf.mxu0 }
 0xb6f   :  { %v1056_v0 = vadd.f32 %v3690_v9, %v1055_v13 }
 0xb71   :  { %1107 = vst [vmem:[#allocation4 + $0x30] sm:$0xff] %v1056_v0 }
 0xb78   :  { %v1442_v51 = vld [vmem:[#allocation4 + $0x30] sm:$0x3] }
 0xbb9   :  { %v1425_v8 = vpop.permute.xlu2 %1424 }
 0xbba   :  { %v3801_v24 = vmul.f32 %v1425_v8, %v1408_v42 }
 0xbbc   :  { %1444 = vrot.lane.b32.xlu1 %v3801_v24, %s3056_s10 }
 0xc2e   :  { %v1445_v5 = vpop.permute.xlu1 %1444 }
 0xc2f   :  { %2773 = vmatmul.msk.f32.vlgmr.msra.gmra.mxu2 %vm1131_vm8, %v1445_v5 }
 0xc30   :  { %1928 = vmatpush.msra.mxu2 %v3648_v35 }
 0xc32   :  { %1929 = vmatpush.msra.mxu2 %v3653_v27 }
 0xc34   :  { %1930 = vmatpush.msra.mxu2 %v3664_v55 }
 0xc36   :  { %1931 = vmatpush.msra.mxu2 %v3672_v56 }
 0xcb2   :  { %v1465_v33 = vpop.f32.mrf.mxu2 }
 0xcb3   :  { %v1468_v36 = vadd.f32 %v1465_v33, %v1442_v51 }
 0xcb5   :  { %2877 = vtanh.f32 %v1468_v36  ;;  %v2774_v41 = vmul.f32 -1.442695, %v1468_v36 }
 0xcb7   :  { %2879 = vpow2.f32 %v2774_v41 }
 0xcbb   :  { %v2878_v37 = vpop.eup %2877 }
 0xcbc   :  { %1491 = vrot.lane.b32.xlu2 %v2878_v37, %s3053_s30 }
 0xcbd   :  { %v2880_v7 = vpop.eup %2879 }
 0xcbe   :  { %v1472_v4 = vadd.f32 1.0, %v2880_v7 }
 0xcc0   :  { %2881 = vrcp.f32 %v1472_v4  ;;  %v1484_v18 = vand.u32 2147483648, %v1472_v4  ;;  %vm1478_vm11 = vweird.f32 %v1472_v4  ;;  %v1482_v40 = vand.u32 2147483647, %v1472_v4 }
 0xcc2   :  { %v1485_v10 = vor.u32 1.1754944e-38, %v1484_v18  ;;  %vm1483_vm15 = vcmp.eq.f32.partialorder %v1482_v40, 8.507059e+37 }
 0xcc4   :  { %842 = vrot.lane.b32.xlu2 %v3557_v25, %s3049_s3  ;;  %s3065_s3 = smov 1  }
 0xcc6   :  { %v2882_v14 = vpop.eup %2881 }
 0xcc7   :  { %v1474_v28 = vmul.f32 %v2882_v14, %v1472_v4  ;;  %vm1479_vm6 = vweird.f32 %v2882_v14 }
 0xcc8   :  { %vm1480_vm13 = vmor %vm1478_vm11, %vm1479_vm6 }
 0xcc9   :  { %v1475_v15 = vsub.f32 1.0, %v1474_v28 }
 0xccb   :  { %v1476_v17 = vmul.f32 %v2882_v14, %v1475_v15 }
 0xccd   :  { %v1477_v58 = vadd.f32 %v2882_v14, %v1476_v17 }
 0xccf   :  { %v1481_v19 = vsel %vm1480_vm13, %v2882_v14, %v1477_v58 }
 0xcd0   :  { %v1486_v25 = vsel %vm1483_vm15, %v1485_v10, %v1481_v19 }
 0xcd1   :  { %v1489_v3 = vmul.f32 %v1486_v25, %v1421_v57 }
 0xd16   :  { %v1492_v29 = vpop.permute.xlu2 %1491 }
 0xd17   :  { %v1494_v50 = vmul.f32 %v1492_v29, %v1486_v25 }
 0xd19   :  { %1496 = vrot.lane.b32.xlu0 %v1494_v50, %s3056_s10 }
 0xd1e   :  { %v843_v22 = vpop.permute.xlu2 %842 }
 0xd1f   :  { %845 = vst.msk [vmem:[#allocation3 + $0x28] sm:$0x3] %vm814_vm1, %v843_v22 }
 0xd26   :  { %v945_v39 = vld [vmem:[#allocation3 + $0x28] sm:$0xff] }
 0xd27   :  { %2751 = vmatmul.msk.f32.gmra.mxu0 %vm787_vm0, %v945_v39 }
 0xd8b   :  { %v1497_v46 = vpop.permute.xlu0 %1496 }
 0xd8c   :  { %v1499_v23 = vadd.f32 %v1497_v46, %v1489_v3 }
 0xd8e   :  { %2883 = vtanh.f32 %v1499_v23 }
 0xd94   :  { %v2884_v49 = vpop.eup %2883 }
 0xd95   :  { %1502 = vrot.lane.b32.xlu1 %v2884_v49, %s3053_s30 }
 0xda4   :  { %v1058_v48 = vpop.f32.mrf.mxu0 }
 0xda5   :  { %v1059_v45 = vadd.f32 %v3690_v9, %v1058_v48 }
 0xda7   :  { %1108 = vst [vmem:[#allocation4 + $0x68] sm:$0xff] %v1059_v45 }
 0xdae   :  { %v1520_v52 = vld [vmem:[#allocation4 + $0x68] sm:$0x3] }
 0xe07   :  { %v1503_v63 = vpop.permute.xlu1 %1502 }
 0xe08   :  { %v3818_v30 = vmul.f32 %v1503_v63, %v1486_v25 }
 0xe0a   :  { %1522 = vrot.lane.b32.xlu0 %v3818_v30, %s3056_s10 }
 0xe7c   :  { %v1523_v6 = vpop.permute.xlu0 %1522 }
 0xe7d   :  { %2775 = vmatmul.msk.f32.vlgmr.msra.gmra.mxu3 %vm1131_vm8, %v1523_v6 }
 0xe7e   :  { %2006 = vmatpush.msra.mxu3 %v3648_v35 }
 0xe80   :  { %2007 = vmatpush.msra.mxu3 %v3653_v27 }
 0xe82   :  { %2008 = vmatpush.msra.mxu3 %v3664_v55 }
 0xe84   :  { %2009 = vmatpush.msra.mxu3 %v3672_v56 }
 0xf00   :  { %v1543_v54 = vpop.f32.mrf.mxu3 }
 0xf01   :  { %v1546_v1 = vadd.f32 %v1543_v54, %v1520_v52 }
 0xf03   :  { %2885 = vtanh.f32 %v1546_v1  ;;  %v2776_v11 = vmul.f32 -1.442695, %v1546_v1 }
 0xf05   :  { %2887 = vpow2.f32 %v2776_v11 }
 0xf09   :  { %v2886_v2 = vpop.eup %2885 }
 0xf0a   :  { %1569 = vrot.lane.b32.xlu1 %v2886_v2, %s3053_s30 }
 0xf0b   :  { %v2888_v34 = vpop.eup %2887 }
 0xf0c   :  { %v1550_v16 = vadd.f32 1.0, %v2888_v34 }
 0xf0e   :  { %2889 = vrcp.f32 %v1550_v16  ;;  %v1562_v60 = vand.u32 2147483648, %v1550_v16  ;;  %vm1556_vm9 = vweird.f32 %v1550_v16  ;;  %v1560_v61 = vand.u32 2147483647, %v1550_v16 }
 0xf10   :  { %v1563_v62 = vor.u32 1.1754944e-38, %v1562_v60  ;;  %vm1561_vm14 = vcmp.eq.f32.partialorder %v1560_v61, 8.507059e+37 }
 0xf12   :  { %849 = vrot.lane.b32.xlu1 %v3560_v21, %s3065_s3 }
 0xf14   :  { %v2890_v59 = vpop.eup %2889 }
 0xf15   :  { %v1552_v42 = vmul.f32 %v2890_v59, %v1550_v16  ;;  %vm1557_vm10 = vweird.f32 %v2890_v59 }
 0xf16   :  { %vm1558_vm12 = vmor %vm1556_vm9, %vm1557_vm10 }
 0xf17   :  { %v1553_v38 = vsub.f32 1.0, %v1552_v42 }
 0xf19   :  { %v1554_v12 = vmul.f32 %v2890_v59, %v1553_v38 }
 0xf1b   :  { %v1555_v26 = vadd.f32 %v2890_v59, %v1554_v12 }
 0xf1d   :  { %v1559_v57 = vsel %vm1558_vm12, %v2890_v59, %v1555_v26 }
 0xf1e   :  { %v1564_v21 = vsel %vm1561_vm14, %v1563_v62, %v1559_v57 }
 0xf1f   :  { %v1567_v8 = vmul.f32 %v1564_v21, %v1499_v23 }
 0xf7c   :  { %v1570_v13 = vpop.permute.xlu1 %1569 }
 0xf7d   :  { %v1572_v0 = vmul.f32 %v1570_v13, %v1564_v21 }
 0xf7f   :  { %1574 = vrot.lane.b32.xlu2 %v1572_v0, %s3056_s10 }
 0xf84   :  { %v850_v33 = vpop.permute.xlu1 %849 }
 0xf87   :  { %851 = vrot.lane.b32.xlu2 %v3562_v20, %s3065_s3 }
 0xfd9   :  { %v1575_v5 = vpop.permute.xlu2 %1574 }
 0xfda   :  { %v1577_v51 = vadd.f32 %v1575_v5, %v1567_v8 }
 0xfdc   :  { %2891 = vtanh.f32 %v1577_v51 }
 0xfe1   :  { %v852_v36 = vpop.permute.xlu2 %851 }
 0xfe2   :  { %v2892_v37 = vpop.eup %2891  ;;  %v854_v41 = vsel %vm853_vm7, %v850_v33, %v852_v36 }
 0xfe3   :  { %856 = vst.msk [vmem:[#allocation3 + $0x30] sm:$0x3] %vm814_vm1, %v854_v41  ;;  %1580 = vrot.lane.b32.xlu0 %v2892_v37, %s3053_s30 }
 0xfea   :  { %v946_v7 = vld [vmem:[#allocation3 + $0x30] sm:$0xff] }
 0xfeb   :  { %2752 = vmatmul.msk.f32.gmra.mxu0 %vm787_vm0, %v946_v7 }
0x1055   :  { %v1581_v4 = vpop.permute.xlu0 %1580 }
0x1056   :  { %v3834_v14 = vmul.f32 %v1581_v4, %v1564_v21 }
0x1058   :  { %1600 = vrot.lane.b32.xlu0 %v3834_v14, %s3056_s10 }
0x1068   :  { %v1061_v20 = vpop.f32.mrf.mxu0 }
0x1069   :  { %v1062_v28 = vadd.f32 %v3690_v9, %v1061_v20 }
0x106b   :  { %1109 = vst [vmem:[#allocation4 + $0x78] sm:$0xff] %v1062_v28 }
0x1072   :  { %v1598_v17 = vld [vmem:[#allocation4 + $0x78] sm:$0x3] }
0x10ca   :  { %v1601_v15 = vpop.permute.xlu0 %1600 }
0x10cb   :  { %2777 = vmatmul.msk.f32.vlgmr.msrb.gmra.mxu1 %vm1131_vm8, %v1601_v15 }
0x10cc   :  { %2084 = vmatpush.msrb.mxu1 %v3648_v35 }
0x10ce   :  { %2085 = vmatpush.msrb.mxu1 %v3653_v27 }
0x10d0   :  { %2086 = vmatpush.msrb.mxu1 %v3664_v55 }
0x10d2   :  { %2087 = vmatpush.msrb.mxu1 %v3672_v56 }
0x1148   :  { %v1621_v58 = vpop.f32.mrf.mxu1 }
0x1149   :  { %v1624_v18 = vadd.f32 %v1621_v58, %v1598_v17 }
0x114b   :  { %2893 = vtanh.f32 %v1624_v18  ;;  %v2778_v19 = vmul.f32 -1.442695, %v1624_v18 }
0x114d   :  { %2895 = vpow2.f32 %v2778_v19  ;;  %v3875_v19 = vld [vmem:[%s4144_s7 + $0x18] sm:$0xff] }
0x1151   :  { %v2894_v40 = vpop.eup %2893 }
0x1152   :  { %1647 = vrot.lane.b32.xlu1 %v2894_v40, %s3053_s30 }
0x1153   :  { %v2896_v10 = vpop.eup %2895 }
0x1154   :  { %v1628_v29 = vadd.f32 1.0, %v2896_v10  ;;  %v3887_v10 = vld [vmem:[%s4144_s7 + $0x8] sm:$0xff] }
0x1156   :  { %2897 = vrcp.f32 %v1628_v29  ;;  %v1640_v46 = vand.u32 2147483648, %v1628_v29  ;;  %vm1634_vm3 = vweird.f32 %v1628_v29  ;;  %v1638_v23 = vand.u32 2147483647, %v1628_v29 }
0x1158   :  { %v1641_v48 = vor.u32 1.1754944e-38, %v1640_v46  ;;  %vm1639_vm5 = vcmp.eq.f32.partialorder %v1638_v23, 8.507059e+37 }
0x115a   :  { %859 = vrot.lane.b32.xlu1 %v3565_v32, %s3066_s26 }
0x115c   :  { %v2898_v25 = vpop.eup %2897 }
0x115d   :  { %v1630_v50 = vmul.f32 %v2898_v25, %v1628_v29  ;;  %vm1635_vm2 = vweird.f32 %v2898_v25  ;;  %v3893_v29 = vld [vmem:[%s4144_s7] sm:$0xff] }
0x115e   :  { %vm1636_vm4 = vmor %vm1634_vm3, %vm1635_vm2 }
0x115f   :  { %v1631_v22 = vsub.f32 1.0, %v1630_v50 }
0x1161   :  { %v1632_v39 = vmul.f32 %v2898_v25, %v1631_v22 }
0x1163   :  { %v1633_v3 = vadd.f32 %v2898_v25, %v1632_v39 }
0x1165   :  { %v1637_v49 = vsel %vm1636_vm4, %v2898_v25, %v1633_v3 }
0x1166   :  { %v1642_v32 = vsel %vm1639_vm5, %v1641_v48, %v1637_v49 }
0x1167   :  { %v1645_v54 = vmul.f32 %v1642_v32, %v1577_v51 }
0x11c4   :  { %v1648_v45 = vpop.permute.xlu1 %1647 }
0x11c5   :  { %v1650_v63 = vmul.f32 %v1648_v45, %v1642_v32 }
0x11c7   :  { %1652 = vrot.lane.b32.xlu2 %v1650_v63, %s3056_s10 }
0x11cc   :  { %v860_v6 = vpop.permute.xlu1 %859 }
0x11cd   :  { %862 = vst.msk [vmem:[#allocation3 + $0x38] sm:$0x3] %vm814_vm1, %v860_v6 }
0x11d4   :  { %v947_v52 = vld [vmem:[#allocation3 + $0x38] sm:$0xff] }
0x11d5   :  { %2753 = vmatmul.msk.f32.gmra.mxu0 %vm787_vm0, %v947_v52 }
0x1221   :  { %v1653_v1 = vpop.permute.xlu2 %1652 }
0x1222   :  { %v1655_v2 = vadd.f32 %v1653_v1, %v1645_v54 }
0x1224   :  { %2899 = vtanh.f32 %v1655_v2 }
0x122a   :  { %v2900_v11 = vpop.eup %2899 }
0x122b   :  { %1658 = vrot.lane.b32.xlu0 %v2900_v11, %s3053_s30 }
0x1252   :  { %v1064_v34 = vpop.f32.mrf.mxu0 }
0x1253   :  { %v1065_v16 = vadd.f32 %v3690_v9, %v1064_v34 }
0x1255   :  { %1110 = vst [vmem:[#allocation4 + $0x80] sm:$0xff] %v1065_v16 }
0x125c   :  { %v1676_v12 = vld [vmem:[#allocation4 + $0x80] sm:$0x3] }
0x129d   :  { %v1659_v59 = vpop.permute.xlu0 %1658 }
0x129e   :  { %v3851_v42 = vmul.f32 %v1659_v59, %v1642_v32 }
0x12a0   :  { %1678 = vrot.lane.b32.xlu2 %v3851_v42, %s3056_s10 }
0x12fa   :  { %v1679_v38 = vpop.permute.xlu2 %1678 }
0x12fb   :  { %2779 = vmatmul.msk.f32.vlgmr.msrb.gmra.mxu2 %vm1131_vm8, %v1679_v38 }
0x12fc   :  { %2162 = vmatpush.msrb.mxu2 %v3648_v35 }
0x12fe   :  { %2163 = vmatpush.msrb.mxu2 %v3653_v27 }
0x1300   :  { %2164 = vmatpush.msrb.mxu2 %v3664_v55 }
0x1302   :  { %2165 = vmatpush.msrb.mxu2 %v3672_v56 }
0x137e   :  { %v1699_v26 = vpop.f32.mrf.mxu2 }
0x137f   :  { %v1702_v60 = vadd.f32 %v1699_v26, %v1676_v12 }
0x1381   :  { %2901 = vtanh.f32 %v1702_v60  ;;  %v2780_v57 = vmul.f32 -1.442695, %v1702_v60 }
0x1383   :  { %2903 = vpow2.f32 %v2780_v57 }
0x1387   :  { %v2902_v61 = vpop.eup %2901 }
0x1388   :  { %1725 = vrot.lane.b32.xlu0 %v2902_v61, %s3053_s30  ;;  %v3009_v61 = vld [vmem:[%s4145_s8] ss:$0 sm:$0xff] }
0x1389   :  { %v2904_v62 = vpop.eup %2903 }
0x138a   :  { %v1706_v35 = vadd.f32 1.0, %v2904_v62 }
0x138c   :  { %2905 = vrcp.f32 %v1706_v35  ;;  %v1718_v0 = vand.u32 2147483648, %v1706_v35  ;;  %vm1712_vm11 = vweird.f32 %v1706_v35  ;;  %v1716_v8 = vand.u32 2147483647, %v1706_v35 }
0x138e   :  { %v1719_v51 = vor.u32 1.1754944e-38, %v1718_v0  ;;  %vm1717_vm15 = vcmp.eq.f32.partialorder %v1716_v8, 8.507059e+37 }
0x1390   :  { %865 = vrot.lane.b32.xlu0 %v3583_v44, %s3067_s6 }
0x1392   :  { %v2906_v27 = vpop.eup %2905 }
0x1393   :  { %v1708_v13 = vmul.f32 %v2906_v27, %v1706_v35  ;;  %vm1713_vm6 = vweird.f32 %v2906_v27 }
0x1394   :  { %vm1714_vm13 = vmor %vm1712_vm11, %vm1713_vm6 }
0x1395   :  { %v1709_v55 = vsub.f32 1.0, %v1708_v13 }
0x1397   :  { %v1710_v21 = vmul.f32 %v2906_v27, %v1709_v55 }
0x1399   :  { %v1711_v56 = vadd.f32 %v2906_v27, %v1710_v21 }
0x139b   :  { %v1715_v5 = vsel %vm1714_vm13, %v2906_v27, %v1711_v56 }
0x139c   :  { %v1720_v44 = vsel %vm1717_vm15, %v1719_v51, %v1715_v5 }
0x139d   :  { %v1723_v7 = vmul.f32 %v1720_v44, %v1655_v2 }
0x13fa   :  { %v1726_v33 = vpop.permute.xlu0 %1725 }
0x13fb   :  { %v1728_v36 = vmul.f32 %v1726_v33, %v1720_v44 }
0x13fd   :  { %1730 = vrot.lane.b32.xlu1 %v1728_v36, %s3056_s10 }
0x1402   :  { %v866_v37 = vpop.permute.xlu0 %865 }
0x1403   :  { %868 = vst.msk [vmem:[#allocation3 + $0x40] sm:$0x3] %vm814_vm1, %v866_v37 }
0x140a   :  { %v948_v41 = vld [vmem:[#allocation3 + $0x40] sm:$0xff] }
0x140b   :  { %2754 = vmatmul.msk.f32.gmra.mxu0 %vm787_vm0, %v948_v41 }
0x146f   :  { %v1731_v4 = vpop.permute.xlu1 %1730 }
0x1470   :  { %v1733_v20 = vadd.f32 %v1731_v4, %v1723_v7 }
0x1472   :  { %2907 = vtanh.f32 %v1733_v20 }
0x1478   :  { %v2908_v28 = vpop.eup %2907 }
0x1479   :  { %1736 = vrot.lane.b32.xlu2 %v2908_v28, %s3053_s30 }
0x1488   :  { %v1067_v15 = vpop.f32.mrf.mxu0 }
0x1489   :  { %v1068_v17 = vadd.f32 %v3690_v9, %v1067_v15  ;;  %v3881_v9 = vld [vmem:[%s4144_s7 + $0x10] sm:$0xff] }
0x148b   :  { %1111 = vst [vmem:[#allocation4 + $0x8] sm:$0xff] %v1068_v17 }
0x1492   :  { %v1754_v25 = vld [vmem:[#allocation4 + $0x8] sm:$0x3] }
0x14d3   :  { %v1737_v58 = vpop.permute.xlu2 %1736 }
0x14d4   :  { %v3867_v18 = vmul.f32 %v1737_v58, %v1720_v44 }
0x14d6   :  { %1756 = vrot.lane.b32.xlu1 %v3867_v18, %s3056_s10 }
0x1548   :  { %v1757_v40 = vpop.permute.xlu1 %1756 }
0x1549   :  { %2781 = vmatmul.msk.f32.vlgmr.msrb.gmra.mxu3 %vm1131_vm8, %v1757_v40 }
0x154a   :  { %2240 = vmatpush.msrb.mxu3 %v3875_v19 }
0x154c   :  { %2241 = vmatpush.msrb.mxu3 %v3881_v9 }
0x154e   :  { %2242 = vmatpush.msrb.mxu3 %v3887_v10 }
0x1550   :  { %2243 = vmatpush.msrb.mxu3 %v3893_v29 }
0x15cc   :  { %v1777_v50 = vpop.f32.mrf.mxu3 }
0x15cd   :  { %v1780_v22 = vadd.f32 %v1777_v50, %v1754_v25 }
0x15cf   :  { %2909 = vtanh.f32 %v1780_v22  ;;  %v2782_v3 = vmul.f32 -1.442695, %v1780_v22 }
0x15d1   :  { %2911 = vpow2.f32 %v2782_v3 }
0x15d5   :  { %v2910_v39 = vpop.eup %2909 }
0x15d6   :  { %1803 = vrot.lane.b32.xlu2 %v2910_v39, %s3053_s30 }
0x15d7   :  { %v2912_v46 = vpop.eup %2911 }
0x15d8   :  { %v1784_v23 = vadd.f32 1.0, %v2912_v46  ;;  %v1910_v46 = vld [vmem:[#allocation4 + $0x28] sm:$0x3] }
0x15da   :  { %2913 = vrcp.f32 %v1784_v23  ;;  %v1796_v6 = vand.u32 2147483648, %v1784_v23  ;;  %vm1790_vm9 = vweird.f32 %v1784_v23  ;;  %v1794_v52 = vand.u32 2147483647, %v1784_v23 }
0x15dc   :  { %v1797_v1 = vor.u32 1.1754944e-38, %v1796_v6  ;;  %vm1795_vm14 = vcmp.eq.f32.partialorder %v1794_v52, 8.507059e+37 }
0x15de   :  { %871 = vrot.lane.b32.xlu2 %v3603_v47, %s3068_s25 }
0x15e0   :  { %v2914_v49 = vpop.eup %2913 }
0x15e1   :  { %v1786_v48 = vmul.f32 %v2914_v49, %v1784_v23  ;;  %vm1791_vm10 = vweird.f32 %v2914_v49 }
0x15e2   :  { %vm1792_vm12 = vmor %vm1790_vm9, %vm1791_vm10 }
0x15e3   :  { %v1787_v45 = vsub.f32 1.0, %v1786_v48 }
0x15e5   :  { %v1788_v32 = vmul.f32 %v2914_v49, %v1787_v45 }
0x15e7   :  { %v1789_v63 = vadd.f32 %v2914_v49, %v1788_v32 }
0x15e9   :  { %v1793_v54 = vsel %vm1792_vm12, %v2914_v49, %v1789_v63 }
0x15ea   :  { %v1798_v47 = vsel %vm1795_vm14, %v1797_v1, %v1793_v54 }
0x15eb   :  { %v1801_v59 = vmul.f32 %v1798_v47, %v1733_v20 }
0x1630   :  { %v1804_v2 = vpop.permute.xlu2 %1803 }
0x1631   :  { %v1806_v11 = vmul.f32 %v1804_v2, %v1798_v47 }
0x1633   :  { %1808 = vrot.lane.b32.xlu0 %v1806_v11, %s3056_s10 }
0x1638   :  { %v872_v34 = vpop.permute.xlu2 %871 }
0x1639   :  { %874 = vst.msk [vmem:[#allocation3 + $0x48] sm:$0x3] %vm814_vm1, %v872_v34 }
0x1640   :  { %v949_v16 = vld [vmem:[#allocation3 + $0x48] sm:$0xff] }
0x1641   :  { %2755 = vmatmul.msk.f32.gmra.mxu0 %vm787_vm0, %v949_v16 }
0x16a5   :  { %v1809_v38 = vpop.permute.xlu0 %1808 }
0x16a6   :  { %v1811_v12 = vadd.f32 %v1809_v38, %v1801_v59 }
0x16a8   :  { %2915 = vtanh.f32 %v1811_v12 }
0x16ae   :  { %v2916_v26 = vpop.eup %2915 }
0x16af   :  { %1814 = vrot.lane.b32.xlu1 %v2916_v26, %s3053_s30 }
0x16be   :  { %v1070_v60 = vpop.f32.mrf.mxu0 }
0x16bf   :  { %v1071_v57 = vadd.f32 %v3009_v61, %v1070_v60 }
0x16c1   :  { %1112 = vst [vmem:[#allocation4 + $0x88] sm:$0xff] %v1071_v57 }
0x16c8   :  { %v1832_v13 = vld [vmem:[#allocation4 + $0x88] sm:$0x3] }
0x1721   :  { %v1815_v62 = vpop.permute.xlu1 %1814 }
0x1722   :  { %v3905_v35 = vmul.f32 %v1815_v62, %v1798_v47 }
0x1724   :  { %1834 = vrot.lane.b32.xlu0 %v3905_v35, %s3056_s10 }
0x1796   :  { %v1835_v27 = vpop.permute.xlu0 %1834 }
0x1797   :  { %2783 = vmatmul.msk.f32.vlgmr.msra.gmra.mxu1 %vm1131_vm8, %v1835_v27 }
0x1798   :  { %2318 = vmatpush.msra.mxu1 %v3875_v19 }
0x179a   :  { %2319 = vmatpush.msra.mxu1 %v3881_v9 }
0x179c   :  { %2320 = vmatpush.msra.mxu1 %v3887_v10 }
0x179e   :  { %2321 = vmatpush.msra.mxu1 %v3893_v29 }
0x1814   :  { %v1855_v55 = vpop.f32.mrf.mxu1 }
0x1815   :  { %v1858_v21 = vadd.f32 %v1855_v55, %v1832_v13  ;;  %v1988_v55 = vld [vmem:[#allocation4 + $0x40] sm:$0x3] }
0x1817   :  { %2917 = vtanh.f32 %v1858_v21  ;;  %v2784_v0 = vmul.f32 -1.442695, %v1858_v21 }
0x1819   :  { %2919 = vpow2.f32 %v2784_v0 }
0x181d   :  { %v2918_v56 = vpop.eup %2917 }
0x181e   :  { %1881 = vrot.lane.b32.xlu1 %v2918_v56, %s3053_s30 }
0x181f   :  { %v2920_v8 = vpop.eup %2919 }
0x1820   :  { %v1862_v5 = vadd.f32 1.0, %v2920_v8 }
0x1822   :  { %2921 = vrcp.f32 %v1862_v5  ;;  %v1874_v41 = vand.u32 2147483648, %v1862_v5  ;;  %vm1868_vm1 = vweird.f32 %v1862_v5  ;;  %v1872_v7 = vand.u32 2147483647, %v1862_v5 }
0x1824   :  { %v1875_v20 = vor.u32 1.1754944e-38, %v1874_v41  ;;  %vm1873_vm2 = vcmp.eq.f32.partialorder %v1872_v7, 8.507059e+37 }
0x1828   :  { %v2922_v51 = vpop.eup %2921 }
0x1829   :  { %v1864_v33 = vmul.f32 %v2922_v51, %v1862_v5  ;;  %vm1869_vm0 = vweird.f32 %v2922_v51 }
0x182a   :  { %vm1870_vm7 = vmor %vm1868_vm1, %vm1869_vm0 }
0x182b   :  { %v1865_v44 = vsub.f32 1.0, %v1864_v33 }
0x182d   :  { %v1866_v36 = vmul.f32 %v2922_v51, %v1865_v44 }
0x182f   :  { %v1867_v37 = vadd.f32 %v2922_v51, %v1866_v36 }
0x1831   :  { %v1871_v4 = vsel %vm1870_vm7, %v2922_v51, %v1867_v37 }
0x1832   :  { %v1876_v15 = vsel %vm1873_vm2, %v1875_v20, %v1871_v4 }
0x1833   :  { %v1879_v58 = vmul.f32 %v1876_v15, %v1811_v12 }
0x1890   :  { %v1882_v28 = vpop.permute.xlu1 %1881 }
0x1891   :  { %v1884_v17 = vmul.f32 %v1882_v28, %v1876_v15 }
0x1893   :  { %1886 = vrot.lane.b32.xlu2 %v1884_v17, %s3056_s10 }
0x18ed   :  { %v1887_v40 = vpop.permute.xlu2 %1886 }
0x18ee   :  { %v1889_v25 = vadd.f32 %v1887_v40, %v1879_v58 }
0x18f0   :  { %2923 = vtanh.f32 %v1889_v25 }
0x18f6   :  { %v2924_v50 = vpop.eup %2923 }
0x18f7   :  { %1892 = vrot.lane.b32.xlu0 %v2924_v50, %s3053_s30 }
0x1969   :  { %v1893_v22 = vpop.permute.xlu0 %1892 }
0x196a   :  { %v3917_v39 = vmul.f32 %v1893_v22, %v1876_v15 }
0x196c   :  { %1912 = vrot.lane.b32.xlu1 %v3917_v39, %s3056_s10 }
0x19de   :  { %v1913_v3 = vpop.permute.xlu1 %1912 }
0x19df   :  { %2785 = vmatmul.msk.f32.vlgmr.msra.gmra.mxu2 %vm1131_vm8, %v1913_v3 }
0x19e0   :  { %2396 = vmatpush.msra.mxu2 %v3875_v19 }
0x19e2   :  { %2397 = vmatpush.msra.mxu2 %v3881_v9 }
0x19e4   :  { %2398 = vmatpush.msra.mxu2 %v3887_v10 }
0x19e6   :  { %2399 = vmatpush.msra.mxu2 %v3893_v29 }
0x1a62   :  { %v1933_v23 = vpop.f32.mrf.mxu2 }
0x1a63   :  { %v1936_v49 = vadd.f32 %v1933_v23, %v1910_v46 }
0x1a65   :  { %2925 = vtanh.f32 %v1936_v49  ;;  %v2786_v45 = vmul.f32 -1.442695, %v1936_v49  ;;  %v2066_v49 = vld [vmem:[#allocation4 + $0x58] sm:$0x3] }
0x1a67   :  { %2927 = vpow2.f32 %v2786_v45 }
0x1a6b   :  { %v2926_v48 = vpop.eup %2925 }
0x1a6c   :  { %1959 = vrot.lane.b32.xlu2 %v2926_v48, %s3053_s30 }
0x1a6d   :  { %v2928_v32 = vpop.eup %2927 }
0x1a6e   :  { %v1940_v63 = vadd.f32 1.0, %v2928_v32 }
0x1a70   :  { %2929 = vrcp.f32 %v1940_v63  ;;  %v1952_v47 = vand.u32 2147483648, %v1940_v63  ;;  %vm1946_vm4 = vweird.f32 %v1940_v63  ;;  %v1950_v11 = vand.u32 2147483647, %v1940_v63 }
0x1a72   :  { %v1953_v16 = vor.u32 1.1754944e-38, %v1952_v47  ;;  %vm1951_vm6 = vcmp.eq.f32.partialorder %v1950_v11, 8.507059e+37 }
0x1a76   :  { %v2930_v6 = vpop.eup %2929 }
0x1a77   :  { %v1942_v52 = vmul.f32 %v2930_v6, %v1940_v63  ;;  %vm1947_vm3 = vweird.f32 %v2930_v6 }
0x1a78   :  { %vm1948_vm5 = vmor %vm1946_vm4, %vm1947_vm3 }
0x1a79   :  { %v1943_v54 = vsub.f32 1.0, %v1942_v52 }
0x1a7b   :  { %v1944_v1 = vmul.f32 %v2930_v6, %v1943_v54 }
0x1a7d   :  { %v1945_v2 = vadd.f32 %v2930_v6, %v1944_v1 }
0x1a7f   :  { %v1949_v34 = vsel %vm1948_vm5, %v2930_v6, %v1945_v2 }
0x1a80   :  { %v1954_v38 = vsel %vm1951_vm6, %v1953_v16, %v1949_v34 }
0x1a81   :  { %v1957_v26 = vmul.f32 %v1954_v38, %v1889_v25 }
0x1ac6   :  { %v1960_v59 = vpop.permute.xlu2 %1959 }
0x1ac7   :  { %v1962_v12 = vmul.f32 %v1960_v59, %v1954_v38 }
0x1ac9   :  { %1964 = vrot.lane.b32.xlu0 %v1962_v12, %s3056_s10 }
0x1b3b   :  { %v1965_v60 = vpop.permute.xlu0 %1964 }
0x1b3c   :  { %v1967_v61 = vadd.f32 %v1965_v60, %v1957_v26 }
0x1b3e   :  { %2931 = vtanh.f32 %v1967_v61 }
0x1b44   :  { %v2932_v57 = vpop.eup %2931 }
0x1b45   :  { %1970 = vrot.lane.b32.xlu1 %v2932_v57, %s3053_s30 }
0x1bb7   :  { %v1971_v62 = vpop.permute.xlu1 %1970 }
0x1bb8   :  { %v3929_v27 = vmul.f32 %v1971_v62, %v1954_v38 }
0x1bba   :  { %1990 = vrot.lane.b32.xlu2 %v3929_v27, %s3056_s10 }
0x1c14   :  { %v1991_v13 = vpop.permute.xlu2 %1990 }
0x1c15   :  { %2787 = vmatmul.msk.f32.vlgmr.msra.gmra.mxu3 %vm1131_vm8, %v1991_v13 }
0x1c16   :  { %2474 = vmatpush.msra.mxu3 %v3875_v19 }
0x1c18   :  { %2475 = vmatpush.msra.mxu3 %v3881_v9 }
0x1c1a   :  { %2476 = vmatpush.msra.mxu3 %v3887_v10 }
0x1c1c   :  { %2477 = vmatpush.msra.mxu3 %v3893_v29 }
0x1c98   :  { %v2011_v21 = vpop.f32.mrf.mxu3 }
0x1c99   :  { %v2014_v56 = vadd.f32 %v2011_v21, %v1988_v55 }
0x1c9b   :  { %2933 = vtanh.f32 %v2014_v56  ;;  %v2788_v8 = vmul.f32 -1.442695, %v2014_v56 }
0x1c9d   :  { %2935 = vpow2.f32 %v2788_v8 }
0x1ca1   :  { %v2934_v0 = vpop.eup %2933 }
0x1ca2   :  { %2037 = vrot.lane.b32.xlu0 %v2934_v0, %s3053_s30  ;;  %v2144_v0 = vld [vmem:[#allocation4 + $0x10] sm:$0x3] }
0x1ca3   :  { %v2936_v5 = vpop.eup %2935 }
0x1ca4   :  { %v2018_v51 = vadd.f32 1.0, %v2936_v5 }
0x1ca6   :  { %2937 = vrcp.f32 %v2018_v51  ;;  %v2030_v7 = vand.u32 2147483648, %v2018_v51  ;;  %vm2024_vm13 = vweird.f32 %v2018_v51  ;;  %v2028_v4 = vand.u32 2147483647, %v2018_v51 }
0x1ca8   :  { %v2031_v28 = vor.u32 1.1754944e-38, %v2030_v7  ;;  %vm2029_vm10 = vcmp.eq.f32.partialorder %v2028_v4, 8.507059e+37 }
0x1cac   :  { %v2938_v33 = vpop.eup %2937 }
0x1cad   :  { %v2020_v44 = vmul.f32 %v2938_v33, %v2018_v51  ;;  %vm2025_vm11 = vweird.f32 %v2938_v33 }
0x1cae   :  { %vm2026_vm15 = vmor %vm2024_vm13, %vm2025_vm11 }
0x1caf   :  { %v2021_v36 = vsub.f32 1.0, %v2020_v44 }
0x1cb1   :  { %v2022_v37 = vmul.f32 %v2938_v33, %v2021_v36 }
0x1cb3   :  { %v2023_v41 = vadd.f32 %v2938_v33, %v2022_v37 }
0x1cb5   :  { %v2027_v20 = vsel %vm2026_vm15, %v2938_v33, %v2023_v41 }
0x1cb6   :  { %v2032_v17 = vsel %vm2029_vm10, %v2031_v28, %v2027_v20 }
0x1cb7   :  { %v2035_v40 = vmul.f32 %v2032_v17, %v1967_v61 }
0x1d14   :  { %v2038_v15 = vpop.permute.xlu0 %2037 }
0x1d15   :  { %v2040_v58 = vmul.f32 %v2038_v15, %v2032_v17 }
0x1d17   :  { %2042 = vrot.lane.b32.xlu1 %v2040_v58, %s3056_s10 }
0x1d89   :  { %v2043_v25 = vpop.permute.xlu1 %2042 }
0x1d8a   :  { %v2045_v50 = vadd.f32 %v2043_v25, %v2035_v40 }
0x1d8c   :  { %2939 = vtanh.f32 %v2045_v50 }
0x1d92   :  { %v2940_v22 = vpop.eup %2939 }
0x1d93   :  { %2048 = vrot.lane.b32.xlu2 %v2940_v22, %s3053_s30 }
0x1ded   :  { %v2049_v3 = vpop.permute.xlu2 %2048 }
0x1dee   :  { %v3941_v46 = vmul.f32 %v2049_v3, %v2032_v17 }
0x1df0   :  { %2068 = vrot.lane.b32.xlu0 %v3941_v46, %s3056_s10 }
0x1e62   :  { %v2069_v23 = vpop.permute.xlu0 %2068 }
0x1e63   :  { %2789 = vmatmul.msk.f32.vlgmr.msrb.gmra.mxu1 %vm1131_vm8, %v2069_v23 }
0x1e64   :  { %2552 = vmatpush.msrb.mxu1 %v3875_v19 }
0x1e66   :  { %2553 = vmatpush.msrb.mxu1 %v3881_v9 }
0x1e68   :  { %2554 = vmatpush.msrb.mxu1 %v3887_v10 }
0x1e6a   :  { %2555 = vmatpush.msrb.mxu1 %v3893_v29 }
0x1ee0   :  { %v2089_v48 = vpop.f32.mrf.mxu1 }
0x1ee1   :  { %v2092_v45 = vadd.f32 %v2089_v48, %v2066_v49  ;;  %v2222_v49 = vld [vmem:[#allocation4 + $0x98] sm:$0x3] }
0x1ee3   :  { %2941 = vtanh.f32 %v2092_v45  ;;  %v2790_v63 = vmul.f32 -1.442695, %v2092_v45 }
0x1ee5   :  { %2943 = vpow2.f32 %v2790_v63 }
0x1ee9   :  { %v2942_v32 = vpop.eup %2941 }
0x1eea   :  { %2115 = vrot.lane.b32.xlu1 %v2942_v32, %s3053_s30 }
0x1eeb   :  { %v2944_v6 = vpop.eup %2943 }
0x1eec   :  { %v2096_v52 = vadd.f32 1.0, %v2944_v6 }
0x1eee   :  { %2945 = vrcp.f32 %v2096_v52  ;;  %v2108_v34 = vand.u32 2147483648, %v2096_v52  ;;  %vm2102_vm12 = vweird.f32 %v2096_v52  ;;  %v2106_v16 = vand.u32 2147483647, %v2096_v52 }
0x1ef0   :  { %v2109_v38 = vor.u32 1.1754944e-38, %v2108_v34  ;;  %vm2107_vm0 = vcmp.eq.f32.partialorder %v2106_v16, 8.507059e+37 }
0x1ef4   :  { %v2946_v54 = vpop.eup %2945 }
0x1ef5   :  { %v2098_v1 = vmul.f32 %v2946_v54, %v2096_v52  ;;  %vm2103_vm9 = vweird.f32 %v2946_v54 }
0x1ef6   :  { %vm2104_vm14 = vmor %vm2102_vm12, %vm2103_vm9 }
0x1ef7   :  { %v2099_v2 = vsub.f32 1.0, %v2098_v1 }
0x1ef9   :  { %v2100_v47 = vmul.f32 %v2946_v54, %v2099_v2 }
0x1efb   :  { %v2101_v11 = vadd.f32 %v2946_v54, %v2100_v47 }
0x1efd   :  { %v2105_v59 = vsel %vm2104_vm14, %v2946_v54, %v2101_v11 }
0x1efe   :  { %v2110_v26 = vsel %vm2107_vm0, %v2109_v38, %v2105_v59 }
0x1eff   :  { %v2113_v61 = vmul.f32 %v2110_v26, %v2045_v50 }
0x1f5c   :  { %v2116_v12 = vpop.permute.xlu1 %2115 }
0x1f5d   :  { %v2118_v60 = vmul.f32 %v2116_v12, %v2110_v26 }
0x1f5f   :  { %2120 = vrot.lane.b32.xlu2 %v2118_v60, %s3056_s10 }
0x1fb9   :  { %v2121_v57 = vpop.permute.xlu2 %2120 }
0x1fba   :  { %v2123_v62 = vadd.f32 %v2121_v57, %v2113_v61 }
0x1fbc   :  { %2947 = vtanh.f32 %v2123_v62 }
0x1fc2   :  { %v2948_v13 = vpop.eup %2947 }
0x1fc3   :  { %2126 = vrot.lane.b32.xlu0 %v2948_v13, %s3053_s30 }
0x2035   :  { %v2127_v55 = vpop.permute.xlu0 %2126 }
0x2036   :  { %v3953_v21 = vmul.f32 %v2127_v55, %v2110_v26 }
0x2038   :  { %2146 = vrot.lane.b32.xlu1 %v3953_v21, %s3056_s10 }
0x20aa   :  { %v2147_v56 = vpop.permute.xlu1 %2146 }
0x20ab   :  { %2791 = vmatmul.msk.f32.vlgmr.msrb.gmra.mxu2 %vm1131_vm8, %v2147_v56 }
0x20ac   :  { %2630 = vmatpush.msrb.mxu2 %v3875_v19 }
0x20ae   :  { %2631 = vmatpush.msrb.mxu2 %v3881_v9 }
0x20b0   :  { %2632 = vmatpush.msrb.mxu2 %v3887_v10 }
0x20b2   :  { %2633 = vmatpush.msrb.mxu2 %v3893_v29 }
0x212e   :  { %v2167_v8 = vpop.f32.mrf.mxu2 }
0x212f   :  { %v2170_v5 = vadd.f32 %v2167_v8, %v2144_v0  ;;  %v2300_v8 = vld [vmem:[#allocation4 + $0x60] sm:$0x3] }
0x2131   :  { %2949 = vtanh.f32 %v2170_v5  ;;  %v2792_v33 = vmul.f32 -1.442695, %v2170_v5 }
0x2133   :  { %2951 = vpow2.f32 %v2792_v33 }
0x2137   :  { %v2950_v51 = vpop.eup %2949 }
0x2138   :  { %2193 = vrot.lane.b32.xlu2 %v2950_v51, %s3053_s30 }
0x2139   :  { %v2952_v44 = vpop.eup %2951 }
0x213a   :  { %v2174_v36 = vadd.f32 1.0, %v2952_v44 }
0x213c   :  { %2953 = vrcp.f32 %v2174_v36  ;;  %v2186_v10 = vand.u32 2147483648, %v2174_v36  ;;  %vm2180_vm7 = vweird.f32 %v2174_v36  ;;  %v2184_v29 = vand.u32 2147483647, %v2174_v36 }
0x213e   :  { %v2187_v20 = vor.u32 1.1754944e-38, %v2186_v10  ;;  %vm2185_vm3 = vcmp.eq.f32.partialorder %v2184_v29, 8.507059e+37 }
0x2142   :  { %v2954_v37 = vpop.eup %2953 }
0x2143   :  { %v2176_v19 = vmul.f32 %v2954_v37, %v2174_v36  ;;  %vm2181_vm1 = vweird.f32 %v2954_v37 }
0x2144   :  { %vm2182_vm2 = vmor %vm2180_vm7, %vm2181_vm1 }
0x2145   :  { %v2177_v41 = vsub.f32 1.0, %v2176_v19 }
0x2147   :  { %v2178_v9 = vmul.f32 %v2954_v37, %v2177_v41 }
0x2149   :  { %v2179_v7 = vadd.f32 %v2954_v37, %v2178_v9 }
0x214b   :  { %v2183_v4 = vsel %vm2182_vm2, %v2954_v37, %v2179_v7 }
0x214c   :  { %v2188_v15 = vsel %vm2185_vm3, %v2187_v20, %v2183_v4 }
0x214d   :  { %v2191_v58 = vmul.f32 %v2188_v15, %v2123_v62 }
0x2192   :  { %v2194_v28 = vpop.permute.xlu2 %2193 }
0x2193   :  { %v2196_v17 = vmul.f32 %v2194_v28, %v2188_v15 }
0x2195   :  { %2198 = vrot.lane.b32.xlu0 %v2196_v17, %s3056_s10 }
0x2207   :  { %v2199_v40 = vpop.permute.xlu0 %2198 }
0x2208   :  { %v2201_v25 = vadd.f32 %v2199_v40, %v2191_v58 }
0x220a   :  { %2955 = vtanh.f32 %v2201_v25 }
0x2210   :  { %v2956_v50 = vpop.eup %2955 }
0x2211   :  { %2204 = vrot.lane.b32.xlu1 %v2956_v50, %s3053_s30 }
0x2283   :  { %v2205_v22 = vpop.permute.xlu1 %2204 }
0x2284   :  { %v3965_v3 = vmul.f32 %v2205_v22, %v2188_v15 }
0x2286   :  { %2224 = vrot.lane.b32.xlu2 %v3965_v3, %s3056_s10 }
0x22e0   :  { %v2225_v23 = vpop.permute.xlu2 %2224 }
0x22e1   :  { %2793 = vmatmul.msk.f32.vlgmr.msrb.gmra.mxu3 %vm1131_vm8, %v2225_v23 }
0x2364   :  { %v2245_v48 = vpop.f32.mrf.mxu3 }
0x2365   :  { %v2248_v45 = vadd.f32 %v2245_v48, %v2222_v49 }
0x2367   :  { %2957 = vtanh.f32 %v2248_v45  ;;  %v2794_v63 = vmul.f32 -1.442695, %v2248_v45  ;;  %v2378_v45 = vld [vmem:[#allocation4 + $0x20] sm:$0x3] }
0x2369   :  { %2959 = vpow2.f32 %v2794_v63 }
0x236d   :  { %v2958_v32 = vpop.eup %2957 }
0x236e   :  { %2271 = vrot.lane.b32.xlu0 %v2958_v32, %s3053_s30 }
0x236f   :  { %v2960_v6 = vpop.eup %2959 }
0x2370   :  { %v2252_v52 = vadd.f32 1.0, %v2960_v6 }
0x2372   :  { %2961 = vrcp.f32 %v2252_v52  ;;  %v2264_v34 = vand.u32 2147483648, %v2252_v52  ;;  %vm2258_vm5 = vweird.f32 %v2252_v52  ;;  %v2262_v16 = vand.u32 2147483647, %v2252_v52 }
0x2374   :  { %v2265_v38 = vor.u32 1.1754944e-38, %v2264_v34  ;;  %vm2263_vm11 = vcmp.eq.f32.partialorder %v2262_v16, 8.507059e+37 }
0x2378   :  { %v2962_v54 = vpop.eup %2961 }
0x2379   :  { %v2254_v1 = vmul.f32 %v2962_v54, %v2252_v52  ;;  %vm2259_vm4 = vweird.f32 %v2962_v54 }
0x237a   :  { %vm2260_vm6 = vmor %vm2258_vm5, %vm2259_vm4  ;;  %vm1203_vm5 = vcmask 254976  }
0x237b   :  { %v2255_v2 = vsub.f32 1.0, %v2254_v1 }
0x237d   :  { %v2256_v47 = vmul.f32 %v2962_v54, %v2255_v2 }
0x237f   :  { %v2257_v11 = vadd.f32 %v2962_v54, %v2256_v47 }
0x2381   :  { %v2261_v59 = vsel %vm2260_vm6, %v2962_v54, %v2257_v11 }
0x2382   :  { %v2266_v26 = vsel %vm2263_vm11, %v2265_v38, %v2261_v59 }
0x2383   :  { %v2269_v61 = vmul.f32 %v2266_v26, %v2201_v25 }
0x23e0   :  { %v2272_v12 = vpop.permute.xlu0 %2271 }
0x23e1   :  { %v2274_v60 = vmul.f32 %v2272_v12, %v2266_v26 }
0x23e3   :  { %2276 = vrot.lane.b32.xlu1 %v2274_v60, %s3056_s10 }
0x2455   :  { %v2277_v57 = vpop.permute.xlu1 %2276 }
0x2456   :  { %v2279_v62 = vadd.f32 %v2277_v57, %v2269_v61 }
0x2458   :  { %2963 = vtanh.f32 %v2279_v62 }
0x245e   :  { %v2964_v13 = vpop.eup %2963 }
0x245f   :  { %2282 = vrot.lane.b32.xlu2 %v2964_v13, %s3053_s30 }
0x24b9   :  { %v2283_v55 = vpop.permute.xlu2 %2282 }
0x24ba   :  { %v3973_v56 = vmul.f32 %v2283_v55, %v2266_v26 }
0x24bc   :  { %2302 = vrot.lane.b32.xlu0 %v3973_v56, %s3056_s10 }
0x252e   :  { %v2303_v0 = vpop.permute.xlu0 %2302 }
0x252f   :  { %2795 = vmatmul.msk.f32.vlgmr.msra.gmra.mxu1 %vm1131_vm8, %v2303_v0 }
0x25ac   :  { %v2323_v5 = vpop.f32.mrf.mxu1 }
0x25ad   :  { %v2326_v51 = vadd.f32 %v2323_v5, %v2300_v8 }
0x25af   :  { %2965 = vtanh.f32 %v2326_v51  ;;  %v2796_v44 = vmul.f32 -1.442695, %v2326_v51 }
0x25b1   :  { %2967 = vpow2.f32 %v2796_v44 }
0x25b5   :  { %v2966_v33 = vpop.eup %2965 }
0x25b6   :  { %2349 = vrot.lane.b32.xlu1 %v2966_v33, %s3053_s30  ;;  %v2456_v33 = vld [vmem:[#allocation4 + $0x48] sm:$0x3] }
0x25b7   :  { %v2968_v36 = vpop.eup %2967 }
0x25b8   :  { %v2330_v37 = vadd.f32 1.0, %v2968_v36 }
0x25ba   :  { %2969 = vrcp.f32 %v2330_v37  ;;  %v2342_v29 = vand.u32 2147483648, %v2330_v37  ;;  %vm2336_vm15 = vweird.f32 %v2330_v37  ;;  %v2340_v4 = vand.u32 2147483647, %v2330_v37 }
0x25bc   :  { %v2343_v28 = vor.u32 1.1754944e-38, %v2342_v29  ;;  %vm2341_vm9 = vcmp.eq.f32.partialorder %v2340_v4, 8.507059e+37 }
0x25c0   :  { %v2970_v19 = vpop.eup %2969 }
0x25c1   :  { %v2332_v41 = vmul.f32 %v2970_v19, %v2330_v37  ;;  %vm2337_vm13 = vweird.f32 %v2970_v19 }
0x25c2   :  { %vm2338_vm10 = vmor %vm2336_vm15, %vm2337_vm13 }
0x25c3   :  { %v2333_v9 = vsub.f32 1.0, %v2332_v41 }
0x25c5   :  { %v2334_v7 = vmul.f32 %v2970_v19, %v2333_v9 }
0x25c7   :  { %v2335_v10 = vadd.f32 %v2970_v19, %v2334_v7 }
0x25c9   :  { %v2339_v20 = vsel %vm2338_vm10, %v2970_v19, %v2335_v10 }
0x25ca   :  { %v2344_v17 = vsel %vm2341_vm9, %v2343_v28, %v2339_v20 }
0x25cb   :  { %v2347_v40 = vmul.f32 %v2344_v17, %v2279_v62 }
0x2628   :  { %v2350_v15 = vpop.permute.xlu1 %2349 }
0x2629   :  { %v2352_v58 = vmul.f32 %v2350_v15, %v2344_v17 }
0x262b   :  { %2354 = vrot.lane.b32.xlu2 %v2352_v58, %s3056_s10 }
0x2685   :  { %v2355_v25 = vpop.permute.xlu2 %2354 }
0x2686   :  { %v2357_v50 = vadd.f32 %v2355_v25, %v2347_v40 }
0x2688   :  { %2971 = vtanh.f32 %v2357_v50 }
0x268e   :  { %v2972_v22 = vpop.eup %2971 }
0x268f   :  { %2360 = vrot.lane.b32.xlu0 %v2972_v22, %s3053_s30 }
0x2701   :  { %v2361_v23 = vpop.permute.xlu0 %2360 }
0x2702   :  { %v3981_v49 = vmul.f32 %v2361_v23, %v2344_v17 }
0x2704   :  { %2380 = vrot.lane.b32.xlu1 %v3981_v49, %s3056_s10 }
0x2776   :  { %v2381_v48 = vpop.permute.xlu1 %2380 }
0x2777   :  { %2797 = vmatmul.msk.f32.vlgmr.msra.gmra.mxu2 %vm1131_vm8, %v2381_v48 }
0x27fa   :  { %v2401_v32 = vpop.f32.mrf.mxu2 }
0x27fb   :  { %v2404_v63 = vadd.f32 %v2401_v32, %v2378_v45  ;;  %v4003_v32 = vld [vmem:[%s4146_s9] sm:$0xff] }
0x27fd   :  { %2973 = vtanh.f32 %v2404_v63  ;;  %v2798_v52 = vmul.f32 -1.442695, %v2404_v63  ;;  %v1193_v63 = vperm.slane %v4003_v32, 0 }
0x27ff   :  { %2975 = vpow2.f32 %v2798_v52 }
0x2803   :  { %v2974_v6 = vpop.eup %2973 }
0x2804   :  { %2427 = vrot.lane.b32.xlu2 %v2974_v6, %s3053_s30 }
0x2805   :  { %v2976_v54 = vpop.eup %2975 }
0x2806   :  { %v2408_v1 = vadd.f32 1.0, %v2976_v54 }
0x2808   :  { %2977 = vrcp.f32 %v2408_v1  ;;  %v2420_v59 = vand.u32 2147483648, %v2408_v1  ;;  %vm2414_vm14 = vweird.f32 %v2408_v1  ;;  %v2418_v38 = vand.u32 2147483647, %v2408_v1 }
0x280a   :  { %v2421_v26 = vor.u32 1.1754944e-38, %v2420_v59  ;;  %vm2419_vm1 = vcmp.eq.f32.partialorder %v2418_v38, 8.507059e+37  ;;  %v1350_v59 = vperm.slane %v4003_v32, 2 }
0x280e   :  { %v2978_v2 = vpop.eup %2977 }
0x280f   :  { %v2410_v47 = vmul.f32 %v2978_v2, %v2408_v1  ;;  %vm2415_vm12 = vweird.f32 %v2978_v2 }
0x2810   :  { %vm2416_vm0 = vmor %vm2414_vm14, %vm2415_vm12  ;;  %vm2695_vm14 = vcmask 1024  }
0x2811   :  { %v2411_v11 = vsub.f32 1.0, %v2410_v47 }
0x2813   :  { %v2412_v34 = vmul.f32 %v2978_v2, %v2411_v11 }
0x2815   :  { %v2413_v16 = vadd.f32 %v2978_v2, %v2412_v34 }
0x2817   :  { %v2417_v12 = vsel %vm2416_vm0, %v2978_v2, %v2413_v16  ;;  %v1272_v2 = vperm.slane %v4003_v32, 1 }
0x2818   :  { %v2422_v61 = vsel %vm2419_vm1, %v2421_v26, %v2417_v12 }
0x2819   :  { %v2425_v62 = vmul.f32 %v2422_v61, %v2357_v50 }
0x285e   :  { %v2428_v60 = vpop.permute.xlu2 %2427 }
0x285f   :  { %v2430_v57 = vmul.f32 %v2428_v60, %v2422_v61  ;;  %v2534_v60 = vld [vmem:[#allocation4 + $0x70] sm:$0x3] }
0x2861   :  { %2432 = vrot.lane.b32.xlu0 %v2430_v57, %s3056_s10 }
0x28d3   :  { %v2433_v13 = vpop.permute.xlu0 %2432 }
0x28d4   :  { %v2435_v55 = vadd.f32 %v2433_v13, %v2425_v62  ;;  %v1428_v13 = vperm.slane %v4003_v32, 3 }
0x28d6   :  { %2979 = vtanh.f32 %v2435_v55 }
0x28dc   :  { %v2980_v0 = vpop.eup %2979 }
0x28dd   :  { %2438 = vrot.lane.b32.xlu1 %v2980_v0, %s3053_s30 }
0x294f   :  { %v2439_v8 = vpop.permute.xlu1 %2438 }
0x2950   :  { %v3989_v5 = vmul.f32 %v2439_v8, %v2422_v61 }
0x2952   :  { %2458 = vrot.lane.b32.xlu2 %v3989_v5, %s3056_s10 }
0x29ac   :  { %v2459_v51 = vpop.permute.xlu2 %2458 }
0x29ad   :  { %2799 = vmatmul.msk.f32.vlgmr.msra.gmra.mxu3 %vm1131_vm8, %v2459_v51 }
0x2a30   :  { %v2479_v44 = vpop.f32.mrf.mxu3 }
0x2a31   :  { %v2482_v36 = vadd.f32 %v2479_v44, %v2456_v33 }
0x2a33   :  { %2981 = vtanh.f32 %v2482_v36  ;;  %v2800_v19 = vmul.f32 -1.442695, %v2482_v36 }
0x2a35   :  { %2983 = vpow2.f32 %v2800_v19 }
0x2a39   :  { %v2982_v37 = vpop.eup %2981 }
0x2a3a   :  { %2505 = vrot.lane.b32.xlu0 %v2982_v37, %s3053_s30 }
0x2a3b   :  { %v2984_v41 = vpop.eup %2983 }
0x2a3c   :  { %v2486_v9 = vadd.f32 1.0, %v2984_v41 }
0x2a3e   :  { %2985 = vrcp.f32 %v2486_v9  ;;  %v2498_v28 = vand.u32 2147483648, %v2486_v9  ;;  %vm2492_vm2 = vweird.f32 %v2486_v9  ;;  %v2496_v15 = vand.u32 2147483647, %v2486_v9 }
0x2a40   :  { %v2499_v58 = vor.u32 1.1754944e-38, %v2498_v28  ;;  %vm2497_vm4 = vcmp.eq.f32.partialorder %v2496_v15, 8.507059e+37 }
0x2a44   :  { %v2986_v7 = vpop.eup %2985 }
0x2a45   :  { %v2488_v10 = vmul.f32 %v2986_v7, %v2486_v9  ;;  %vm2493_vm7 = vweird.f32 %v2986_v7 }
0x2a46   :  { %vm2494_vm3 = vmor %vm2492_vm2, %vm2493_vm7 }
0x2a47   :  { %v2489_v29 = vsub.f32 1.0, %v2488_v10 }
0x2a49   :  { %v2490_v4 = vmul.f32 %v2986_v7, %v2489_v29 }
0x2a4b   :  { %v2491_v20 = vadd.f32 %v2986_v7, %v2490_v4 }
0x2a4d   :  { %v2495_v17 = vsel %vm2494_vm3, %v2986_v7, %v2491_v20 }
0x2a4e   :  { %v2500_v25 = vsel %vm2497_vm4, %v2499_v58, %v2495_v17 }
0x2a4f   :  { %v2503_v22 = vmul.f32 %v2500_v25, %v2435_v55 }
0x2aac   :  { %v2506_v40 = vpop.permute.xlu0 %2505 }
0x2aad   :  { %v2508_v50 = vmul.f32 %v2506_v40, %v2500_v25 }
0x2aaf   :  { %2510 = vrot.lane.b32.xlu1 %v2508_v50, %s3056_s10 }
0x2b21   :  { %v2511_v23 = vpop.permute.xlu1 %2510 }
0x2b22   :  { %v3996_v48 = vadd.f32 %v2511_v23, %v2503_v22  ;;  %v1506_v22 = vperm.slane %v4003_v32, 4 }
0x2b24   :  { %2987 = vtanh.f32 %v3996_v48 }
0x2b2a   :  { %v2988_v45 = vpop.eup %2987 }
0x2b2b   :  { %2516 = vrot.lane.b32.xlu2 %v2988_v45, %s3053_s30 }
0x2b33   :  { %1195 = vrot.lane.b32.xlu2 %v1193_v63, %s3069_s2 }
0x2b85   :  { %v2517_v6 = vpop.permute.xlu2 %2516 }
0x2b86   :  { %v4007_v52 = vmul.f32 %v2517_v6, %v2500_v25 }
0x2b88   :  { %2536 = vrot.lane.b32.xlu0 %v4007_v52, %s3056_s10 }
0x2b8d   :  { %v1196_v54 = vpop.permute.xlu2 %1195 }
0x2b8e   :  { %v1198_v1 = vmul.f32 %v1196_v54, %v3722_v43 }
0x2b90   :  { %1200 = vrot.lane.b32.xlu0 %v1198_v1, %s3056_s10 }
0x2b98   :  { %1274 = vrot.lane.b32.xlu0 %v1272_v2, %s3069_s2 }
0x2bfa   :  { %v2537_v47 = vpop.permute.xlu0 %2536 }
0x2bfb   :  { %2801 = vmatmul.msk.f32.vlgmr.msrb.gmra.mxu1 %vm1131_vm8, %v2537_v47 }
0x2c02   :  { %v1201_v11 = vpop.permute.xlu0 %1200 }
0x2c03   :  { %v1204_v62 = vsel %vm1203_vm5, %v1201_v11, 0.0 }
0x2c0a   :  { %v1275_v34 = vpop.permute.xlu0 %1274 }
0x2c0b   :  { %v1277_v16 = vmul.f32 %v1275_v34, %v3761_v31 }
0x2c0d   :  { %1279 = vrot.lane.b32.xlu2 %v1277_v16, %s3056_s10 }
0x2c15   :  { %1352 = vrot.lane.b32.xlu2 %v1350_v59, %s3069_s2  ;;  %v1662_v59 = vperm.slane %v4003_v32, 6 }
0x2c67   :  { %v1280_v43 = vpop.permute.xlu2 %1279 }
0x2c68   :  { %v1282_v38 = vsel %vm1203_vm5, %v1280_v43, 0.0 }
0x2c69   :  { %1283 = vadd.xlane.f32.xlu0 %v1282_v38 }
0x2c6f   :  { %v1353_v12 = vpop.permute.xlu2 %1352 }
0x2c70   :  { %v1355_v26 = vmul.f32 %v1353_v12, %v3785_v53 }
0x2c72   :  { %1357 = vrot.lane.b32.xlu2 %v1355_v26, %s3056_s10 }
0x2c78   :  { %v2557_v61 = vpop.f32.mrf.mxu1 }
0x2c79   :  { %v2560_v57 = vadd.f32 %v2557_v61, %v2534_v60 }
0x2c7b   :  { %2989 = vtanh.f32 %v2560_v57  ;;  %v2802_v55 = vmul.f32 -1.442695, %v2560_v57  ;;  %v1740_v57 = vperm.slane %v4003_v32, 7 }
0x2c7d   :  { %2991 = vpow2.f32 %v2802_v55 }
0x2c81   :  { %v2990_v31 = vpop.eup %2989 }
0x2c82   :  { %2583 = vrot.lane.b32.xlu1 %v2990_v31, %s3053_s30  ;;  %v4061_v31 = vld [vmem:[%s4146_s9 + $0x8] sm:$0xff] }
0x2c83   :  { %v2992_v0 = vpop.eup %2991 }
0x2c84   :  { %v2564_v53 = vadd.f32 1.0, %v2992_v0 }
0x2c86   :  { %2993 = vrcp.f32 %v2564_v53  ;;  %v2576_v37 = vand.u32 2147483648, %v2564_v53  ;;  %vm2570_vm11 = vweird.f32 %v2564_v53  ;;  %v2574_v19 = vand.u32 2147483647, %v2564_v53 }
0x2c88   :  { %v2577_v9 = vor.u32 1.1754944e-38, %v2576_v37  ;;  %vm2575_vm15 = vcmp.eq.f32.partialorder %v2574_v19, 8.507059e+37 }
0x2c8c   :  { %v2994_v8 = vpop.eup %2993 }
0x2c8d   :  { %v2566_v51 = vmul.f32 %v2994_v8, %v2564_v53  ;;  %vm2571_vm6 = vweird.f32 %v2994_v8 }
0x2c8e   :  { %vm2572_vm13 = vmor %vm2570_vm11, %vm2571_vm6 }
0x2c8f   :  { %v2567_v33 = vsub.f32 1.0, %v2566_v51 }
0x2c91   :  { %v2568_v44 = vmul.f32 %v2994_v8, %v2567_v33 }
0x2c93   :  { %v2569_v36 = vadd.f32 %v2994_v8, %v2568_v44 }
0x2c95   :  { %v2573_v41 = vsel %vm2572_vm13, %v2994_v8, %v2569_v36 }
0x2c96   :  { %v2578_v10 = vsel %vm2575_vm15, %v2577_v9, %v2573_v41 }
0x2c97   :  { %v2581_v17 = vmul.f32 %v2578_v10, %v3996_v48 }
0x2cac   :  { %1205 = vadd.xlane.f32.xlu1 %v1204_v62  ;;  %v1818_v62 = vperm.slane %v4061_v31, 0 }
0x2cc5   :  { %1430 = vrot.lane.b32.xlu1 %v1428_v13, %s3069_s2 }
0x2ccc   :  { %v1358_v15 = vpop.permute.xlu2 %1357 }
0x2ccd   :  { %v1360_v50 = vsel %vm1203_vm5, %v1358_v15, 0.0 }
0x2cdc   :  { %v1284_v23 = vpop.xlane.xlu0 %1283 }
0x2cf4   :  { %v2584_v7 = vpop.permute.xlu1 %2583 }
0x2cf5   :  { %v2586_v29 = vmul.f32 %v2584_v7, %v2578_v10  ;;  %v1896_v7 = vperm.slane %v4061_v31, 1 }
0x2cf7   :  { %2588 = vrot.lane.b32.xlu2 %v2586_v29, %s3056_s10 }
0x2d1f   :  { %v1206_v4 = vpop.xlane.xlu1 %1205 }
0x2d20   :  { %v1285_v6 = vadd.f32 %v1284_v23, %v1206_v4 }
0x2d37   :  { %v1431_v20 = vpop.permute.xlu1 %1430 }
0x2d38   :  { %v1433_v28 = vmul.f32 %v1431_v20, %v3801_v24  ;;  %v1584_v24 = vperm.slane %v4003_v32, 5 }
0x2d3a   :  { %1435 = vrot.lane.b32.xlu0 %v1433_v28, %s3056_s10 }
0x2d51   :  { %v2589_v58 = vpop.permute.xlu2 %2588 }
0x2d52   :  { %v4031_v40 = vadd.f32 %v2589_v58, %v2581_v17 }
0x2d54   :  { %2995 = vtanh.f32 %v4031_v40 }
0x2d5a   :  { %v2996_v25 = vpop.eup %2995 }
0x2d5b   :  { %2594 = vrot.lane.b32.xlu2 %v2996_v25, %s3053_s30  ;;  %v2612_v25 = vld [vmem:[#allocation4 + $0x90] sm:$0x3] }
0x2d84   :  { %1361 = vadd.xlane.f32.xlu2 %v1360_v50  ;;  %v2052_v50 = vperm.slane %v4061_v31, 3 }
0x2d9c   :  { %1508 = vrot.lane.b32.xlu2 %v1506_v22, %s3069_s2 }
0x2da4   :  { %1586 = vrot.lane.b32.xlu2 %v1584_v24, %s3069_s2 }
0x2dac   :  { %v1436_v48 = vpop.permute.xlu0 %1435 }
0x2dad   :  { %v1438_v45 = vsel %vm1203_vm5, %v1436_v48, 0.0 }
0x2dae   :  { %1439 = vadd.xlane.f32.xlu1 %v1438_v45 }
0x2db5   :  { %v2595_v63 = vpop.permute.xlu2 %2594 }
0x2db6   :  { %v4043_v34 = vmul.f32 %v2595_v63, %v2578_v10 }
0x2df7   :  { %v1362_v54 = vpop.xlane.xlu2 %1361 }
0x2df8   :  { %v1363_v1 = vadd.f32 %v1362_v54, %v1285_v6 }
0x2dff   :  { %v1509_v2 = vpop.permute.xlu2 %1508 }
0x2e00   :  { %v1511_v47 = vmul.f32 %v1509_v2, %v3818_v30 }
0x2e02   :  { %1513 = vrot.lane.b32.xlu0 %v1511_v47, %s3056_s10  ;;  %v2130_v47 = vperm.slane %v4061_v31, 4 }
0x2e07   :  { %v1587_v11 = vpop.permute.xlu2 %1586 }
0x2e08   :  { %v1589_v16 = vmul.f32 %v1587_v11, %v3834_v14 }
0x2e0a   :  { %2614 = vrot.lane.b32.xlu0 %v4043_v34, %s3056_s10  ;;  %1591 = vrot.lane.b32.xlu1 %v1589_v16, %s3056_s10 }
0x2e12   :  { %1664 = vrot.lane.b32.xlu1 %v1662_v59, %s3069_s2 }
0x2e21   :  { %v1440_v43 = vpop.xlane.xlu1 %1439 }
0x2e22   :  { %v1441_v13 = vadd.f32 %v1440_v43, %v1363_v1  ;;  %v2208_v43 = vperm.slane %v4061_v31, 5 }
0x2e74   :  { %v1514_v38 = vpop.permute.xlu0 %1513 }
0x2e75   :  { %v1516_v30 = vsel %vm1203_vm5, %v1514_v38, 0.0 }
0x2e76   :  { %1517 = vadd.xlane.f32.xlu0 %v1516_v30 }
0x2e7c   :  { %v2615_v12 = vpop.permute.xlu0 %2614  ;;  %v1592_v26 = vpop.permute.xlu1 %1591 }
0x2e7d   :  { %v1594_v60 = vsel %vm1203_vm5, %v1592_v26, 0.0  ;;  %2803 = vmatmul.msk.f32.vlgmr.msrb.gmra.mxu2 %vm1131_vm8, %v2615_v12 }
0x2e7e   :  { %1595 = vadd.xlane.f32.xlu2 %v1594_v60 }
0x2e84   :  { %v1665_v14 = vpop.permute.xlu1 %1664 }
0x2e85   :  { %v1667_v61 = vmul.f32 %v1665_v14, %v3851_v42 }
0x2e8a   :  { %1669 = vrot.lane.b32.xlu0 %v1667_v61, %s3056_s10 }
0x2e96   :  { %1742 = vrot.lane.b32.xlu2 %v1740_v57, %s3069_s2 }
0x2e9e   :  { %1820 = vrot.lane.b32.xlu2 %v1818_v62, %s3069_s2 }
0x2ee9   :  { %v1518_v55 = vpop.xlane.xlu0 %1517 }
0x2eea   :  { %v1519_v0 = vadd.f32 %v1518_v55, %v1441_v13 }
0x2ef1   :  { %v1596_v53 = vpop.xlane.xlu2 %1595 }
0x2ef2   :  { %v1597_v42 = vadd.f32 %v1596_v53, %v1519_v0 }
0x2ef9   :  { %v1743_v8 = vpop.permute.xlu2 %1742 }
0x2efa   :  { %v1745_v51 = vmul.f32 %v1743_v8, %v3867_v18  ;;  %v1974_v18 = vperm.slane %v4061_v31, 2 }
0x2efc   :  { %1747 = vrot.lane.b32.xlu0 %v1745_v51, %s3056_s10  ;;  %v1670_v32 = vpop.permute.xlu0 %1669 }
0x2efd   :  { %v1672_v33 = vsel %vm1203_vm5, %v1670_v32, 0.0 }
0x2efe   :  { %1673 = vadd.xlane.f32.xlu1 %v1672_v33 }
0x2f00   :  { %v2635_v58 = vpop.f32.mrf.mxu2 }
0x2f01   :  { %v1821_v44 = vpop.permute.xlu2 %1820  ;;  %v2638_v22 = vadd.f32 %v2635_v58, %v2612_v25 }
0x2f02   :  { %v1823_v36 = vmul.f32 %v1821_v44, %v3905_v35 }
0x2f03   :  { %2997 = vtanh.f32 %v2638_v22  ;;  %v2804_v23 = vmul.f32 -1.442695, %v2638_v22 }
0x2f05   :  { %2999 = vpow2.f32 %v2804_v23 }
0x2f09   :  { %v2998_v24 = vpop.eup %2997 }
0x2f0b   :  { %v3000_v48 = vpop.eup %2999 }
0x2f0c   :  { %v2642_v63 = vadd.f32 1.0, %v3000_v48 }
0x2f0e   :  { %3001 = vrcp.f32 %v2642_v63  ;;  %v2654_v30 = vand.u32 2147483648, %v2642_v63  ;;  %vm2648_vm10 = vweird.f32 %v2642_v63  ;;  %v2652_v12 = vand.u32 2147483647, %v2642_v63 }
0x2f10   :  { %v2655_v14 = vor.u32 1.1754944e-38, %v2654_v30  ;;  %vm2653_vm12 = vcmp.eq.f32.partialorder %v2652_v12, 8.507059e+37 }
0x2f14   :  { %v3002_v6 = vpop.eup %3001 }
0x2f15   :  { %v2644_v1 = vmul.f32 %v3002_v6, %v2642_v63  ;;  %vm2649_vm8 = vweird.f32 %v3002_v6 }
0x2f16   :  { %vm2650_vm9 = vmor %vm2648_vm10, %vm2649_vm8 }
0x2f17   :  { %1825 = vrot.lane.b32.xlu1 %v1823_v36, %s3056_s10  ;;  %v2645_v11 = vsub.f32 1.0, %v2644_v1 }
0x2f19   :  { %v2646_v59 = vmul.f32 %v3002_v6, %v2645_v11 }
0x2f1b   :  { %v2647_v38 = vadd.f32 %v3002_v6, %v2646_v59 }
0x2f1d   :  { %v2651_v26 = vsel %vm2650_vm9, %v3002_v6, %v2647_v38 }
0x2f1e   :  { %v4089_v61 = vsel %vm2653_vm12, %v2655_v14, %v2651_v26 }
0x2f6e   :  { %v1748_v37 = vpop.permute.xlu0 %1747 }
0x2f6f   :  { %v1750_v19 = vsel %vm1203_vm5, %v1748_v37, 0.0 }
0x2f70   :  { %1751 = vadd.xlane.f32.xlu0 %v1750_v19 }
0x2f71   :  { %v1674_v41 = vpop.xlane.xlu1 %1673 }
0x2f72   :  { %v1675_v9 = vadd.f32 %v1674_v41, %v1597_v42 }
0x2f84   :  { %1898 = vrot.lane.b32.xlu0 %v1896_v7, %s3069_s2 }
0x2f89   :  { %v1826_v10 = vpop.permute.xlu1 %1825 }
0x2f8a   :  { %v1828_v29 = vsel %vm1203_vm5, %v1826_v10, 0.0 }
0x2f8b   :  { %1829 = vadd.xlane.f32.xlu2 %v1828_v29 }
0x2f8c   :  { %1976 = vrot.lane.b32.xlu0 %v1974_v18, %s3069_s2 }
0x2fe3   :  { %v1752_v35 = vpop.xlane.xlu0 %1751 }
0x2fe4   :  { %v1753_v4 = vadd.f32 %v1752_v35, %v1675_v9  ;;  %v2364_v35 = vperm.slane %v4061_v31, 7 }
0x2ff6   :  { %v1899_v20 = vpop.permute.xlu0 %1898 }
0x2ff7   :  { %v1901_v28 = vmul.f32 %v1899_v20, %v3917_v39  ;;  %v2659_v20 = vmul.f32 %v4089_v61, %v4031_v40 }
0x2ff9   :  { %1903 = vrot.lane.b32.xlu1 %v1901_v28, %s3056_s10 }
0x2ffe   :  { %v1977_v15 = vpop.permute.xlu0 %1976  ;;  %v1830_v39 = vpop.xlane.xlu2 %1829 }
0x2fff   :  { %v1979_v17 = vmul.f32 %v1977_v15, %v3929_v27  ;;  %v1831_v55 = vadd.f32 %v1830_v39, %v1753_v4 }
0x3001   :  { %1981 = vrot.lane.b32.xlu2 %v1979_v17, %s3056_s10 }
0x3009   :  { %2054 = vrot.lane.b32.xlu2 %v2052_v50, %s3069_s2 }
0x3011   :  { %2661 = vrot.lane.b32.xlu2 %v2998_v24, %s3053_s30 }
0x305b   :  { %v1982_v45 = vpop.permute.xlu2 %1981 }
0x305c   :  { %v1984_v27 = vsel %vm1203_vm5, %v1982_v45, 0.0 }
0x305d   :  { %1985 = vadd.xlane.f32.xlu0 %v1984_v27 }
0x3063   :  { %v2055_v16 = vpop.permute.xlu2 %2054 }
0x3064   :  { %v2057_v62 = vmul.f32 %v2055_v16, %v3941_v46  ;;  %v2286_v46 = vperm.slane %v4061_v31, 6 }
0x306b   :  { %v1904_v54 = vpop.permute.xlu1 %1903  ;;  %v2662_v60 = vpop.permute.xlu2 %2661 }
0x306c   :  { %v1906_v2 = vsel %vm1203_vm5, %v1904_v54, 0.0  ;;  %v2664_v57 = vmul.f32 %v2662_v60, %v4089_v61 }
0x306d   :  { %1907 = vadd.xlane.f32.xlu1 %v1906_v2 }
0x3071   :  { %2132 = vrot.lane.b32.xlu0 %v2130_v47, %s3069_s2 }
0x3079   :  { %2210 = vrot.lane.b32.xlu0 %v2208_v43, %s3069_s2 }
0x3081   :  { %2666 = vrot.lane.b32.xlu0 %v2664_v57, %s3056_s10 }
0x3086   :  { %2059 = vrot.lane.b32.xlu1 %v2057_v62, %s3056_s10 }
0x30d0   :  { %v1986_v13 = vpop.xlane.xlu0 %1985 }
0x30e0   :  { %v1908_v0 = vpop.xlane.xlu1 %1907 }
0x30e1   :  { %v1909_v53 = vadd.f32 %v1908_v0, %v1831_v55 }
0x30e3   :  { %v2133_v42 = vpop.permute.xlu0 %2132  ;;  %v1987_v8 = vadd.f32 %v1986_v13, %v1909_v53 }
0x30e4   :  { %v2135_v51 = vmul.f32 %v2133_v42, %v3953_v21  ;;  %v2844_v42 = vld [vmem:[#allocation7] ss:$0 sm:$0xff] }
0x30e6   :  { %2137 = vrot.lane.b32.xlu1 %v2135_v51, %s3056_s10 }
0x30eb   :  { %v2211_v44 = vpop.permute.xlu0 %2210 }
0x30ec   :  { %v2213_v36 = vmul.f32 %v2211_v44, %v3965_v3  ;;  %v1129_v3 = vld [vmem:[%s4146_s9 + $0x10] sm:$0xf] }
0x30ed   :  { %v2442_v29 = vperm.slane %v1129_v3, 0  ;;  %v2520_v28 = vperm.slane %v1129_v3, 1  ;;  %v2676_v45 = vperm.slane %v1129_v3, 3 }
0x30f3   :  { %v2667_v4 = vpop.permute.xlu0 %2666 }
0x30f4   :  { %v2669_v15 = vadd.f32 %v2667_v4, %v2659_v20 }
0x30f6   :  { %3003 = vtanh.f32 %v2669_v15 }
0x30f8   :  { %v2060_v32 = vpop.permute.xlu1 %2059 }
0x30f9   :  { %v2062_v33 = vsel %vm1203_vm5, %v2060_v32, 0.0 }
0x30fa   :  { %2063 = vadd.xlane.f32.xlu2 %v2062_v33 }
0x30fc   :  { %v3004_v17 = vpop.eup %3003 }
0x3112   :  { %2215 = vrot.lane.b32.xlu2 %v2213_v36, %s3056_s10 }
0x311a   :  { %2288 = vrot.lane.b32.xlu2 %v2286_v46, %s3069_s2 }
0x3158   :  { %v2138_v37 = vpop.permute.xlu1 %2137 }
0x3159   :  { %v2140_v19 = vsel %vm1203_vm5, %v2138_v37, 0.0 }
0x315a   :  { %2141 = vadd.xlane.f32.xlu1 %v2140_v19 }
0x316d   :  { %v2064_v21 = vpop.xlane.xlu2 %2063 }
0x316e   :  { %v2065_v41 = vadd.f32 %v2064_v21, %v1987_v8 }
0x3175   :  { %v2216_v9 = vpop.permute.xlu2 %2215 }
0x3176   :  { %v2218_v7 = vsel %vm1203_vm5, %v2216_v9, 0.0 }
0x3177   :  { %2219 = vadd.xlane.f32.xlu0 %v2218_v7 }
0x317d   :  { %v2289_v18 = vpop.permute.xlu2 %2288 }
0x317e   :  { %v2291_v10 = vmul.f32 %v2289_v18, %v3973_v56  ;;  %v2598_v56 = vperm.slane %v1129_v3, 2 }
0x3180   :  { %2293 = vrot.lane.b32.xlu1 %v2291_v10, %s3056_s10 }
0x3188   :  { %2444 = vrot.lane.b32.xlu1 %v2442_v29, %s3069_s2 }
0x318b   :  { %2366 = vrot.lane.b32.xlu0 %v2364_v35, %s3069_s2 }
0x3190   :  { %2522 = vrot.lane.b32.xlu1 %v2520_v28, %s3069_s2 }
0x3193   :  { %2600 = vrot.lane.b32.xlu0 %v2598_v56, %s3069_s2 }
0x3198   :  { %2672 = vrot.lane.b32.xlu1 %v3004_v17, %s3053_s30 }
0x31cd   :  { %v2142_v31 = vpop.xlane.xlu1 %2141 }
0x31ce   :  { %v2143_v58 = vadd.f32 %v2142_v31, %v2065_v41 }
0x31ea   :  { %v2220_v25 = vpop.xlane.xlu0 %2219 }
0x31eb   :  { %v2221_v50 = vadd.f32 %v2220_v25, %v2143_v58 }
0x31f2   :  { %v2294_v22 = vpop.permute.xlu1 %2293 }
0x31f3   :  { %v2296_v40 = vsel %vm1203_vm5, %v2294_v22, 0.0 }
0x31f4   :  { %2297 = vadd.xlane.f32.xlu2 %v2296_v40 }
0x31fa   :  { %v2445_v39 = vpop.permute.xlu1 %2444 }
0x31fb   :  { %v2447_v48 = vmul.f32 %v2445_v39, %v3989_v5 }
0x31fd   :  { %v2367_v24 = vpop.permute.xlu0 %2366 }
0x31fe   :  { %v2369_v23 = vmul.f32 %v2367_v24, %v3981_v49 }
0x3200   :  { %2371 = vrot.lane.b32.xlu0 %v2369_v23, %s3056_s10 }
0x3202   :  { %v2523_v27 = vpop.permute.xlu1 %2522 }
0x3203   :  { %v2525_v63 = vmul.f32 %v2523_v27, %v4007_v52 }
0x3205   :  { %v2601_v6 = vpop.permute.xlu0 %2600 }
0x3206   :  { %v2603_v54 = vmul.f32 %v2601_v6, %v4043_v34 }
0x3208   :  { %2449 = vrot.lane.b32.xlu0 %v2447_v48, %s3056_s10 }
0x320a   :  { %v2673_v2 = vpop.permute.xlu1 %2672 }
0x320b   :  { %v2675_v5 = vmul.f32 %v2673_v2, %v4089_v61 }
0x320c   :  { %2678 = vrot.lane.b32.xlu2 %v2676_v45, %s3069_s2 }
0x3210   :  { %2527 = vrot.lane.b32.xlu0 %v2525_v63, %s3056_s10 }
0x3214   :  { %2605 = vrot.lane.b32.xlu2 %v2603_v54, %s3056_s10 }
0x3267   :  { %v2298_v49 = vpop.xlane.xlu2 %2297 }
0x3268   :  { %v2299_v1 = vadd.f32 %v2298_v49, %v2221_v50 }
0x326f   :  { %v2679_v47 = vpop.permute.xlu2 %2678 }
0x3270   :  { %v2681_v11 = vmul.f32 %v2679_v47, %v2675_v5 }
0x3272   :  { %v2372_v16 = vpop.permute.xlu0 %2371  ;;  %2683 = vrot.lane.b32.xlu0 %v2681_v11, %s3056_s10 }
0x3273   :  { %v2374_v59 = vsel %vm1203_vm5, %v2372_v16, 0.0 }
0x3274   :  { %2375 = vadd.xlane.f32.xlu1 %v2374_v59 }
0x3277   :  { %v2606_v52 = vpop.permute.xlu2 %2605 }
0x3278   :  { %v2608_v38 = vsel %vm1203_vm5, %v2606_v52, 0.0 }
0x327a   :  { %v2450_v43 = vpop.permute.xlu0 %2449 }
0x327b   :  { %v2452_v34 = vsel %vm1203_vm5, %v2450_v43, 0.0 }
0x327c   :  { %2453 = vadd.xlane.f32.xlu2 %v2452_v34  ;;  %2609 = vadd.xlane.f32.xlu1 %v2608_v38 }
0x3282   :  { %v2528_v30 = vpop.permute.xlu0 %2527 }
0x3283   :  { %v2530_v12 = vsel %vm1203_vm5, %v2528_v30, 0.0 }
0x329c   :  { %2531 = vadd.xlane.f32.xlu0 %v2530_v12 }
0x32e4   :  { %v2684_v26 = vpop.permute.xlu0 %2683 }
0x32e5   :  { %v2686_v60 = vsel %vm1203_vm5, %v2684_v26, 0.0 }
0x32e6   :  { %2687 = vadd.xlane.f32.xlu1 %v2686_v60 }
0x32e7   :  { %v2376_v14 = vpop.xlane.xlu1 %2375 }
0x32e8   :  { %v2377_v57 = vadd.f32 %v2376_v14, %v2299_v1 }
0x32ef   :  { %v2454_v61 = vpop.xlane.xlu2 %2453  ;;  %v2610_v62 = vpop.xlane.xlu1 %2609 }
0x32f0   :  { %v2455_v55 = vadd.f32 %v2454_v61, %v2377_v57 }
0x330f   :  { %v2532_v13 = vpop.xlane.xlu0 %2531 }
0x3310   :  { %v2533_v0 = vadd.f32 %v2532_v13, %v2455_v55 }
0x3312   :  { %v2611_v53 = vadd.f32 %v2610_v62, %v2533_v0 }
0x3359   :  { %v2688_v8 = vpop.xlane.xlu1 %2687 }
0x335a   :  { %v2689_v51 = vadd.f32 %v2688_v8, %v2611_v53 }
0x335c   :  { %v2694_v32 = vadd.f32 %v2844_v42, %v2689_v51 }
0x335e   :  { %2696 = vst.msk [vmem:[%s4148_s11] sm:$0x3] %vm2695_vm14, %v2694_v32 }
0x335f   :  { %2701 = vsyncpa [#allocation9], 1 }
0x3360   :  { %2702 = vsyncpa [#allocation11], 1 }

</bundles_post_ra>
